<compile_context>
chip_gen: v7x
topology: tpu7x:2x2x1
jax: 0.10.0
libtpu: 0.0.40
codegen_flags: <defaults>
</compile_context>

<pallas_src>
import math
from functools import partial

import jax
import jax.numpy as jnp
from jax import lax
from jax.experimental import pallas as pl
from jax.experimental.pallas import tpu as pltpu  # noqa: F401  (kept for completeness)

# ---------------- small-BERT config ----------------
B, S = 2, 8               # batch, sequence length
BS = B * S
HIDDEN = 32
NUM_HEADS = 4
HEAD_DIM = HIDDEN // NUM_HEADS
INTERMEDIATE = 64
NUM_LAYERS = 2
VOCAB = 100
TYPE_VOCAB = 2
MAX_POS = 16
LN_EPS = 1e-12
ENCODER_TYPE = "cls"      # matches config.encoder_type in the PyTorch module

# Lane-dense padded widths (last-dim multiples of 128).
HP = 128                  # padded hidden
IP = 128                  # padded intermediate
HEAD_PAD = 128            # per-head q/k/v padded width -> 128-aligned slices
QKV_COLS = NUM_HEADS * 3 * HEAD_PAD


# ---------------- in-kernel helpers ----------------
def _layer_norm_pad(x, g, b):
    """LayerNorm on zero-padded activations.

    Columns >= HIDDEN are exactly zero, so sums over the padded width equal
    sums over the true width; we divide by the TRUE hidden size.  gamma/beta
    are zero-padded, which forces the padded columns back to exactly 0.
    """
    mu = jnp.sum(x, axis=-1, keepdims=True) * (1.0 / HIDDEN)
    var = jnp.sum(x * x, axis=-1, keepdims=True) * (1.0 / HIDDEN) - mu * mu
    return (x - mu) * lax.rsqrt(var + LN_EPS) * g + b


def _gelu(x):
    # TODO(synk): HF BERT uses exact erf-GELU; tanh approximation keeps the
    # transcendental on the EUP with guaranteed Mosaic lowering. gelu(0)=0, so
    # padded columns stay zero.
    c = math.sqrt(2.0 / math.pi)
    return 0.5 * x * (1.0 + jnp.tanh(c * (x + 0.044715 * x * x * x)))


# ---------------- fused encoder kernel (single invocation, no grid) ----------------
def _encoder_kernel(emb_ref, mask_ref, eg_ref, eb_ref,
                    qkv_w_ref, qkv_b_ref, ao_w_ref, ao_b_ref,
                    aln_g_ref, aln_b_ref,
                    ff1_w_ref, ff1_b_ref, ff2_w_ref, ff2_b_ref,
                    fln_g_ref, fln_b_ref,
                    out_ref):
    mask = mask_ref[...]                                              # [B, S, S] additive

    # Embedding LayerNorm (no residual).
    h = _layer_norm_pad(emb_ref[...], eg_ref[...], eb_ref[...])       # [BS, HP]

    for l in range(NUM_LAYERS):                                       # static unroll
        # ---- self attention: fused QKV projection (scale folded into Q) ----
        qkv = jnp.dot(h, qkv_w_ref[l],
                      preferred_element_type=jnp.float32) + qkv_b_ref[l]   # [BS, QKV_COLS]

        attn = jnp.zeros((BS, HP), jnp.float32)
        for n in range(NUM_HEADS):                                    # static unroll, 128-aligned slices
            base = 3 * HEAD_PAD * n
            q = qkv[:, base:base + HEAD_PAD].reshape(B, S, HEAD_PAD)
            k = qkv[:, base + HEAD_PAD:base + 2 * HEAD_PAD].reshape(B, S, HEAD_PAD)
            v = qkv[:, base + 2 * HEAD_PAD:base + 3 * HEAD_PAD].reshape(B, S, HEAD_PAD)

            s = jnp.einsum('bqd,bkd->bqk', q, k,
                           preferred_element_type=jnp.float32) + mask      # [B, S, S]
            p = jnp.exp(s - jnp.max(s, axis=-1, keepdims=True))
            p = p * pl.reciprocal(jnp.sum(p, axis=-1, keepdims=True), approx=True)

            ctx = jnp.einsum('bqk,bkd->bqd', p, v,
                             preferred_element_type=jnp.float32).reshape(BS, HEAD_PAD)
            # head-merge == per-head output projection + accumulate (no concat)
            attn = attn + jnp.dot(ctx, ao_w_ref[l * NUM_HEADS + n],
                                  preferred_element_type=jnp.float32)

        h = _layer_norm_pad(attn + ao_b_ref[l] + h, aln_g_ref[l], aln_b_ref[l])

        # ---- feed forward ----
        ff = _gelu(jnp.dot(h, ff1_w_ref[l],
                           preferred_element_type=jnp.float32) + ff1_b_ref[l])
        ff = jnp.dot(ff, ff2_w_ref[l],
                     preferred_element_type=jnp.float32) + ff2_b_ref[l]
        h = _layer_norm_pad(ff + h, fln_g_ref[l], fln_b_ref[l])

    out_ref[...] = h                                                  # one lane-dense [BS, 128] store


def _full_spec(arr):
    zeros = (0,) * arr.ndim
    return pl.BlockSpec(arr.shape, lambda: zeros)


def encoder_stack(emb_pad, ext_mask, fp):
    """Single pallas_call running embedding-LN + all transformer layers."""
    operands = [emb_pad, ext_mask, fp["emb_ln_g"], fp["emb_ln_b"],
                fp["qkv_w"], fp["qkv_b"], fp["ao_w"], fp["ao_b"],
                fp["attn_ln_g"], fp["attn_ln_b"],
                fp["ff1_w"], fp["ff1_b"], fp["ff2_w"], fp["ff2_b"],
                fp["ff_ln_g"], fp["ff_ln_b"]]
    M = emb_pad.shape[0]
    return pl.pallas_call(
        _encoder_kernel,
        out_shape=jax.ShapeDtypeStruct((M, HP), jnp.float32),
        in_specs=[_full_spec(a) for a in operands],
        out_specs=pl.BlockSpec((M, HP), lambda: (0, 0)),
    )(*operands)


# ---------------- deterministic parameter init ----------------
def make_params(key):
    keys = iter(jax.random.split(key, 256))

    def w(shape):
        return (0.02 * jax.random.normal(next(keys), shape)).astype(jnp.float32)

    def zeros(n):
        return jnp.zeros((n,), jnp.float32)

    def ones(n):
        return jnp.ones((n,), jnp.float32)

    params = {
        "word_emb": w((VOCAB, HIDDEN)),
        "pos_emb": w((MAX_POS, HIDDEN)),
        "type_emb": w((TYPE_VOCAB, HIDDEN)),
        "emb_ln_g": ones(HIDDEN),
        "emb_ln_b": zeros(HIDDEN),
        "pooler_w": w((HIDDEN, HIDDEN)),
        "pooler_b": zeros(HIDDEN),
        "layers": [],
    }
    for _ in range(NUM_LAYERS):
        params["layers"].append({
            "q_w": w((HIDDEN, HIDDEN)), "q_b": zeros(HIDDEN),
            "k_w": w((HIDDEN, HIDDEN)), "k_b": zeros(HIDDEN),
            "v_w": w((HIDDEN, HIDDEN)), "v_b": zeros(HIDDEN),
            "ao_w": w((HIDDEN, HIDDEN)), "ao_b": zeros(HIDDEN),
            "attn_ln_g": ones(HIDDEN), "attn_ln_b": zeros(HIDDEN),
            "ff1_w": w((HIDDEN, INTERMEDIATE)), "ff1_b": zeros(INTERMEDIATE),
            "ff2_w": w((INTERMEDIATE, HIDDEN)), "ff2_b": zeros(HIDDEN),
            "ff_ln_g": ones(HIDDEN), "ff_ln_b": zeros(HIDDEN),
        })
    return params


# ---------------- weight fusion / lane-dense padding (done ONCE, outside the kernel) ----------------
def _pad2(w, rows, cols):
    return jnp.pad(w, ((0, rows - w.shape[0]), (0, cols - w.shape[1])))


def _pad_row(v, cols):
    v = v.reshape(1, -1)
    return jnp.pad(v, ((0, 0), (0, cols - v.shape[-1])))


def fuse_params(params):
    """Fuse QKV per head (128-padded blocks), fold 1/sqrt(d) into Q, stack layers."""
    L = params["layers"]
    scale = 1.0 / math.sqrt(HEAD_DIM)

    qkv_w_layers, qkv_b_layers, ao_w_heads = [], [], []
    for lp in L:
        col_blocks, bias_blocks = [], []
        for n in range(NUM_HEADS):
            sl = slice(n * HEAD_DIM, (n + 1) * HEAD_DIM)
            col_blocks += [_pad2(lp["q_w"][:, sl] * scale, HP, HEAD_PAD),
                           _pad2(lp["k_w"][:, sl], HP, HEAD_PAD),
                           _pad2(lp["v_w"][:, sl], HP, HEAD_PAD)]
            bias_blocks += [_pad_row(lp["q_b"][sl] * scale, HEAD_PAD),
                            _pad_row(lp["k_b"][sl], HEAD_PAD),
                            _pad_row(lp["v_b"][sl], HEAD_PAD)]
            ao_w_heads.append(_pad2(lp["ao_w"][sl, :], HEAD_PAD, HP))
        qkv_w_layers.append(jnp.concatenate(col_blocks, axis=1))     # [HP, QKV_COLS]
        qkv_b_layers.append(jnp.concatenate(bias_blocks, axis=1))    # [1, QKV_COLS]

    def stack_row(k, cols):
        return jnp.stack([_pad_row(lp[k], cols) for lp in L])

    return {
        "word_emb": params["word_emb"],
        "pos_emb": params["pos_emb"],
        "type_emb": params["type_emb"],
        "emb_ln_g": _pad_row(params["emb_ln_g"], HP),
        "emb_ln_b": _pad_row(params["emb_ln_b"], HP),
        "pooler_w": params["pooler_w"],
        "pooler_b": params["pooler_b"],
        "qkv_w": jnp.stack(qkv_w_layers),                 # [L, HP, QKV_COLS]
        "qkv_b": jnp.stack(qkv_b_layers),                 # [L, 1, QKV_COLS]
        "ao_w": jnp.stack(ao_w_heads),                    # [L*NH, HEAD_PAD, HP]
        "ao_b": stack_row("ao_b", HP),
        "attn_ln_g": stack_row("attn_ln_g", HP),
        "attn_ln_b": stack_row("attn_ln_b", HP),
        "ff1_w": jnp.stack([_pad2(lp["ff1_w"], HP, IP) for lp in L]),
        "ff1_b": stack_row("ff1_b", IP),
        "ff2_w": jnp.stack([_pad2(lp["ff2_w"], IP, HP) for lp in L]),
        "ff2_b": stack_row("ff2_b", HP),
        "ff_ln_g": stack_row("ff_ln_g", HP),
        "ff_ln_b": stack_row("ff_ln_b", HP),
    }


# ---------------- forward pass (Model.forward) ----------------
def bert_forward(fp, input_ids, attention_mask, token_type_ids,
                 encoder_type=ENCODER_TYPE):
    Bb, Ss = input_ids.shape

    # Embedding gathers are glue; everything after runs in one pallas_call.
    pos_ids = jnp.arange(Ss)
    emb = (jnp.take(fp["word_emb"], input_ids, axis=0)
           + fp["pos_emb"][pos_ids][None, :, :]
           + jnp.take(fp["type_emb"], token_type_ids, axis=0))
    emb2 = emb.reshape(Bb * Ss, HIDDEN).astype(jnp.float32)
    emb_pad = jnp.pad(emb2, ((0, 0), (0, HP - HIDDEN)))               # lane-dense [BS, 128]

    # Extended additive attention mask (HF BERT), pre-broadcast once.
    ext = (1.0 - attention_mask.astype(jnp.float32)) * -10000.0       # [B, S]
    ext_mask = jnp.broadcast_to(ext[:, None, :], (Bb, Ss, Ss))        # [B, S, S]

    last_pad = encoder_stack(emb_pad, ext_mask, fp)                   # [B*S, 128]
    last_hidden = last_pad[:, :HIDDEN].reshape(Bb, Ss, HIDDEN)
    cls = last_hidden[:, 0]                                           # [B, HIDDEN]

    if encoder_type == "cls":
        return cls
    elif encoder_type == "pooler":
        # Tiny [B,H]x[H,H] matmul: plain XLA; a dedicated pallas_call is pure launch overhead.
        return jnp.tanh(cls @ fp["pooler_w"] + fp["pooler_b"])
    else:
        raise ValueError(encoder_type)


# ---------------- pure-JAX reference (for a sanity check) ----------------
def ref_forward(params, input_ids, attention_mask, token_type_ids,
                encoder_type=ENCODER_TYPE):
    Bb, Ss = input_ids.shape
    pos_ids = jnp.arange(Ss)
    emb = (params["word_emb"][input_ids]
           + params["pos_emb"][pos_ids][None, :, :]
           + params["type_emb"][token_type_ids]).astype(jnp.float32)

    def ln(x, g, b):
        mu = x.mean(-1, keepdims=True)
        var = ((x - mu) ** 2).mean(-1, keepdims=True)
        return (x - mu) / jnp.sqrt(var + LN_EPS) * g + b

    h = ln(emb, params["emb_ln_g"], params["emb_ln_b"])       # [B, S, H]
    ext = (1.0 - attention_mask.astype(jnp.float32)) * -10000.0

    for lp in params["layers"]:
        q = h @ lp["q_w"] + lp["q_b"]
        k = h @ lp["k_w"] + lp["k_b"]
        v = h @ lp["v_w"] + lp["v_b"]

        def sh(x):
            return x.reshape(Bb, Ss, NUM_HEADS, HEAD_DIM).transpose(0, 2, 1, 3)

        qh, kh, vh = sh(q), sh(k), sh(v)
        s = jnp.einsum('bnqd,bnkd->bnqk', qh, kh) / math.sqrt(HEAD_DIM)
        s = s + ext[:, None, None, :]
        p = jax.nn.softmax(s, axis=-1)
        ctx = (jnp.einsum('bnqk,bnkd->bnqd', p, vh)
               .transpose(0, 2, 1, 3).reshape(Bb, Ss, HIDDEN))
        h = ln(ctx @ lp["ao_w"] + lp["ao_b"] + h,
               lp["attn_ln_g"], lp["attn_ln_b"])
        c = math.sqrt(2.0 / math.pi)
        ff = h @ lp["ff1_w"] + lp["ff1_b"]
        ff = 0.5 * ff * (1.0 + jnp.tanh(c * (ff + 0.044715 * ff ** 3)))
        h = ln(ff @ lp["ff2_w"] + lp["ff2_b"] + h,
               lp["ff_ln_g"], lp["ff_ln_b"])

    cls = h[:, 0]
    if encoder_type == "cls":
        return cls
    return jnp.tanh(cls @ params["pooler_w"] + params["pooler_b"])


# ---------------- main ----------------
if __name__ == "__main__":
    key = jax.random.PRNGKey(0)
    kp, ki = jax.random.split(key, 2)
    params = make_params(kp)
    fused = fuse_params(params)        # padded / QKV-fused / stacked weights (once)

    input_ids = jax.random.randint(ki, (B, S), 0, VOCAB, dtype=jnp.int32)
    token_type_ids = jnp.zeros((B, S), jnp.int32)
    attention_mask = jnp.ones((B, S), jnp.int32).at[1, 6:].set(0)  # pad tail of seq 1

    fwd = jax.jit(partial(bert_forward, encoder_type=ENCODER_TYPE))
    out = fwd(fused, input_ids, attention_mask, token_type_ids)
    jax.block_until_ready(out)

    assert out.shape == (B, HIDDEN) and out.dtype == jnp.float32

    # Loose sanity check against a pure-JAX reference (approx reciprocal in the
    # kernel softmax introduces ~1e-4 relative differences).
    ref = ref_forward(params, input_ids, attention_mask, token_type_ids,
                      ENCODER_TYPE)
    assert jnp.allclose(out, ref, atol=5e-2), "kernel output deviates from reference"

    print("KERNEL_OK")
</pallas_src>

<mosaic_0001>
module attributes {stable_mosaic.version = 11 : i64} {
  func.func @_encoder_kernel(%arg0: memref<16x128xf32, #tpu.memory_space<vmem>>, %arg1: memref<2x8x8xf32, #tpu.memory_space<vmem>>, %arg2: memref<1x128xf32, #tpu.memory_space<vmem>>, %arg3: memref<1x128xf32, #tpu.memory_space<vmem>>, %arg4: memref<2x128x1536xf32, #tpu.memory_space<vmem>>, %arg5: memref<2x1x1536xf32, #tpu.memory_space<vmem>>, %arg6: memref<8x128x128xf32, #tpu.memory_space<vmem>>, %arg7: memref<2x1x128xf32, #tpu.memory_space<vmem>>, %arg8: memref<2x1x128xf32, #tpu.memory_space<vmem>>, %arg9: memref<2x1x128xf32, #tpu.memory_space<vmem>>, %arg10: memref<2x128x128xf32, #tpu.memory_space<vmem>>, %arg11: memref<2x1x128xf32, #tpu.memory_space<vmem>>, %arg12: memref<2x128x128xf32, #tpu.memory_space<vmem>>, %arg13: memref<2x1x128xf32, #tpu.memory_space<vmem>>, %arg14: memref<2x1x128xf32, #tpu.memory_space<vmem>>, %arg15: memref<2x1x128xf32, #tpu.memory_space<vmem>>, %arg16: memref<16x128xf32, #tpu.memory_space<vmem>>) attributes {dimension_semantics = [], scalar_prefetch = 0 : i64, scratch_operands = 0 : i64, tpu.core_type = #tpu.core_type<tc>} {
    %c0 = arith.constant 0 : index
    %c0_0 = arith.constant 0 : index
    %c0_1 = arith.constant 0 : index
    %0 = vector.load %arg1[%c0, %c0_0, %c0_1] : memref<2x8x8xf32, #tpu.memory_space<vmem>>, vector<2x8x8xf32>
    %c0_2 = arith.constant 0 : index
    %c0_3 = arith.constant 0 : index
    %1 = vector.load %arg0[%c0_2, %c0_3] : memref<16x128xf32, #tpu.memory_space<vmem>>, vector<16x128xf32>
    %c0_4 = arith.constant 0 : index
    %c0_5 = arith.constant 0 : index
    %2 = vector.load %arg2[%c0_4, %c0_5] : memref<1x128xf32, #tpu.memory_space<vmem>>, vector<1x128xf32>
    %c0_6 = arith.constant 0 : index
    %c0_7 = arith.constant 0 : index
    %3 = vector.load %arg3[%c0_6, %c0_7] : memref<1x128xf32, #tpu.memory_space<vmem>>, vector<1x128xf32>
    %cst = arith.constant dense<0.000000e+00> : vector<16xf32>
    %4 = vector.multi_reduction <add>, %1, %cst [1] : vector<16x128xf32> to vector<16xf32>
    %5 = vector.shape_cast %4 : vector<16xf32> to vector<16x1xf32>
    %cst_8 = arith.constant 3.125000e-02 : f32
    %6 = vector.broadcast %cst_8 : f32 to vector<16x1xf32>
    %7 = arith.mulf %5, %6 : vector<16x1xf32>
    %8 = arith.mulf %1, %1 : vector<16x128xf32>
    %cst_9 = arith.constant dense<0.000000e+00> : vector<16xf32>
    %9 = vector.multi_reduction <add>, %8, %cst_9 [1] : vector<16x128xf32> to vector<16xf32>
    %10 = vector.shape_cast %9 : vector<16xf32> to vector<16x1xf32>
    %cst_10 = arith.constant 3.125000e-02 : f32
    %11 = vector.broadcast %cst_10 : f32 to vector<16x1xf32>
    %12 = arith.mulf %10, %11 : vector<16x1xf32>
    %13 = arith.mulf %7, %7 : vector<16x1xf32>
    %14 = arith.subf %12, %13 : vector<16x1xf32>
    %15 = vector.broadcast %7 : vector<16x1xf32> to vector<16x128xf32>
    %16 = arith.subf %1, %15 : vector<16x128xf32>
    %cst_11 = arith.constant 9.99999996E-13 : f32
    %17 = vector.broadcast %cst_11 : f32 to vector<16x1xf32>
    %18 = arith.addf %14, %17 : vector<16x1xf32>
    %19 = math.rsqrt %18 : vector<16x1xf32>
    %20 = vector.broadcast %19 : vector<16x1xf32> to vector<16x128xf32>
    %21 = arith.mulf %16, %20 : vector<16x128xf32>
    %22 = vector.broadcast %2 : vector<1x128xf32> to vector<16x128xf32>
    %23 = arith.mulf %21, %22 : vector<16x128xf32>
    %24 = vector.broadcast %3 : vector<1x128xf32> to vector<16x128xf32>
    %25 = arith.addf %23, %24 : vector<16x128xf32>
    %c0_12 = arith.constant 0 : index
    %c0_13 = arith.constant 0 : index
    %c0_14 = arith.constant 0 : index
    %26 = vector.load %arg4[%c0_12, %c0_13, %c0_14] : memref<2x128x1536xf32, #tpu.memory_space<vmem>>, vector<1x128x1536xf32>
    %27 = vector.shape_cast %26 : vector<1x128x1536xf32> to vector<128x1536xf32>
    %cst_15 = arith.constant dense<0.000000e+00> : vector<16x1536xf32>
    %28 = tpu.matmul %25, %27, %cst_15 {dimension_numbers = #tpu.dot_dimension_numbers<[1], [0], [0], [1], [0, 0, 1, 1], [], []>} : vector<16x128xf32>, vector<128x1536xf32>, vector<16x1536xf32> -> vector<16x1536xf32>
    %c0_16 = arith.constant 0 : index
    %c0_17 = arith.constant 0 : index
    %c0_18 = arith.constant 0 : index
    %29 = vector.load %arg5[%c0_16, %c0_17, %c0_18] : memref<2x1x1536xf32, #tpu.memory_space<vmem>>, vector<1x1x1536xf32>
    %30 = vector.shape_cast %29 : vector<1x1x1536xf32> to vector<1x1536xf32>
    %31 = vector.broadcast %30 : vector<1x1536xf32> to vector<16x1536xf32>
    %32 = arith.addf %28, %31 : vector<16x1536xf32>
    %cst_19 = arith.constant 0.000000e+00 : f32
    %33 = vector.broadcast %cst_19 : f32 to vector<16x128xf32>
    %34 = vector.extract_strided_slice %32 {offsets = [0, 0], sizes = [16, 128], strides = [1, 1]} : vector<16x1536xf32> to vector<16x128xf32>
    %35 = vector.shape_cast %34 : vector<16x128xf32> to vector<2x8x128xf32>
    %36 = vector.extract_strided_slice %32 {offsets = [0, 128], sizes = [16, 128], strides = [1, 1]} : vector<16x1536xf32> to vector<16x128xf32>
    %37 = vector.shape_cast %36 : vector<16x128xf32> to vector<2x8x128xf32>
    %38 = vector.extract_strided_slice %32 {offsets = [0, 256], sizes = [16, 128], strides = [1, 1]} : vector<16x1536xf32> to vector<16x128xf32>
    %39 = vector.shape_cast %38 : vector<16x128xf32> to vector<2x8x128xf32>
    "tpu.trace_start"() <{level = 10 : i32, message = "bqd,bkd->bqk"}> : () -> ()
    %cst_20 = arith.constant dense<0.000000e+00> : vector<2x8x8xf32>
    %40 = tpu.matmul %35, %37, %cst_20 {dimension_numbers = #tpu.dot_dimension_numbers<[2], [2], [1], [1], [0, 0, 0, 1, 1, 1], [0], [0]>} : vector<2x8x128xf32>, vector<2x8x128xf32>, vector<2x8x8xf32> -> vector<2x8x8xf32>
    "tpu.trace_stop"() : () -> ()
    %41 = arith.addf %40, %0 : vector<2x8x8xf32>
    %cst_21 = arith.constant dense<0xFF800000> : vector<2x8xf32>
    %42 = vector.multi_reduction <maximumf>, %41, %cst_21 [2] : vector<2x8x8xf32> to vector<2x8xf32>
    %43 = vector.shape_cast %42 : vector<2x8xf32> to vector<2x8x1xf32>
    %44 = vector.broadcast %43 : vector<2x8x1xf32> to vector<2x8x8xf32>
    %45 = arith.subf %41, %44 : vector<2x8x8xf32>
    %46 = math.exp %45 : vector<2x8x8xf32>
    %cst_22 = arith.constant dense<0.000000e+00> : vector<2x8xf32>
    %47 = vector.multi_reduction <add>, %46, %cst_22 [2] : vector<2x8x8xf32> to vector<2x8xf32>
    %48 = vector.shape_cast %47 : vector<2x8xf32> to vector<2x8x1xf32>
    %49 = tpu.reciprocal %48 {approx = true} : vector<2x8x1xf32> -> vector<2x8x1xf32>
    %50 = vector.broadcast %49 : vector<2x8x1xf32> to vector<2x8x8xf32>
    %51 = arith.mulf %46, %50 : vector<2x8x8xf32>
    "tpu.trace_start"() <{level = 10 : i32, message = "bqk,bkd->bqd"}> : () -> ()
    %cst_23 = arith.constant dense<0.000000e+00> : vector<2x8x128xf32>
    %52 = tpu.matmul %51, %39, %cst_23 {dimension_numbers = #tpu.dot_dimension_numbers<[2], [1], [1], [2], [0, 0, 0, 1, 1, 2], [0], [0]>} : vector<2x8x8xf32>, vector<2x8x128xf32>, vector<2x8x128xf32> -> vector<2x8x128xf32>
    "tpu.trace_stop"() : () -> ()
    %53 = vector.shape_cast %52 : vector<2x8x128xf32> to vector<16x128xf32>
    %c0_24 = arith.constant 0 : index
    %c0_25 = arith.constant 0 : index
    %c0_26 = arith.constant 0 : index
    %54 = vector.load %arg6[%c0_24, %c0_25, %c0_26] : memref<8x128x128xf32, #tpu.memory_space<vmem>>, vector<1x128x128xf32>
    %55 = vector.shape_cast %54 : vector<1x128x128xf32> to vector<128x128xf32>
    %cst_27 = arith.constant dense<0.000000e+00> : vector<16x128xf32>
    %56 = tpu.matmul %53, %55, %cst_27 {dimension_numbers = #tpu.dot_dimension_numbers<[1], [0], [0], [1], [0, 0, 1, 1], [], []>} : vector<16x128xf32>, vector<128x128xf32>, vector<16x128xf32> -> vector<16x128xf32>
    %57 = arith.addf %33, %56 : vector<16x128xf32>
    %58 = vector.extract_strided_slice %32 {offsets = [0, 384], sizes = [16, 128], strides = [1, 1]} : vector<16x1536xf32> to vector<16x128xf32>
    %59 = vector.shape_cast %58 : vector<16x128xf32> to vector<2x8x128xf32>
    %60 = vector.extract_strided_slice %32 {offsets = [0, 512], sizes = [16, 128], strides = [1, 1]} : vector<16x1536xf32> to vector<16x128xf32>
    %61 = vector.shape_cast %60 : vector<16x128xf32> to vector<2x8x128xf32>
    %62 = vector.extract_strided_slice %32 {offsets = [0, 640], sizes = [16, 128], strides = [1, 1]} : vector<16x1536xf32> to vector<16x128xf32>
    %63 = vector.shape_cast %62 : vector<16x128xf32> to vector<2x8x128xf32>
    "tpu.trace_start"() <{level = 10 : i32, message = "bqd,bkd->bqk"}> : () -> ()
    %cst_28 = arith.constant dense<0.000000e+00> : vector<2x8x8xf32>
    %64 = tpu.matmul %59, %61, %cst_28 {dimension_numbers = #tpu.dot_dimension_numbers<[2], [2], [1], [1], [0, 0, 0, 1, 1, 1], [0], [0]>} : vector<2x8x128xf32>, vector<2x8x128xf32>, vector<2x8x8xf32> -> vector<2x8x8xf32>
    "tpu.trace_stop"() : () -> ()
    %65 = arith.addf %64, %0 : vector<2x8x8xf32>
    %cst_29 = arith.constant dense<0xFF800000> : vector<2x8xf32>
    %66 = vector.multi_reduction <maximumf>, %65, %cst_29 [2] : vector<2x8x8xf32> to vector<2x8xf32>
    %67 = vector.shape_cast %66 : vector<2x8xf32> to vector<2x8x1xf32>
    %68 = vector.broadcast %67 : vector<2x8x1xf32> to vector<2x8x8xf32>
    %69 = arith.subf %65, %68 : vector<2x8x8xf32>
    %70 = math.exp %69 : vector<2x8x8xf32>
    %cst_30 = arith.constant dense<0.000000e+00> : vector<2x8xf32>
    %71 = vector.multi_reduction <add>, %70, %cst_30 [2] : vector<2x8x8xf32> to vector<2x8xf32>
    %72 = vector.shape_cast %71 : vector<2x8xf32> to vector<2x8x1xf32>
    %73 = tpu.reciprocal %72 {approx = true} : vector<2x8x1xf32> -> vector<2x8x1xf32>
    %74 = vector.broadcast %73 : vector<2x8x1xf32> to vector<2x8x8xf32>
    %75 = arith.mulf %70, %74 : vector<2x8x8xf32>
    "tpu.trace_start"() <{level = 10 : i32, message = "bqk,bkd->bqd"}> : () -> ()
    %cst_31 = arith.constant dense<0.000000e+00> : vector<2x8x128xf32>
    %76 = tpu.matmul %75, %63, %cst_31 {dimension_numbers = #tpu.dot_dimension_numbers<[2], [1], [1], [2], [0, 0, 0, 1, 1, 2], [0], [0]>} : vector<2x8x8xf32>, vector<2x8x128xf32>, vector<2x8x128xf32> -> vector<2x8x128xf32>
    "tpu.trace_stop"() : () -> ()
    %77 = vector.shape_cast %76 : vector<2x8x128xf32> to vector<16x128xf32>
    %c1 = arith.constant 1 : index
    %c0_32 = arith.constant 0 : index
    %c0_33 = arith.constant 0 : index
    %78 = vector.load %arg6[%c1, %c0_32, %c0_33] : memref<8x128x128xf32, #tpu.memory_space<vmem>>, vector<1x128x128xf32>
    %79 = vector.shape_cast %78 : vector<1x128x128xf32> to vector<128x128xf32>
    %cst_34 = arith.constant dense<0.000000e+00> : vector<16x128xf32>
    %80 = tpu.matmul %77, %79, %cst_34 {dimension_numbers = #tpu.dot_dimension_numbers<[1], [0], [0], [1], [0, 0, 1, 1], [], []>} : vector<16x128xf32>, vector<128x128xf32>, vector<16x128xf32> -> vector<16x128xf32>
    %81 = arith.addf %57, %80 : vector<16x128xf32>
    %82 = vector.extract_strided_slice %32 {offsets = [0, 768], sizes = [16, 128], strides = [1, 1]} : vector<16x1536xf32> to vector<16x128xf32>
    %83 = vector.shape_cast %82 : vector<16x128xf32> to vector<2x8x128xf32>
    %84 = vector.extract_strided_slice %32 {offsets = [0, 896], sizes = [16, 128], strides = [1, 1]} : vector<16x1536xf32> to vector<16x128xf32>
    %85 = vector.shape_cast %84 : vector<16x128xf32> to vector<2x8x128xf32>
    %86 = vector.extract_strided_slice %32 {offsets = [0, 1024], sizes = [16, 128], strides = [1, 1]} : vector<16x1536xf32> to vector<16x128xf32>
    %87 = vector.shape_cast %86 : vector<16x128xf32> to vector<2x8x128xf32>
    "tpu.trace_start"() <{level = 10 : i32, message = "bqd,bkd->bqk"}> : () -> ()
    %cst_35 = arith.constant dense<0.000000e+00> : vector<2x8x8xf32>
    %88 = tpu.matmul %83, %85, %cst_35 {dimension_numbers = #tpu.dot_dimension_numbers<[2], [2], [1], [1], [0, 0, 0, 1, 1, 1], [0], [0]>} : vector<2x8x128xf32>, vector<2x8x128xf32>, vector<2x8x8xf32> -> vector<2x8x8xf32>
    "tpu.trace_stop"() : () -> ()
    %89 = arith.addf %88, %0 : vector<2x8x8xf32>
    %cst_36 = arith.constant dense<0xFF800000> : vector<2x8xf32>
    %90 = vector.multi_reduction <maximumf>, %89, %cst_36 [2] : vector<2x8x8xf32> to vector<2x8xf32>
    %91 = vector.shape_cast %90 : vector<2x8xf32> to vector<2x8x1xf32>
    %92 = vector.broadcast %91 : vector<2x8x1xf32> to vector<2x8x8xf32>
    %93 = arith.subf %89, %92 : vector<2x8x8xf32>
    %94 = math.exp %93 : vector<2x8x8xf32>
    %cst_37 = arith.constant dense<0.000000e+00> : vector<2x8xf32>
    %95 = vector.multi_reduction <add>, %94, %cst_37 [2] : vector<2x8x8xf32> to vector<2x8xf32>
    %96 = vector.shape_cast %95 : vector<2x8xf32> to vector<2x8x1xf32>
    %97 = tpu.reciprocal %96 {approx = true} : vector<2x8x1xf32> -> vector<2x8x1xf32>
    %98 = vector.broadcast %97 : vector<2x8x1xf32> to vector<2x8x8xf32>
    %99 = arith.mulf %94, %98 : vector<2x8x8xf32>
    "tpu.trace_start"() <{level = 10 : i32, message = "bqk,bkd->bqd"}> : () -> ()
    %cst_38 = arith.constant dense<0.000000e+00> : vector<2x8x128xf32>
    %100 = tpu.matmul %99, %87, %cst_38 {dimension_numbers = #tpu.dot_dimension_numbers<[2], [1], [1], [2], [0, 0, 0, 1, 1, 2], [0], [0]>} : vector<2x8x8xf32>, vector<2x8x128xf32>, vector<2x8x128xf32> -> vector<2x8x128xf32>
    "tpu.trace_stop"() : () -> ()
    %101 = vector.shape_cast %100 : vector<2x8x128xf32> to vector<16x128xf32>
    %c2 = arith.constant 2 : index
    %c0_39 = arith.constant 0 : index
    %c0_40 = arith.constant 0 : index
    %102 = vector.load %arg6[%c2, %c0_39, %c0_40] : memref<8x128x128xf32, #tpu.memory_space<vmem>>, vector<1x128x128xf32>
    %103 = vector.shape_cast %102 : vector<1x128x128xf32> to vector<128x128xf32>
    %cst_41 = arith.constant dense<0.000000e+00> : vector<16x128xf32>
    %104 = tpu.matmul %101, %103, %cst_41 {dimension_numbers = #tpu.dot_dimension_numbers<[1], [0], [0], [1], [0, 0, 1, 1], [], []>} : vector<16x128xf32>, vector<128x128xf32>, vector<16x128xf32> -> vector<16x128xf32>
    %105 = arith.addf %81, %104 : vector<16x128xf32>
    %106 = vector.extract_strided_slice %32 {offsets = [0, 1152], sizes = [16, 128], strides = [1, 1]} : vector<16x1536xf32> to vector<16x128xf32>
    %107 = vector.shape_cast %106 : vector<16x128xf32> to vector<2x8x128xf32>
    %108 = vector.extract_strided_slice %32 {offsets = [0, 1280], sizes = [16, 128], strides = [1, 1]} : vector<16x1536xf32> to vector<16x128xf32>
    %109 = vector.shape_cast %108 : vector<16x128xf32> to vector<2x8x128xf32>
    %110 = vector.extract_strided_slice %32 {offsets = [0, 1408], sizes = [16, 128], strides = [1, 1]} : vector<16x1536xf32> to vector<16x128xf32>
    %111 = vector.shape_cast %110 : vector<16x128xf32> to vector<2x8x128xf32>
    "tpu.trace_start"() <{level = 10 : i32, message = "bqd,bkd->bqk"}> : () -> ()
    %cst_42 = arith.constant dense<0.000000e+00> : vector<2x8x8xf32>
    %112 = tpu.matmul %107, %109, %cst_42 {dimension_numbers = #tpu.dot_dimension_numbers<[2], [2], [1], [1], [0, 0, 0, 1, 1, 1], [0], [0]>} : vector<2x8x128xf32>, vector<2x8x128xf32>, vector<2x8x8xf32> -> vector<2x8x8xf32>
    "tpu.trace_stop"() : () -> ()
    %113 = arith.addf %112, %0 : vector<2x8x8xf32>
    %cst_43 = arith.constant dense<0xFF800000> : vector<2x8xf32>
    %114 = vector.multi_reduction <maximumf>, %113, %cst_43 [2] : vector<2x8x8xf32> to vector<2x8xf32>
    %115 = vector.shape_cast %114 : vector<2x8xf32> to vector<2x8x1xf32>
    %116 = vector.broadcast %115 : vector<2x8x1xf32> to vector<2x8x8xf32>
    %117 = arith.subf %113, %116 : vector<2x8x8xf32>
    %118 = math.exp %117 : vector<2x8x8xf32>
    %cst_44 = arith.constant dense<0.000000e+00> : vector<2x8xf32>
    %119 = vector.multi_reduction <add>, %118, %cst_44 [2] : vector<2x8x8xf32> to vector<2x8xf32>
    %120 = vector.shape_cast %119 : vector<2x8xf32> to vector<2x8x1xf32>
    %121 = tpu.reciprocal %120 {approx = true} : vector<2x8x1xf32> -> vector<2x8x1xf32>
    %122 = vector.broadcast %121 : vector<2x8x1xf32> to vector<2x8x8xf32>
    %123 = arith.mulf %118, %122 : vector<2x8x8xf32>
    "tpu.trace_start"() <{level = 10 : i32, message = "bqk,bkd->bqd"}> : () -> ()
    %cst_45 = arith.constant dense<0.000000e+00> : vector<2x8x128xf32>
    %124 = tpu.matmul %123, %111, %cst_45 {dimension_numbers = #tpu.dot_dimension_numbers<[2], [1], [1], [2], [0, 0, 0, 1, 1, 2], [0], [0]>} : vector<2x8x8xf32>, vector<2x8x128xf32>, vector<2x8x128xf32> -> vector<2x8x128xf32>
    "tpu.trace_stop"() : () -> ()
    %125 = vector.shape_cast %124 : vector<2x8x128xf32> to vector<16x128xf32>
    %c3 = arith.constant 3 : index
    %c0_46 = arith.constant 0 : index
    %c0_47 = arith.constant 0 : index
    %126 = vector.load %arg6[%c3, %c0_46, %c0_47] : memref<8x128x128xf32, #tpu.memory_space<vmem>>, vector<1x128x128xf32>
    %127 = vector.shape_cast %126 : vector<1x128x128xf32> to vector<128x128xf32>
    %cst_48 = arith.constant dense<0.000000e+00> : vector<16x128xf32>
    %128 = tpu.matmul %125, %127, %cst_48 {dimension_numbers = #tpu.dot_dimension_numbers<[1], [0], [0], [1], [0, 0, 1, 1], [], []>} : vector<16x128xf32>, vector<128x128xf32>, vector<16x128xf32> -> vector<16x128xf32>
    %129 = arith.addf %105, %128 : vector<16x128xf32>
    %c0_49 = arith.constant 0 : index
    %c0_50 = arith.constant 0 : index
    %c0_51 = arith.constant 0 : index
    %130 = vector.load %arg7[%c0_49, %c0_50, %c0_51] : memref<2x1x128xf32, #tpu.memory_space<vmem>>, vector<1x1x128xf32>
    %131 = vector.shape_cast %130 : vector<1x1x128xf32> to vector<1x128xf32>
    %132 = vector.broadcast %131 : vector<1x128xf32> to vector<16x128xf32>
    %133 = arith.addf %129, %132 : vector<16x128xf32>
    %134 = arith.addf %133, %25 : vector<16x128xf32>
    %c0_52 = arith.constant 0 : index
    %c0_53 = arith.constant 0 : index
    %c0_54 = arith.constant 0 : index
    %135 = vector.load %arg8[%c0_52, %c0_53, %c0_54] : memref<2x1x128xf32, #tpu.memory_space<vmem>>, vector<1x1x128xf32>
    %136 = vector.shape_cast %135 : vector<1x1x128xf32> to vector<1x128xf32>
    %c0_55 = arith.constant 0 : index
    %c0_56 = arith.constant 0 : index
    %c0_57 = arith.constant 0 : index
    %137 = vector.load %arg9[%c0_55, %c0_56, %c0_57] : memref<2x1x128xf32, #tpu.memory_space<vmem>>, vector<1x1x128xf32>
    %138 = vector.shape_cast %137 : vector<1x1x128xf32> to vector<1x128xf32>
    %cst_58 = arith.constant dense<0.000000e+00> : vector<16xf32>
    %139 = vector.multi_reduction <add>, %134, %cst_58 [1] : vector<16x128xf32> to vector<16xf32>
    %140 = vector.shape_cast %139 : vector<16xf32> to vector<16x1xf32>
    %cst_59 = arith.constant 3.125000e-02 : f32
    %141 = vector.broadcast %cst_59 : f32 to vector<16x1xf32>
    %142 = arith.mulf %140, %141 : vector<16x1xf32>
    %143 = arith.mulf %134, %134 : vector<16x128xf32>
    %cst_60 = arith.constant dense<0.000000e+00> : vector<16xf32>
    %144 = vector.multi_reduction <add>, %143, %cst_60 [1] : vector<16x128xf32> to vector<16xf32>
    %145 = vector.shape_cast %144 : vector<16xf32> to vector<16x1xf32>
    %cst_61 = arith.constant 3.125000e-02 : f32
    %146 = vector.broadcast %cst_61 : f32 to vector<16x1xf32>
    %147 = arith.mulf %145, %146 : vector<16x1xf32>
    %148 = arith.mulf %142, %142 : vector<16x1xf32>
    %149 = arith.subf %147, %148 : vector<16x1xf32>
    %150 = vector.broadcast %142 : vector<16x1xf32> to vector<16x128xf32>
    %151 = arith.subf %134, %150 : vector<16x128xf32>
    %cst_62 = arith.constant 9.99999996E-13 : f32
    %152 = vector.broadcast %cst_62 : f32 to vector<16x1xf32>
    %153 = arith.addf %149, %152 : vector<16x1xf32>
    %154 = math.rsqrt %153 : vector<16x1xf32>
    %155 = vector.broadcast %154 : vector<16x1xf32> to vector<16x128xf32>
    %156 = arith.mulf %151, %155 : vector<16x128xf32>
    %157 = vector.broadcast %136 : vector<1x128xf32> to vector<16x128xf32>
    %158 = arith.mulf %156, %157 : vector<16x128xf32>
    %159 = vector.broadcast %138 : vector<1x128xf32> to vector<16x128xf32>
    %160 = arith.addf %158, %159 : vector<16x128xf32>
    %c0_63 = arith.constant 0 : index
    %c0_64 = arith.constant 0 : index
    %c0_65 = arith.constant 0 : index
    %161 = vector.load %arg10[%c0_63, %c0_64, %c0_65] : memref<2x128x128xf32, #tpu.memory_space<vmem>>, vector<1x128x128xf32>
    %162 = vector.shape_cast %161 : vector<1x128x128xf32> to vector<128x128xf32>
    %cst_66 = arith.constant dense<0.000000e+00> : vector<16x128xf32>
    %163 = tpu.matmul %160, %162, %cst_66 {dimension_numbers = #tpu.dot_dimension_numbers<[1], [0], [0], [1], [0, 0, 1, 1], [], []>} : vector<16x128xf32>, vector<128x128xf32>, vector<16x128xf32> -> vector<16x128xf32>
    %c0_67 = arith.constant 0 : index
    %c0_68 = arith.constant 0 : index
    %c0_69 = arith.constant 0 : index
    %164 = vector.load %arg11[%c0_67, %c0_68, %c0_69] : memref<2x1x128xf32, #tpu.memory_space<vmem>>, vector<1x1x128xf32>
    %165 = vector.shape_cast %164 : vector<1x1x128xf32> to vector<1x128xf32>
    %166 = vector.broadcast %165 : vector<1x128xf32> to vector<16x128xf32>
    %167 = arith.addf %163, %166 : vector<16x128xf32>
    %cst_70 = arith.constant 5.000000e-01 : f32
    %168 = vector.broadcast %cst_70 : f32 to vector<16x128xf32>
    %169 = arith.mulf %168, %167 : vector<16x128xf32>
    %cst_71 = arith.constant 4.471500e-02 : f32
    %170 = vector.broadcast %cst_71 : f32 to vector<16x128xf32>
    %171 = arith.mulf %170, %167 : vector<16x128xf32>
    %172 = arith.mulf %171, %167 : vector<16x128xf32>
    %173 = arith.mulf %172, %167 : vector<16x128xf32>
    %174 = arith.addf %167, %173 : vector<16x128xf32>
    %cst_72 = arith.constant 0.797884583 : f32
    %175 = vector.broadcast %cst_72 : f32 to vector<16x128xf32>
    %176 = arith.mulf %175, %174 : vector<16x128xf32>
    %177 = math.tanh %176 : vector<16x128xf32>
    %cst_73 = arith.constant 1.000000e+00 : f32
    %178 = vector.broadcast %cst_73 : f32 to vector<16x128xf32>
    %179 = arith.addf %178, %177 : vector<16x128xf32>
    %180 = arith.mulf %169, %179 : vector<16x128xf32>
    %c0_74 = arith.constant 0 : index
    %c0_75 = arith.constant 0 : index
    %c0_76 = arith.constant 0 : index
    %181 = vector.load %arg12[%c0_74, %c0_75, %c0_76] : memref<2x128x128xf32, #tpu.memory_space<vmem>>, vector<1x128x128xf32>
    %182 = vector.shape_cast %181 : vector<1x128x128xf32> to vector<128x128xf32>
    %cst_77 = arith.constant dense<0.000000e+00> : vector<16x128xf32>
    %183 = tpu.matmul %180, %182, %cst_77 {dimension_numbers = #tpu.dot_dimension_numbers<[1], [0], [0], [1], [0, 0, 1, 1], [], []>} : vector<16x128xf32>, vector<128x128xf32>, vector<16x128xf32> -> vector<16x128xf32>
    %c0_78 = arith.constant 0 : index
    %c0_79 = arith.constant 0 : index
    %c0_80 = arith.constant 0 : index
    %184 = vector.load %arg13[%c0_78, %c0_79, %c0_80] : memref<2x1x128xf32, #tpu.memory_space<vmem>>, vector<1x1x128xf32>
    %185 = vector.shape_cast %184 : vector<1x1x128xf32> to vector<1x128xf32>
    %186 = vector.broadcast %185 : vector<1x128xf32> to vector<16x128xf32>
    %187 = arith.addf %183, %186 : vector<16x128xf32>
    %188 = arith.addf %187, %160 : vector<16x128xf32>
    %c0_81 = arith.constant 0 : index
    %c0_82 = arith.constant 0 : index
    %c0_83 = arith.constant 0 : index
    %189 = vector.load %arg14[%c0_81, %c0_82, %c0_83] : memref<2x1x128xf32, #tpu.memory_space<vmem>>, vector<1x1x128xf32>
    %190 = vector.shape_cast %189 : vector<1x1x128xf32> to vector<1x128xf32>
    %c0_84 = arith.constant 0 : index
    %c0_85 = arith.constant 0 : index
    %c0_86 = arith.constant 0 : index
    %191 = vector.load %arg15[%c0_84, %c0_85, %c0_86] : memref<2x1x128xf32, #tpu.memory_space<vmem>>, vector<1x1x128xf32>
    %192 = vector.shape_cast %191 : vector<1x1x128xf32> to vector<1x128xf32>
    %cst_87 = arith.constant dense<0.000000e+00> : vector<16xf32>
    %193 = vector.multi_reduction <add>, %188, %cst_87 [1] : vector<16x128xf32> to vector<16xf32>
    %194 = vector.shape_cast %193 : vector<16xf32> to vector<16x1xf32>
    %cst_88 = arith.constant 3.125000e-02 : f32
    %195 = vector.broadcast %cst_88 : f32 to vector<16x1xf32>
    %196 = arith.mulf %194, %195 : vector<16x1xf32>
    %197 = arith.mulf %188, %188 : vector<16x128xf32>
    %cst_89 = arith.constant dense<0.000000e+00> : vector<16xf32>
    %198 = vector.multi_reduction <add>, %197, %cst_89 [1] : vector<16x128xf32> to vector<16xf32>
    %199 = vector.shape_cast %198 : vector<16xf32> to vector<16x1xf32>
    %cst_90 = arith.constant 3.125000e-02 : f32
    %200 = vector.broadcast %cst_90 : f32 to vector<16x1xf32>
    %201 = arith.mulf %199, %200 : vector<16x1xf32>
    %202 = arith.mulf %196, %196 : vector<16x1xf32>
    %203 = arith.subf %201, %202 : vector<16x1xf32>
    %204 = vector.broadcast %196 : vector<16x1xf32> to vector<16x128xf32>
    %205 = arith.subf %188, %204 : vector<16x128xf32>
    %cst_91 = arith.constant 9.99999996E-13 : f32
    %206 = vector.broadcast %cst_91 : f32 to vector<16x1xf32>
    %207 = arith.addf %203, %206 : vector<16x1xf32>
    %208 = math.rsqrt %207 : vector<16x1xf32>
    %209 = vector.broadcast %208 : vector<16x1xf32> to vector<16x128xf32>
    %210 = arith.mulf %205, %209 : vector<16x128xf32>
    %211 = vector.broadcast %190 : vector<1x128xf32> to vector<16x128xf32>
    %212 = arith.mulf %210, %211 : vector<16x128xf32>
    %213 = vector.broadcast %192 : vector<1x128xf32> to vector<16x128xf32>
    %214 = arith.addf %212, %213 : vector<16x128xf32>
    %c1_92 = arith.constant 1 : index
    %c0_93 = arith.constant 0 : index
    %c0_94 = arith.constant 0 : index
    %215 = vector.load %arg4[%c1_92, %c0_93, %c0_94] : memref<2x128x1536xf32, #tpu.memory_space<vmem>>, vector<1x128x1536xf32>
    %216 = vector.shape_cast %215 : vector<1x128x1536xf32> to vector<128x1536xf32>
    %cst_95 = arith.constant dense<0.000000e+00> : vector<16x1536xf32>
    %217 = tpu.matmul %214, %216, %cst_95 {dimension_numbers = #tpu.dot_dimension_numbers<[1], [0], [0], [1], [0, 0, 1, 1], [], []>} : vector<16x128xf32>, vector<128x1536xf32>, vector<16x1536xf32> -> vector<16x1536xf32>
    %c1_96 = arith.constant 1 : index
    %c0_97 = arith.constant 0 : index
    %c0_98 = arith.constant 0 : index
    %218 = vector.load %arg5[%c1_96, %c0_97, %c0_98] : memref<2x1x1536xf32, #tpu.memory_space<vmem>>, vector<1x1x1536xf32>
    %219 = vector.shape_cast %218 : vector<1x1x1536xf32> to vector<1x1536xf32>
    %220 = vector.broadcast %219 : vector<1x1536xf32> to vector<16x1536xf32>
    %221 = arith.addf %217, %220 : vector<16x1536xf32>
    %cst_99 = arith.constant 0.000000e+00 : f32
    %222 = vector.broadcast %cst_99 : f32 to vector<16x128xf32>
    %223 = vector.extract_strided_slice %221 {offsets = [0, 0], sizes = [16, 128], strides = [1, 1]} : vector<16x1536xf32> to vector<16x128xf32>
    %224 = vector.shape_cast %223 : vector<16x128xf32> to vector<2x8x128xf32>
    %225 = vector.extract_strided_slice %221 {offsets = [0, 128], sizes = [16, 128], strides = [1, 1]} : vector<16x1536xf32> to vector<16x128xf32>
    %226 = vector.shape_cast %225 : vector<16x128xf32> to vector<2x8x128xf32>
    %227 = vector.extract_strided_slice %221 {offsets = [0, 256], sizes = [16, 128], strides = [1, 1]} : vector<16x1536xf32> to vector<16x128xf32>
    %228 = vector.shape_cast %227 : vector<16x128xf32> to vector<2x8x128xf32>
    "tpu.trace_start"() <{level = 10 : i32, message = "bqd,bkd->bqk"}> : () -> ()
    %cst_100 = arith.constant dense<0.000000e+00> : vector<2x8x8xf32>
    %229 = tpu.matmul %224, %226, %cst_100 {dimension_numbers = #tpu.dot_dimension_numbers<[2], [2], [1], [1], [0, 0, 0, 1, 1, 1], [0], [0]>} : vector<2x8x128xf32>, vector<2x8x128xf32>, vector<2x8x8xf32> -> vector<2x8x8xf32>
    "tpu.trace_stop"() : () -> ()
    %230 = arith.addf %229, %0 : vector<2x8x8xf32>
    %cst_101 = arith.constant dense<0xFF800000> : vector<2x8xf32>
    %231 = vector.multi_reduction <maximumf>, %230, %cst_101 [2] : vector<2x8x8xf32> to vector<2x8xf32>
    %232 = vector.shape_cast %231 : vector<2x8xf32> to vector<2x8x1xf32>
    %233 = vector.broadcast %232 : vector<2x8x1xf32> to vector<2x8x8xf32>
    %234 = arith.subf %230, %233 : vector<2x8x8xf32>
    %235 = math.exp %234 : vector<2x8x8xf32>
    %cst_102 = arith.constant dense<0.000000e+00> : vector<2x8xf32>
    %236 = vector.multi_reduction <add>, %235, %cst_102 [2] : vector<2x8x8xf32> to vector<2x8xf32>
    %237 = vector.shape_cast %236 : vector<2x8xf32> to vector<2x8x1xf32>
    %238 = tpu.reciprocal %237 {approx = true} : vector<2x8x1xf32> -> vector<2x8x1xf32>
    %239 = vector.broadcast %238 : vector<2x8x1xf32> to vector<2x8x8xf32>
    %240 = arith.mulf %235, %239 : vector<2x8x8xf32>
    "tpu.trace_start"() <{level = 10 : i32, message = "bqk,bkd->bqd"}> : () -> ()
    %cst_103 = arith.constant dense<0.000000e+00> : vector<2x8x128xf32>
    %241 = tpu.matmul %240, %228, %cst_103 {dimension_numbers = #tpu.dot_dimension_numbers<[2], [1], [1], [2], [0, 0, 0, 1, 1, 2], [0], [0]>} : vector<2x8x8xf32>, vector<2x8x128xf32>, vector<2x8x128xf32> -> vector<2x8x128xf32>
    "tpu.trace_stop"() : () -> ()
    %242 = vector.shape_cast %241 : vector<2x8x128xf32> to vector<16x128xf32>
    %c4 = arith.constant 4 : index
    %c0_104 = arith.constant 0 : index
    %c0_105 = arith.constant 0 : index
    %243 = vector.load %arg6[%c4, %c0_104, %c0_105] : memref<8x128x128xf32, #tpu.memory_space<vmem>>, vector<1x128x128xf32>
    %244 = vector.shape_cast %243 : vector<1x128x128xf32> to vector<128x128xf32>
    %cst_106 = arith.constant dense<0.000000e+00> : vector<16x128xf32>
    %245 = tpu.matmul %242, %244, %cst_106 {dimension_numbers = #tpu.dot_dimension_numbers<[1], [0], [0], [1], [0, 0, 1, 1], [], []>} : vector<16x128xf32>, vector<128x128xf32>, vector<16x128xf32> -> vector<16x128xf32>
    %246 = arith.addf %222, %245 : vector<16x128xf32>
    %247 = vector.extract_strided_slice %221 {offsets = [0, 384], sizes = [16, 128], strides = [1, 1]} : vector<16x1536xf32> to vector<16x128xf32>
    %248 = vector.shape_cast %247 : vector<16x128xf32> to vector<2x8x128xf32>
    %249 = vector.extract_strided_slice %221 {offsets = [0, 512], sizes = [16, 128], strides = [1, 1]} : vector<16x1536xf32> to vector<16x128xf32>
    %250 = vector.shape_cast %249 : vector<16x128xf32> to vector<2x8x128xf32>
    %251 = vector.extract_strided_slice %221 {offsets = [0, 640], sizes = [16, 128], strides = [1, 1]} : vector<16x1536xf32> to vector<16x128xf32>
    %252 = vector.shape_cast %251 : vector<16x128xf32> to vector<2x8x128xf32>
    "tpu.trace_start"() <{level = 10 : i32, message = "bqd,bkd->bqk"}> : () -> ()
    %cst_107 = arith.constant dense<0.000000e+00> : vector<2x8x8xf32>
    %253 = tpu.matmul %248, %250, %cst_107 {dimension_numbers = #tpu.dot_dimension_numbers<[2], [2], [1], [1], [0, 0, 0, 1, 1, 1], [0], [0]>} : vector<2x8x128xf32>, vector<2x8x128xf32>, vector<2x8x8xf32> -> vector<2x8x8xf32>
    "tpu.trace_stop"() : () -> ()
    %254 = arith.addf %253, %0 : vector<2x8x8xf32>
    %cst_108 = arith.constant dense<0xFF800000> : vector<2x8xf32>
    %255 = vector.multi_reduction <maximumf>, %254, %cst_108 [2] : vector<2x8x8xf32> to vector<2x8xf32>
    %256 = vector.shape_cast %255 : vector<2x8xf32> to vector<2x8x1xf32>
    %257 = vector.broadcast %256 : vector<2x8x1xf32> to vector<2x8x8xf32>
    %258 = arith.subf %254, %257 : vector<2x8x8xf32>
    %259 = math.exp %258 : vector<2x8x8xf32>
    %cst_109 = arith.constant dense<0.000000e+00> : vector<2x8xf32>
    %260 = vector.multi_reduction <add>, %259, %cst_109 [2] : vector<2x8x8xf32> to vector<2x8xf32>
    %261 = vector.shape_cast %260 : vector<2x8xf32> to vector<2x8x1xf32>
    %262 = tpu.reciprocal %261 {approx = true} : vector<2x8x1xf32> -> vector<2x8x1xf32>
    %263 = vector.broadcast %262 : vector<2x8x1xf32> to vector<2x8x8xf32>
    %264 = arith.mulf %259, %263 : vector<2x8x8xf32>
    "tpu.trace_start"() <{level = 10 : i32, message = "bqk,bkd->bqd"}> : () -> ()
    %cst_110 = arith.constant dense<0.000000e+00> : vector<2x8x128xf32>
    %265 = tpu.matmul %264, %252, %cst_110 {dimension_numbers = #tpu.dot_dimension_numbers<[2], [1], [1], [2], [0, 0, 0, 1, 1, 2], [0], [0]>} : vector<2x8x8xf32>, vector<2x8x128xf32>, vector<2x8x128xf32> -> vector<2x8x128xf32>
    "tpu.trace_stop"() : () -> ()
    %266 = vector.shape_cast %265 : vector<2x8x128xf32> to vector<16x128xf32>
    %c5 = arith.constant 5 : index
    %c0_111 = arith.constant 0 : index
    %c0_112 = arith.constant 0 : index
    %267 = vector.load %arg6[%c5, %c0_111, %c0_112] : memref<8x128x128xf32, #tpu.memory_space<vmem>>, vector<1x128x128xf32>
    %268 = vector.shape_cast %267 : vector<1x128x128xf32> to vector<128x128xf32>
    %cst_113 = arith.constant dense<0.000000e+00> : vector<16x128xf32>
    %269 = tpu.matmul %266, %268, %cst_113 {dimension_numbers = #tpu.dot_dimension_numbers<[1], [0], [0], [1], [0, 0, 1, 1], [], []>} : vector<16x128xf32>, vector<128x128xf32>, vector<16x128xf32> -> vector<16x128xf32>
    %270 = arith.addf %246, %269 : vector<16x128xf32>
    %271 = vector.extract_strided_slice %221 {offsets = [0, 768], sizes = [16, 128], strides = [1, 1]} : vector<16x1536xf32> to vector<16x128xf32>
    %272 = vector.shape_cast %271 : vector<16x128xf32> to vector<2x8x128xf32>
    %273 = vector.extract_strided_slice %221 {offsets = [0, 896], sizes = [16, 128], strides = [1, 1]} : vector<16x1536xf32> to vector<16x128xf32>
    %274 = vector.shape_cast %273 : vector<16x128xf32> to vector<2x8x128xf32>
    %275 = vector.extract_strided_slice %221 {offsets = [0, 1024], sizes = [16, 128], strides = [1, 1]} : vector<16x1536xf32> to vector<16x128xf32>
    %276 = vector.shape_cast %275 : vector<16x128xf32> to vector<2x8x128xf32>
    "tpu.trace_start"() <{level = 10 : i32, message = "bqd,bkd->bqk"}> : () -> ()
    %cst_114 = arith.constant dense<0.000000e+00> : vector<2x8x8xf32>
    %277 = tpu.matmul %272, %274, %cst_114 {dimension_numbers = #tpu.dot_dimension_numbers<[2], [2], [1], [1], [0, 0, 0, 1, 1, 1], [0], [0]>} : vector<2x8x128xf32>, vector<2x8x128xf32>, vector<2x8x8xf32> -> vector<2x8x8xf32>
    "tpu.trace_stop"() : () -> ()
    %278 = arith.addf %277, %0 : vector<2x8x8xf32>
    %cst_115 = arith.constant dense<0xFF800000> : vector<2x8xf32>
    %279 = vector.multi_reduction <maximumf>, %278, %cst_115 [2] : vector<2x8x8xf32> to vector<2x8xf32>
    %280 = vector.shape_cast %279 : vector<2x8xf32> to vector<2x8x1xf32>
    %281 = vector.broadcast %280 : vector<2x8x1xf32> to vector<2x8x8xf32>
    %282 = arith.subf %278, %281 : vector<2x8x8xf32>
    %283 = math.exp %282 : vector<2x8x8xf32>
    %cst_116 = arith.constant dense<0.000000e+00> : vector<2x8xf32>
    %284 = vector.multi_reduction <add>, %283, %cst_116 [2] : vector<2x8x8xf32> to vector<2x8xf32>
    %285 = vector.shape_cast %284 : vector<2x8xf32> to vector<2x8x1xf32>
    %286 = tpu.reciprocal %285 {approx = true} : vector<2x8x1xf32> -> vector<2x8x1xf32>
    %287 = vector.broadcast %286 : vector<2x8x1xf32> to vector<2x8x8xf32>
    %288 = arith.mulf %283, %287 : vector<2x8x8xf32>
    "tpu.trace_start"() <{level = 10 : i32, message = "bqk,bkd->bqd"}> : () -> ()
    %cst_117 = arith.constant dense<0.000000e+00> : vector<2x8x128xf32>
    %289 = tpu.matmul %288, %276, %cst_117 {dimension_numbers = #tpu.dot_dimension_numbers<[2], [1], [1], [2], [0, 0, 0, 1, 1, 2], [0], [0]>} : vector<2x8x8xf32>, vector<2x8x128xf32>, vector<2x8x128xf32> -> vector<2x8x128xf32>
    "tpu.trace_stop"() : () -> ()
    %290 = vector.shape_cast %289 : vector<2x8x128xf32> to vector<16x128xf32>
    %c6 = arith.constant 6 : index
    %c0_118 = arith.constant 0 : index
    %c0_119 = arith.constant 0 : index
    %291 = vector.load %arg6[%c6, %c0_118, %c0_119] : memref<8x128x128xf32, #tpu.memory_space<vmem>>, vector<1x128x128xf32>
    %292 = vector.shape_cast %291 : vector<1x128x128xf32> to vector<128x128xf32>
    %cst_120 = arith.constant dense<0.000000e+00> : vector<16x128xf32>
    %293 = tpu.matmul %290, %292, %cst_120 {dimension_numbers = #tpu.dot_dimension_numbers<[1], [0], [0], [1], [0, 0, 1, 1], [], []>} : vector<16x128xf32>, vector<128x128xf32>, vector<16x128xf32> -> vector<16x128xf32>
    %294 = arith.addf %270, %293 : vector<16x128xf32>
    %295 = vector.extract_strided_slice %221 {offsets = [0, 1152], sizes = [16, 128], strides = [1, 1]} : vector<16x1536xf32> to vector<16x128xf32>
    %296 = vector.shape_cast %295 : vector<16x128xf32> to vector<2x8x128xf32>
    %297 = vector.extract_strided_slice %221 {offsets = [0, 1280], sizes = [16, 128], strides = [1, 1]} : vector<16x1536xf32> to vector<16x128xf32>
    %298 = vector.shape_cast %297 : vector<16x128xf32> to vector<2x8x128xf32>
    %299 = vector.extract_strided_slice %221 {offsets = [0, 1408], sizes = [16, 128], strides = [1, 1]} : vector<16x1536xf32> to vector<16x128xf32>
    %300 = vector.shape_cast %299 : vector<16x128xf32> to vector<2x8x128xf32>
    "tpu.trace_start"() <{level = 10 : i32, message = "bqd,bkd->bqk"}> : () -> ()
    %cst_121 = arith.constant dense<0.000000e+00> : vector<2x8x8xf32>
    %301 = tpu.matmul %296, %298, %cst_121 {dimension_numbers = #tpu.dot_dimension_numbers<[2], [2], [1], [1], [0, 0, 0, 1, 1, 1], [0], [0]>} : vector<2x8x128xf32>, vector<2x8x128xf32>, vector<2x8x8xf32> -> vector<2x8x8xf32>
    "tpu.trace_stop"() : () -> ()
    %302 = arith.addf %301, %0 : vector<2x8x8xf32>
    %cst_122 = arith.constant dense<0xFF800000> : vector<2x8xf32>
    %303 = vector.multi_reduction <maximumf>, %302, %cst_122 [2] : vector<2x8x8xf32> to vector<2x8xf32>
    %304 = vector.shape_cast %303 : vector<2x8xf32> to vector<2x8x1xf32>
    %305 = vector.broadcast %304 : vector<2x8x1xf32> to vector<2x8x8xf32>
    %306 = arith.subf %302, %305 : vector<2x8x8xf32>
    %307 = math.exp %306 : vector<2x8x8xf32>
    %cst_123 = arith.constant dense<0.000000e+00> : vector<2x8xf32>
    %308 = vector.multi_reduction <add>, %307, %cst_123 [2] : vector<2x8x8xf32> to vector<2x8xf32>
    %309 = vector.shape_cast %308 : vector<2x8xf32> to vector<2x8x1xf32>
    %310 = tpu.reciprocal %309 {approx = true} : vector<2x8x1xf32> -> vector<2x8x1xf32>
    %311 = vector.broadcast %310 : vector<2x8x1xf32> to vector<2x8x8xf32>
    %312 = arith.mulf %307, %311 : vector<2x8x8xf32>
    "tpu.trace_start"() <{level = 10 : i32, message = "bqk,bkd->bqd"}> : () -> ()
    %cst_124 = arith.constant dense<0.000000e+00> : vector<2x8x128xf32>
    %313 = tpu.matmul %312, %300, %cst_124 {dimension_numbers = #tpu.dot_dimension_numbers<[2], [1], [1], [2], [0, 0, 0, 1, 1, 2], [0], [0]>} : vector<2x8x8xf32>, vector<2x8x128xf32>, vector<2x8x128xf32> -> vector<2x8x128xf32>
    "tpu.trace_stop"() : () -> ()
    %314 = vector.shape_cast %313 : vector<2x8x128xf32> to vector<16x128xf32>
    %c7 = arith.constant 7 : index
    %c0_125 = arith.constant 0 : index
    %c0_126 = arith.constant 0 : index
    %315 = vector.load %arg6[%c7, %c0_125, %c0_126] : memref<8x128x128xf32, #tpu.memory_space<vmem>>, vector<1x128x128xf32>
    %316 = vector.shape_cast %315 : vector<1x128x128xf32> to vector<128x128xf32>
    %cst_127 = arith.constant dense<0.000000e+00> : vector<16x128xf32>
    %317 = tpu.matmul %314, %316, %cst_127 {dimension_numbers = #tpu.dot_dimension_numbers<[1], [0], [0], [1], [0, 0, 1, 1], [], []>} : vector<16x128xf32>, vector<128x128xf32>, vector<16x128xf32> -> vector<16x128xf32>
    %318 = arith.addf %294, %317 : vector<16x128xf32>
    %c1_128 = arith.constant 1 : index
    %c0_129 = arith.constant 0 : index
    %c0_130 = arith.constant 0 : index
    %319 = vector.load %arg7[%c1_128, %c0_129, %c0_130] : memref<2x1x128xf32, #tpu.memory_space<vmem>>, vector<1x1x128xf32>
    %320 = vector.shape_cast %319 : vector<1x1x128xf32> to vector<1x128xf32>
    %321 = vector.broadcast %320 : vector<1x128xf32> to vector<16x128xf32>
    %322 = arith.addf %318, %321 : vector<16x128xf32>
    %323 = arith.addf %322, %214 : vector<16x128xf32>
    %c1_131 = arith.constant 1 : index
    %c0_132 = arith.constant 0 : index
    %c0_133 = arith.constant 0 : index
    %324 = vector.load %arg8[%c1_131, %c0_132, %c0_133] : memref<2x1x128xf32, #tpu.memory_space<vmem>>, vector<1x1x128xf32>
    %325 = vector.shape_cast %324 : vector<1x1x128xf32> to vector<1x128xf32>
    %c1_134 = arith.constant 1 : index
    %c0_135 = arith.constant 0 : index
    %c0_136 = arith.constant 0 : index
    %326 = vector.load %arg9[%c1_134, %c0_135, %c0_136] : memref<2x1x128xf32, #tpu.memory_space<vmem>>, vector<1x1x128xf32>
    %327 = vector.shape_cast %326 : vector<1x1x128xf32> to vector<1x128xf32>
    %cst_137 = arith.constant dense<0.000000e+00> : vector<16xf32>
    %328 = vector.multi_reduction <add>, %323, %cst_137 [1] : vector<16x128xf32> to vector<16xf32>
    %329 = vector.shape_cast %328 : vector<16xf32> to vector<16x1xf32>
    %cst_138 = arith.constant 3.125000e-02 : f32
    %330 = vector.broadcast %cst_138 : f32 to vector<16x1xf32>
    %331 = arith.mulf %329, %330 : vector<16x1xf32>
    %332 = arith.mulf %323, %323 : vector<16x128xf32>
    %cst_139 = arith.constant dense<0.000000e+00> : vector<16xf32>
    %333 = vector.multi_reduction <add>, %332, %cst_139 [1] : vector<16x128xf32> to vector<16xf32>
    %334 = vector.shape_cast %333 : vector<16xf32> to vector<16x1xf32>
    %cst_140 = arith.constant 3.125000e-02 : f32
    %335 = vector.broadcast %cst_140 : f32 to vector<16x1xf32>
    %336 = arith.mulf %334, %335 : vector<16x1xf32>
    %337 = arith.mulf %331, %331 : vector<16x1xf32>
    %338 = arith.subf %336, %337 : vector<16x1xf32>
    %339 = vector.broadcast %331 : vector<16x1xf32> to vector<16x128xf32>
    %340 = arith.subf %323, %339 : vector<16x128xf32>
    %cst_141 = arith.constant 9.99999996E-13 : f32
    %341 = vector.broadcast %cst_141 : f32 to vector<16x1xf32>
    %342 = arith.addf %338, %341 : vector<16x1xf32>
    %343 = math.rsqrt %342 : vector<16x1xf32>
    %344 = vector.broadcast %343 : vector<16x1xf32> to vector<16x128xf32>
    %345 = arith.mulf %340, %344 : vector<16x128xf32>
    %346 = vector.broadcast %325 : vector<1x128xf32> to vector<16x128xf32>
    %347 = arith.mulf %345, %346 : vector<16x128xf32>
    %348 = vector.broadcast %327 : vector<1x128xf32> to vector<16x128xf32>
    %349 = arith.addf %347, %348 : vector<16x128xf32>
    %c1_142 = arith.constant 1 : index
    %c0_143 = arith.constant 0 : index
    %c0_144 = arith.constant 0 : index
    %350 = vector.load %arg10[%c1_142, %c0_143, %c0_144] : memref<2x128x128xf32, #tpu.memory_space<vmem>>, vector<1x128x128xf32>
    %351 = vector.shape_cast %350 : vector<1x128x128xf32> to vector<128x128xf32>
    %cst_145 = arith.constant dense<0.000000e+00> : vector<16x128xf32>
    %352 = tpu.matmul %349, %351, %cst_145 {dimension_numbers = #tpu.dot_dimension_numbers<[1], [0], [0], [1], [0, 0, 1, 1], [], []>} : vector<16x128xf32>, vector<128x128xf32>, vector<16x128xf32> -> vector<16x128xf32>
    %c1_146 = arith.constant 1 : index
    %c0_147 = arith.constant 0 : index
    %c0_148 = arith.constant 0 : index
    %353 = vector.load %arg11[%c1_146, %c0_147, %c0_148] : memref<2x1x128xf32, #tpu.memory_space<vmem>>, vector<1x1x128xf32>
    %354 = vector.shape_cast %353 : vector<1x1x128xf32> to vector<1x128xf32>
    %355 = vector.broadcast %354 : vector<1x128xf32> to vector<16x128xf32>
    %356 = arith.addf %352, %355 : vector<16x128xf32>
    %cst_149 = arith.constant 5.000000e-01 : f32
    %357 = vector.broadcast %cst_149 : f32 to vector<16x128xf32>
    %358 = arith.mulf %357, %356 : vector<16x128xf32>
    %cst_150 = arith.constant 4.471500e-02 : f32
    %359 = vector.broadcast %cst_150 : f32 to vector<16x128xf32>
    %360 = arith.mulf %359, %356 : vector<16x128xf32>
    %361 = arith.mulf %360, %356 : vector<16x128xf32>
    %362 = arith.mulf %361, %356 : vector<16x128xf32>
    %363 = arith.addf %356, %362 : vector<16x128xf32>
    %cst_151 = arith.constant 0.797884583 : f32
    %364 = vector.broadcast %cst_151 : f32 to vector<16x128xf32>
    %365 = arith.mulf %364, %363 : vector<16x128xf32>
    %366 = math.tanh %365 : vector<16x128xf32>
    %cst_152 = arith.constant 1.000000e+00 : f32
    %367 = vector.broadcast %cst_152 : f32 to vector<16x128xf32>
    %368 = arith.addf %367, %366 : vector<16x128xf32>
    %369 = arith.mulf %358, %368 : vector<16x128xf32>
    %c1_153 = arith.constant 1 : index
    %c0_154 = arith.constant 0 : index
    %c0_155 = arith.constant 0 : index
    %370 = vector.load %arg12[%c1_153, %c0_154, %c0_155] : memref<2x128x128xf32, #tpu.memory_space<vmem>>, vector<1x128x128xf32>
    %371 = vector.shape_cast %370 : vector<1x128x128xf32> to vector<128x128xf32>
    %cst_156 = arith.constant dense<0.000000e+00> : vector<16x128xf32>
    %372 = tpu.matmul %369, %371, %cst_156 {dimension_numbers = #tpu.dot_dimension_numbers<[1], [0], [0], [1], [0, 0, 1, 1], [], []>} : vector<16x128xf32>, vector<128x128xf32>, vector<16x128xf32> -> vector<16x128xf32>
    %c1_157 = arith.constant 1 : index
    %c0_158 = arith.constant 0 : index
    %c0_159 = arith.constant 0 : index
    %373 = vector.load %arg13[%c1_157, %c0_158, %c0_159] : memref<2x1x128xf32, #tpu.memory_space<vmem>>, vector<1x1x128xf32>
    %374 = vector.shape_cast %373 : vector<1x1x128xf32> to vector<1x128xf32>
    %375 = vector.broadcast %374 : vector<1x128xf32> to vector<16x128xf32>
    %376 = arith.addf %372, %375 : vector<16x128xf32>
    %377 = arith.addf %376, %349 : vector<16x128xf32>
    %c1_160 = arith.constant 1 : index
    %c0_161 = arith.constant 0 : index
    %c0_162 = arith.constant 0 : index
    %378 = vector.load %arg14[%c1_160, %c0_161, %c0_162] : memref<2x1x128xf32, #tpu.memory_space<vmem>>, vector<1x1x128xf32>
    %379 = vector.shape_cast %378 : vector<1x1x128xf32> to vector<1x128xf32>
    %c1_163 = arith.constant 1 : index
    %c0_164 = arith.constant 0 : index
    %c0_165 = arith.constant 0 : index
    %380 = vector.load %arg15[%c1_163, %c0_164, %c0_165] : memref<2x1x128xf32, #tpu.memory_space<vmem>>, vector<1x1x128xf32>
    %381 = vector.shape_cast %380 : vector<1x1x128xf32> to vector<1x128xf32>
    %cst_166 = arith.constant dense<0.000000e+00> : vector<16xf32>
    %382 = vector.multi_reduction <add>, %377, %cst_166 [1] : vector<16x128xf32> to vector<16xf32>
    %383 = vector.shape_cast %382 : vector<16xf32> to vector<16x1xf32>
    %cst_167 = arith.constant 3.125000e-02 : f32
    %384 = vector.broadcast %cst_167 : f32 to vector<16x1xf32>
    %385 = arith.mulf %383, %384 : vector<16x1xf32>
    %386 = arith.mulf %377, %377 : vector<16x128xf32>
    %cst_168 = arith.constant dense<0.000000e+00> : vector<16xf32>
    %387 = vector.multi_reduction <add>, %386, %cst_168 [1] : vector<16x128xf32> to vector<16xf32>
    %388 = vector.shape_cast %387 : vector<16xf32> to vector<16x1xf32>
    %cst_169 = arith.constant 3.125000e-02 : f32
    %389 = vector.broadcast %cst_169 : f32 to vector<16x1xf32>
    %390 = arith.mulf %388, %389 : vector<16x1xf32>
    %391 = arith.mulf %385, %385 : vector<16x1xf32>
    %392 = arith.subf %390, %391 : vector<16x1xf32>
    %393 = vector.broadcast %385 : vector<16x1xf32> to vector<16x128xf32>
    %394 = arith.subf %377, %393 : vector<16x128xf32>
    %cst_170 = arith.constant 9.99999996E-13 : f32
    %395 = vector.broadcast %cst_170 : f32 to vector<16x1xf32>
    %396 = arith.addf %392, %395 : vector<16x1xf32>
    %397 = math.rsqrt %396 : vector<16x1xf32>
    %398 = vector.broadcast %397 : vector<16x1xf32> to vector<16x128xf32>
    %399 = arith.mulf %394, %398 : vector<16x128xf32>
    %400 = vector.broadcast %379 : vector<1x128xf32> to vector<16x128xf32>
    %401 = arith.mulf %399, %400 : vector<16x128xf32>
    %402 = vector.broadcast %381 : vector<1x128xf32> to vector<16x128xf32>
    %403 = arith.addf %401, %402 : vector<16x128xf32>
    %c0_171 = arith.constant 0 : index
    %c0_172 = arith.constant 0 : index
    %404 = vector.load %arg16[%c0_171, %c0_172] : memref<16x128xf32, #tpu.memory_space<vmem>>, vector<16x128xf32>
    tpu.vector_store %arg16[%c0_171, %c0_172], %403 {strides = array<i32>} : memref<16x128xf32, #tpu.memory_space<vmem>>, vector<16x128xf32>,
    return
  }
}

</mosaic_0001>

<bundles_post_ra>
// kernel: bert_forward.1
= control target key start
LH: loop header
LB: loop body
LE: loop exit
PB: predicated region body
PF: predicated region fallthrough
CT: control target
= control target key end

     0   :  { %s8552_s0 = inlined_call_operand.vmem [shape: f32[16,128], index: 0, kind: input, shape index: {}]   ;;  %s8553_s1 = inlined_call_operand.vmem [shape: f32[2,8,8], index: 1, kind: input, shape index: {}]   ;;  %s8554_s2 = inlined_call_operand.hbm [shape: f32[1,128], index: 2, kind: input, shape index: {}]   ;;  %s8555_s3 = inlined_call_operand.hbm [shape: f32[1,128], index: 3, kind: input, shape index: {}]   ;;  %s8556_s4 = inlined_call_operand.hbm [shape: f32[2,128,1536], index: 4, kind: input, shape index: {}]   ;;  %s8557_s5 = inlined_call_operand.hbm [shape: f32[2,1,1536], index: 5, kind: input, shape index: {}]   ;;  %s8558_s6 = inlined_call_operand.hbm [shape: f32[8,128,128], index: 6, kind: input, shape index: {}]   ;;  %s8559_s7 = inlined_call_operand.hbm [shape: f32[2,1,128], index: 7, kind: input, shape index: {}]   ;;  %s8560_s8 = inlined_call_operand.hbm [shape: f32[2,1,128], index: 8, kind: input, shape index: {}]   ;;  %s8561_s9 = inlined_call_operand.hbm [shape: f32[2,1,128], index: 9, kind: input, shape index: {}]   ;;  %s8562_s10 = inlined_call_operand.hbm [shape: f32[2,128,128], index: 10, kind: input, shape index: {}]   ;;  %s8563_s11 = inlined_call_operand.hbm [shape: f32[2,1,128], index: 11, kind: input, shape index: {}]   ;;  %s8564_s12 = inlined_call_operand.hbm [shape: f32[2,128,128], index: 12, kind: input, shape index: {}]   ;;  %s8565_s13 = inlined_call_operand.hbm [shape: f32[2,1,128], index: 13, kind: input, shape index: {}]   ;;  %s8566_s14 = inlined_call_operand.hbm [shape: f32[2,1,128], index: 14, kind: input, shape index: {}]   ;;  %s8567_s15 = inlined_call_operand.hbm [shape: f32[2,1,128], index: 15, kind: input, shape index: {}]   ;;  %s8568_s16 = inlined_call_operand.vmem [shape: f32[16,128], index: 16, kind: output, shape index: {}]  }
   0x1   :  { %8570 = sst [smem:[#allocation32_spill]] %s8552_s0 }
   0x2   :  { %21 = vsyncpa [#allocation3], 0 }
   0x3   :  { %22 = vsyncpa [#allocation5], 0 }
   0x4   :  { %23 = vsyncpa [#allocation8], 0 }
   0x5   :  { %24 = vsyncpa [#allocation11], 0 }
   0x6   :  { %25 = vsyncpa [#allocation14], 0 }
   0x7   :  { %26 = vsyncpa [#allocation17], 0 }
   0x8   :  { %27 = vsyncpa [#allocation20], 0 }
   0x9   :  { %28 = vsyncpa [#allocation23], 0  ;;  %s7700_s21 = smov [#allocation4]   ;;  %s7701_s23 = smov [#allocation7]  }
   0xa   :  { %s49_s22 = sshll.u32 %s7700_s21, 4  ;;  %s70_s24 = sshll.u32 %s7701_s23, 4  ;;  %s50_s22 = int_to_ptr.vmem [resolvable:$true] %s49_s22  ;;  %s7809_s24 = int_to_ptr.vmem [resolvable:$true] %s70_s24 }
   0xb   :  { %s7376_s27 = scalar_lea.hbm %s8555_s3, 16 }
   0xc   :  { %p7377_p0 = scmp.ne.s32.totalorder %s8555_s3, %s7376_s27  ;;  %p7380_p1 = scmp.lt.u32.totalorder %s7376_s27, %s8555_s3 }
   0xe   :  { %p7382_p2 = pnand %p7380_p1, %p7377_p0 }
  0x10   :  { %7385 = shalt.err (!%p7382_p2)
}
  0x11   :  { %s7386_s17 = scalar_lea.vmem %s50_s22, 16  ;;  %s7390_s18 = scalar_lea.vmem %s50_s22, 32 }
  0x12   :  { %p7387_p3 = scmp.ne.s32.totalorder %s50_s22, %s7386_s17  ;;  %p7391_p4 = scmp.lt.s32.totalorder %s50_s22, %s50_s22 }
  0x13   :  { %p7392_p5 = scmp.lt.s32.totalorder %s7390_s18, %s7386_s17 }
  0x15   :  { %p7393_p6 = por %p7392_p5, %p7391_p4 }
  0x17   :  { %p7394_p7 = pnand %p7393_p6, %p7387_p3 }
  0x19   :  { %7397 = shalt.err (!%p7394_p7)
}
  0x1a   :  { %52 = dma.hbm_to_vmem [thread:$0]  %s8555_s3, 16, %s50_s22, [#allocation5]  }
  0x1b   :  { %s7398_s25 = scalar_lea.hbm %s8557_s5, 384 }
  0x1c   :  { %p7399_p8 = scmp.ne.s32.totalorder %s8557_s5, %s7398_s25  ;;  %p7402_p9 = scmp.lt.u32.totalorder %s7398_s25, %s8557_s5 }
  0x1e   :  { %p7404_p10 = pnand %p7402_p9, %p7399_p8 }
  0x20   :  { %7407 = shalt.err (!%p7404_p10)
}
  0x21   :  { %s7408_s30 = scalar_lea.vmem %s7809_s24, 384  ;;  %p7413_p12 = scmp.lt.s32.totalorder %s7809_s24, %s7809_s24 }
  0x22   :  { %p7409_p11 = scmp.ne.s32.totalorder %s7809_s24, %s7408_s30  ;;  %p7414_p13 = scmp.lt.s32.totalorder %s7408_s30, %s7408_s30 }
  0x24   :  { %p7415_p0 = por %p7414_p13, %p7413_p12 }
  0x26   :  { %p7416_p1 = pnand %p7415_p0, %p7409_p11 }
  0x28   :  { %7419 = shalt.err (!%p7416_p1)
}
  0x29   :  { %s7702_s3 = smov 192   ;;  %s7703_s22 = smov 12  }
  0x2a   :  { %76 = dma.hbm_to_vmem [thread:$0]  %s8557_s5, 384, %s7809_s24, [#allocation8], %s7702_s3, %s7702_s3, %s7703_s22  }
  0x2b   :  { %s7704_s18 = smov [#allocation10]   ;;  %s7420_s23 = scalar_lea.hbm %s8559_s7, 32 }
  0x2c   :  { %s94_s19 = sshll.u32 %s7704_s18, 4  ;;  %p7421_p2 = scmp.ne.s32.totalorder %s8559_s7, %s7420_s23  ;;  %s95_s19 = int_to_ptr.vmem [resolvable:$true] %s94_s19 }
  0x2d   :  { %p7424_p3 = scmp.lt.u32.totalorder %s7420_s23, %s8559_s7 }
  0x2f   :  { %p7426_p4 = pnand %p7424_p3, %p7421_p2 }
  0x31   :  { %7429 = shalt.err (!%p7426_p4)
}
  0x32   :  { %s7430_s29 = scalar_lea.vmem %s95_s19, 32  ;;  %p7435_p6 = scmp.lt.s32.totalorder %s95_s19, %s95_s19 }
  0x33   :  { %p7431_p5 = scmp.ne.s32.totalorder %s95_s19, %s7430_s29  ;;  %p7436_p7 = scmp.lt.s32.totalorder %s7430_s29, %s7430_s29 }
  0x35   :  { %p7437_p8 = por %p7436_p7, %p7435_p6 }
  0x37   :  { %p7438_p9 = pnand %p7437_p8, %p7431_p5 }
  0x39   :  { %7441 = shalt.err (!%p7438_p9)
}
  0x3a   :  { %s7705_s5 = smov 16   ;;  %s7706_s24 = smov 1  }
  0x3b   :  { %100 = dma.hbm_to_vmem [thread:$0]  %s8559_s7, 32, %s95_s19, [#allocation11], %s7705_s5, %s7705_s5, %s7706_s24  }
  0x3c   :  { %s7707_s22 = smov [#allocation13]   ;;  %s7708_s17 = smov [#allocation16]  }
  0x3d   :  { %s118_s0 = sshll.u32 %s7707_s22, 4  ;;  %s142_s18 = sshll.u32 %s7708_s17, 4  ;;  %s119_s0 = int_to_ptr.vmem [resolvable:$true] %s118_s0  ;;  %s143_s18 = int_to_ptr.vmem [resolvable:$true] %s142_s18 }
  0x3e   :  { %s7442_s23 = scalar_lea.hbm %s8561_s9, 32 }
  0x3f   :  { %p7443_p10 = scmp.ne.s32.totalorder %s8561_s9, %s7442_s23  ;;  %p7446_p11 = scmp.lt.u32.totalorder %s7442_s23, %s8561_s9 }
  0x41   :  { %p7448_p12 = pnand %p7446_p11, %p7443_p10 }
  0x43   :  { %7451 = shalt.err (!%p7448_p12)
}
  0x44   :  { %s7452_s7 = scalar_lea.vmem %s119_s0, 32  ;;  %p7457_p0 = scmp.lt.s32.totalorder %s119_s0, %s119_s0 }
  0x45   :  { %p7453_p13 = scmp.ne.s32.totalorder %s119_s0, %s7452_s7  ;;  %p7458_p1 = scmp.lt.s32.totalorder %s7452_s7, %s7452_s7 }
  0x47   :  { %p7459_p2 = por %p7458_p1, %p7457_p0 }
  0x49   :  { %p7460_p3 = pnand %p7459_p2, %p7453_p13 }
  0x4b   :  { %7463 = shalt.err (!%p7460_p3)
}
  0x4c   :  { %124 = dma.hbm_to_vmem [thread:$0]  %s8561_s9, 32, %s119_s0, [#allocation14], %s7705_s5, %s7705_s5, %s7706_s24  }
  0x4d   :  { %s7464_s22 = scalar_lea.hbm %s8563_s11, 32 }
  0x4e   :  { %p7465_p4 = scmp.ne.s32.totalorder %s8563_s11, %s7464_s22  ;;  %p7468_p5 = scmp.lt.u32.totalorder %s7464_s22, %s8563_s11 }
  0x50   :  { %p7470_p6 = pnand %p7468_p5, %p7465_p4 }
  0x52   :  { %7473 = shalt.err (!%p7470_p6)
}
  0x53   :  { %s7474_s25 = scalar_lea.vmem %s143_s18, 32  ;;  %p7479_p8 = scmp.lt.s32.totalorder %s143_s18, %s143_s18 }
  0x54   :  { %p7475_p7 = scmp.ne.s32.totalorder %s143_s18, %s7474_s25  ;;  %p7480_p9 = scmp.lt.s32.totalorder %s7474_s25, %s7474_s25 }
  0x56   :  { %p7481_p10 = por %p7480_p9, %p7479_p8 }
  0x58   :  { %p7482_p11 = pnand %p7481_p10, %p7475_p7 }
  0x5a   :  { %7485 = shalt.err (!%p7482_p11)
}
  0x5b   :  { %148 = dma.hbm_to_vmem [thread:$0]  %s8563_s11, 32, %s143_s18, [#allocation17], %s7705_s5, %s7705_s5, %s7706_s24  }
  0x5c   :  { %s7709_s26 = smov [#allocation19]   ;;  %s7710_s28 = smov [#allocation2]  }
  0x5d   :  { %s166_s27 = sshll.u32 %s7709_s26, 4  ;;  %s39_s7 = sshll.u32 %s7710_s28, 4  ;;  %s167_s27 = int_to_ptr.vmem [resolvable:$true] %s166_s27  ;;  %s40_s7 = int_to_ptr.vmem [resolvable:$true] %s39_s7 }
  0x5e   :  { %s7486_s30 = scalar_lea.hbm %s8565_s13, 32 }
  0x5f   :  { %p7487_p12 = scmp.ne.s32.totalorder %s8565_s13, %s7486_s30  ;;  %p7490_p13 = scmp.lt.u32.totalorder %s7486_s30, %s8565_s13 }
  0x61   :  { %p7492_p0 = pnand %p7490_p13, %p7487_p12 }
  0x63   :  { %7495 = shalt.err (!%p7492_p0)
}
  0x64   :  { %s7496_s11 = scalar_lea.vmem %s167_s27, 32  ;;  %p7501_p2 = scmp.lt.s32.totalorder %s167_s27, %s167_s27 }
  0x65   :  { %p7497_p1 = scmp.ne.s32.totalorder %s167_s27, %s7496_s11  ;;  %p7502_p3 = scmp.lt.s32.totalorder %s7496_s11, %s7496_s11 }
  0x67   :  { %p7503_p4 = por %p7502_p3, %p7501_p2 }
  0x69   :  { %p7504_p5 = pnand %p7503_p4, %p7497_p1 }
  0x6b   :  { %7507 = shalt.err (!%p7504_p5)
}
  0x6c   :  { %172 = dma.hbm_to_vmem [thread:$0]  %s8565_s13, 32, %s167_s27, [#allocation20], %s7705_s5, %s7705_s5, %s7706_s24  }
  0x6d   :  { %s7508_s9 = scalar_lea.hbm %s8554_s2, 16 }
  0x6e   :  { %p7509_p6 = scmp.ne.s32.totalorder %s8554_s2, %s7508_s9  ;;  %p7512_p7 = scmp.lt.u32.totalorder %s7508_s9, %s8554_s2 }
  0x70   :  { %p7514_p8 = pnand %p7512_p7, %p7509_p6 }
  0x72   :  { %7517 = shalt.err (!%p7514_p8)
}
  0x73   :  { %s7518_s29 = scalar_lea.vmem %s40_s7, 16  ;;  %s7522_s30 = scalar_lea.vmem %s40_s7, 32 }
  0x74   :  { %p7519_p9 = scmp.ne.s32.totalorder %s40_s7, %s7518_s29  ;;  %p7523_p10 = scmp.lt.s32.totalorder %s40_s7, %s40_s7 }
  0x75   :  { %p7524_p11 = scmp.lt.s32.totalorder %s7522_s30, %s7518_s29 }
  0x77   :  { %p7525_p12 = por %p7524_p11, %p7523_p10 }
  0x79   :  { %p7526_p13 = pnand %p7525_p12, %p7519_p9 }
  0x7b   :  { %7529 = shalt.err (!%p7526_p13)
}
  0x7c   :  { %42 = dma.hbm_to_vmem [thread:$0]  %s8554_s2, 16, %s40_s7, [#allocation3]  }
  0x7d   :  { %s7711_s3 = smov [#allocation6]   ;;  %s7530_s11 = scalar_lea.hbm %s8556_s4, 49152 }
  0x7e   :  { %s58_s22 = sshll.u32 %s7711_s3, 4  ;;  %p7531_p0 = scmp.ne.s32.totalorder %s8556_s4, %s7530_s11  ;;  %s59_s22 = int_to_ptr.vmem [resolvable:$true] %s58_s22 }
  0x7f   :  { %p7534_p1 = scmp.lt.u32.totalorder %s7530_s11, %s8556_s4 }
  0x81   :  { %p7536_p2 = pnand %p7534_p1, %p7531_p0 }
  0x83   :  { %7539 = shalt.err (!%p7536_p2)
}
  0x84   :  { %s7540_s9 = scalar_lea.vmem %s59_s22, 49152  ;;  %p7545_p4 = scmp.lt.s32.totalorder %s59_s22, %s59_s22 }
  0x85   :  { %p7541_p3 = scmp.ne.s32.totalorder %s59_s22, %s7540_s9  ;;  %p7546_p5 = scmp.lt.s32.totalorder %s7540_s9, %s7540_s9 }
  0x87   :  { %p7547_p6 = por %p7546_p5, %p7545_p4 }
  0x89   :  { %p7548_p7 = pnand %p7547_p6, %p7541_p3 }
  0x8b   :  { %7551 = shalt.err (!%p7548_p7)
}
  0x8c   :  { %s7712_s2 = smov 1536   ;;  %s7713_s7 = smov 96  }
  0x8d   :  { %64 = dma.hbm_to_vmem [thread:$0]  %s8556_s4, 49152, %s59_s22, [#allocation5], %s7712_s2, %s7712_s2, %s7713_s7  }
  0x8e   :  { %s7714_s28 = smov [#allocation9]   ;;  %s7552_s13 = scalar_lea.hbm %s8558_s6, 16384 }
  0x8f   :  { %s82_s19 = sshll.u32 %s7714_s28, 4  ;;  %p7553_p8 = scmp.ne.s32.totalorder %s8558_s6, %s7552_s13  ;;  %s83_s19 = int_to_ptr.vmem [resolvable:$true] %s82_s19 }
  0x90   :  { %p7556_p9 = scmp.lt.u32.totalorder %s7552_s13, %s8558_s6 }
  0x92   :  { %p7558_p10 = pnand %p7556_p9, %p7553_p8 }
  0x94   :  { %7561 = shalt.err (!%p7558_p10)
}
  0x95   :  { %s7562_s11 = scalar_lea.vmem %s83_s19, 16384  ;;  %p7567_p12 = scmp.lt.s32.totalorder %s83_s19, %s83_s19 }
  0x96   :  { %p7563_p11 = scmp.ne.s32.totalorder %s83_s19, %s7562_s11  ;;  %p7568_p13 = scmp.lt.s32.totalorder %s7562_s11, %s7562_s11 }
  0x98   :  { %p7569_p0 = por %p7568_p13, %p7567_p12 }
  0x9a   :  { %p7570_p1 = pnand %p7569_p0, %p7563_p11 }
  0x9c   :  { %7573 = shalt.err (!%p7570_p1)
}
  0x9d   :  { %s7715_s4 = smov 128   ;;  %s7716_s22 = smov 8  }
  0x9e   :  { %88 = dma.hbm_to_vmem [thread:$0]  %s8558_s6, 16384, %s83_s19, [#allocation8], %s7715_s4, %s7715_s4, %s7716_s22  }
  0x9f   :  { %s7717_s23 = smov [#allocation12]   ;;  %s7718_s9 = smov [#allocation15]  }
  0xa0   :  { %s106_s25 = sshll.u32 %s7717_s23, 4  ;;  %s130_s2 = sshll.u32 %s7718_s9, 4  ;;  %s107_s25 = int_to_ptr.vmem [resolvable:$true] %s106_s25  ;;  %s131_s2 = int_to_ptr.vmem [resolvable:$true] %s130_s2 }
  0xa1   :  { %s7574_s26 = scalar_lea.hbm %s8560_s8, 32 }
  0xa2   :  { %p7575_p2 = scmp.ne.s32.totalorder %s8560_s8, %s7574_s26  ;;  %p7578_p3 = scmp.lt.u32.totalorder %s7574_s26, %s8560_s8 }
  0xa4   :  { %p7580_p4 = pnand %p7578_p3, %p7575_p2 }
  0xa6   :  { %7583 = shalt.err (!%p7580_p4)
}
  0xa7   :  { %s7584_s6 = scalar_lea.vmem %s107_s25, 32  ;;  %p7589_p6 = scmp.lt.s32.totalorder %s107_s25, %s107_s25 }
  0xa8   :  { %p7585_p5 = scmp.ne.s32.totalorder %s107_s25, %s7584_s6  ;;  %p7590_p7 = scmp.lt.s32.totalorder %s7584_s6, %s7584_s6 }
  0xaa   :  { %p7591_p8 = por %p7590_p7, %p7589_p6 }
  0xac   :  { %p7592_p9 = pnand %p7591_p8, %p7585_p5 }
  0xae   :  { %7595 = shalt.err (!%p7592_p9)
}
  0xaf   :  { %112 = dma.hbm_to_vmem [thread:$0]  %s8560_s8, 32, %s107_s25, [#allocation11], %s7705_s5, %s7705_s5, %s7706_s24  }
  0xb0   :  { %s7596_s20 = scalar_lea.hbm %s8562_s10, 4096 }
  0xb1   :  { %p7597_p10 = scmp.ne.s32.totalorder %s8562_s10, %s7596_s20  ;;  %p7600_p11 = scmp.lt.u32.totalorder %s7596_s20, %s8562_s10 }
  0xb3   :  { %p7602_p12 = pnand %p7600_p11, %p7597_p10 }
  0xb5   :  { %7605 = shalt.err (!%p7602_p12)
}
  0xb6   :  { %s7606_s9 = scalar_lea.vmem %s131_s2, 4096  ;;  %p7611_p0 = scmp.lt.s32.totalorder %s131_s2, %s131_s2 }
  0xb7   :  { %p7607_p13 = scmp.ne.s32.totalorder %s131_s2, %s7606_s9  ;;  %p7612_p1 = scmp.lt.s32.totalorder %s7606_s9, %s7606_s9 }
  0xb9   :  { %p7613_p2 = por %p7612_p1, %p7611_p0 }
  0xbb   :  { %p7614_p3 = pnand %p7613_p2, %p7607_p13 }
  0xbd   :  { %7617 = shalt.err (!%p7614_p3)
}
  0xbe   :  { %136 = dma.hbm_to_vmem [thread:$0]  %s8562_s10, 4096, %s131_s2, [#allocation14], %s7715_s4, %s7715_s4, %s7716_s22  }
  0xbf   :  { %s7719_s7 = smov [#allocation18]   ;;  %s7720_s26 = smov [#allocation21]  }
  0xc0   :  { %s154_s0 = sshll.u32 %s7719_s7, 4  ;;  %s178_s28 = sshll.u32 %s7720_s26, 4  ;;  %s155_s0 = int_to_ptr.vmem [resolvable:$true] %s154_s0  ;;  %s179_s28 = int_to_ptr.vmem [resolvable:$true] %s178_s28 }
  0xc1   :  { %s7618_s13 = scalar_lea.hbm %s8564_s12, 4096 }
  0xc2   :  { %p7619_p4 = scmp.ne.s32.totalorder %s8564_s12, %s7618_s13  ;;  %p7622_p5 = scmp.lt.u32.totalorder %s7618_s13, %s8564_s12 }
  0xc4   :  { %p7624_p6 = pnand %p7622_p5, %p7619_p4 }
  0xc6   :  { %7627 = shalt.err (!%p7624_p6)
}
  0xc7   :  { %s7628_s10 = scalar_lea.vmem %s155_s0, 4096  ;;  %p7633_p8 = scmp.lt.s32.totalorder %s155_s0, %s155_s0 }
  0xc8   :  { %p7629_p7 = scmp.ne.s32.totalorder %s155_s0, %s7628_s10  ;;  %p7634_p9 = scmp.lt.s32.totalorder %s7628_s10, %s7628_s10 }
  0xca   :  { %p7635_p10 = por %p7634_p9, %p7633_p8 }
  0xcc   :  { %p7636_p11 = pnand %p7635_p10, %p7629_p7 }
  0xce   :  { %7639 = shalt.err (!%p7636_p11)
}
  0xcf   :  { %160 = dma.hbm_to_vmem [thread:$0]  %s8564_s12, 4096, %s155_s0, [#allocation17], %s7715_s4, %s7715_s4, %s7716_s22  }
  0xd0   :  { %s7640_s18 = scalar_lea.hbm %s8566_s14, 32 }
  0xd1   :  { %p7641_p12 = scmp.ne.s32.totalorder %s8566_s14, %s7640_s18  ;;  %p7644_p13 = scmp.lt.u32.totalorder %s7640_s18, %s8566_s14 }
  0xd3   :  { %p7646_p0 = pnand %p7644_p13, %p7641_p12 }
  0xd5   :  { %7649 = shalt.err (!%p7646_p0)
}
  0xd6   :  { %s7650_s25 = scalar_lea.vmem %s179_s28, 32  ;;  %p7655_p2 = scmp.lt.s32.totalorder %s179_s28, %s179_s28 }
  0xd7   :  { %p7651_p1 = scmp.ne.s32.totalorder %s179_s28, %s7650_s25  ;;  %p7656_p3 = scmp.lt.s32.totalorder %s7650_s25, %s7650_s25 }
  0xd9   :  { %p7657_p4 = por %p7656_p3, %p7655_p2 }
  0xdb   :  { %p7658_p5 = pnand %p7657_p4, %p7651_p1 }
  0xdd   :  { %7661 = shalt.err (!%p7658_p5)
}
  0xde   :  { %184 = dma.hbm_to_vmem [thread:$0]  %s8566_s14, 32, %s179_s28, [#allocation20], %s7705_s5, %s7705_s5, %s7706_s24  }
  0xdf   :  { %s7721_s22 = smov [#allocation22]   ;;  %s7662_s29 = scalar_lea.hbm %s8567_s15, 32 }
  0xe0   :  { %s190_s7 = sshll.u32 %s7721_s22, 4  ;;  %p7663_p6 = scmp.ne.s32.totalorder %s8567_s15, %s7662_s29  ;;  %s191_s7 = int_to_ptr.vmem [resolvable:$true] %s190_s7 }
  0xe1   :  { %p7666_p7 = scmp.lt.u32.totalorder %s7662_s29, %s8567_s15 }
  0xe3   :  { %p7668_p8 = pnand %p7666_p7, %p7663_p6 }
  0xe5   :  { %7671 = shalt.err (!%p7668_p8)
}
  0xe6   :  { %s7672_s27 = scalar_lea.vmem %s191_s7, 32  ;;  %p7677_p10 = scmp.lt.s32.totalorder %s191_s7, %s191_s7 }
  0xe7   :  { %p7673_p9 = scmp.ne.s32.totalorder %s191_s7, %s7672_s27  ;;  %p7678_p11 = scmp.lt.s32.totalorder %s7672_s27, %s7672_s27 }
  0xe9   :  { %p7679_p12 = por %p7678_p11, %p7677_p10 }
  0xeb   :  { %p7680_p13 = pnand %p7679_p12, %p7673_p9 }
  0xed   :  { %7683 = shalt.err (!%p7680_p13)
}
  0xee   :  { %196 = dma.hbm_to_vmem [thread:$0]  %s8567_s15, 32, %s191_s7, [#allocation23], %s7705_s5, %s7705_s5, %s7706_s24  }
  0xef   :  { %7684 = dma.done.wait [#allocation3], 16  }
  0xf0   :  { %7685 = vsyncadd [#allocation3], 4294967280 }
  0xf1   :  { %7686 = dma.done.wait [#allocation5], 49168  }
  0xf2   :  { %7687 = vsyncadd [#allocation5], 4294918128 }
  0xf3   :  { %7688 = dma.done.wait [#allocation8], 16768  }
  0xf4   :  { %7689 = vsyncadd [#allocation8], 4294950528 }
  0xf5   :  { %7690 = dma.done.wait [#allocation11], 64  }
  0xf6   :  { %7691 = vsyncadd [#allocation11], 4294967232 }
  0xf7   :  { %7692 = dma.done.wait [#allocation14], 4128  }
  0xf8   :  { %7693 = vsyncadd [#allocation14], 4294963168 }
  0xf9   :  { %7694 = dma.done.wait [#allocation17], 4128  }
  0xfa   :  { %7695 = vsyncadd [#allocation17], 4294963168 }
  0xfb   :  { %7696 = dma.done.wait [#allocation20], 64  }
  0xfc   :  { %7697 = vsyncadd [#allocation20], 4294967232 }
  0xfd   :  { %7698 = dma.done.wait [#allocation23], 32  }
  0xfe   :  { %7699 = vsyncadd [#allocation23], 4294967264  ;;  %s8571_s2 = sld [smem:[#allocation32_spill]]  ;;  %v288_v2 = vld [vmem:[#allocation6 + $0x8] sm:$0xff]  ;;  %v290_v6 = vld [vmem:[#allocation6 + $0x18] sm:$0xff]  ;;  %vm7723_vm0 = vmmov 0  }
  0xff   :  { %v300_v5 = vld [vmem:[#allocation6 + $0x68] sm:$0xff]  ;;  %v302_v7 = vld [vmem:[#allocation6 + $0x78] sm:$0xff]  ;;  %v287_v10 = vld [vmem:[#allocation6] sm:$0xff]  ;;  %vm1145_vm1 = vcmask 64512  }
 0x100   :  { %v6478_v8 = vpack.c.bf16 %v300_v5, %v288_v2  ;;  %v6510_v9 = vpack.c.bf16 %v302_v7, %v290_v6  ;;  %v299_v11 = vld [vmem:[#allocation6 + $0x60] sm:$0xff]  ;;  %v289_v12 = vld [vmem:[#allocation6 + $0x10] sm:$0xff]  ;;  %v312_v15 = vld [vmem:[#allocation6 + $0xc8] sm:$0xff] }
 0x101   :  { %v6480_v13 = vpack.c.bf16 %v299_v11, %v287_v10  ;;  %v301_v14 = vld [vmem:[#allocation6 + $0x70] sm:$0xff]  ;;  %v324_v16 = vld [vmem:[#allocation6 + $0x128] sm:$0xff]  ;;  %v314_v19 = vld [vmem:[#allocation6 + $0xd8] sm:$0xff] }
 0x102   :  { %6479 = vmatprep.subr.bf16.mxu0 %v6478_v8  ;;  %6511 = vmatprep.subr.bf16.mxu1 %v6510_v9  ;;  %v6512_v17 = vpack.c.bf16 %v301_v14, %v289_v12  ;;  %v6482_v18 = vpack.c.bf16 %v324_v16, %v312_v15  ;;  %v326_v20 = vld [vmem:[#allocation6 + $0x138] sm:$0xff]  ;;  %v311_v21 = vld [vmem:[#allocation6 + $0xc0] sm:$0xff]  ;;  %v313_v24 = vld [vmem:[#allocation6 + $0xd0] sm:$0xff] }
 0x103   :  { %v6514_v22 = vpack.c.bf16 %v326_v20, %v314_v19  ;;  %v323_v23 = vld [vmem:[#allocation6 + $0x120] sm:$0xff]  ;;  %v325_v25 = vld [vmem:[#allocation6 + $0x130] sm:$0xff]  ;;  %6481 = vmatpush1.bf16.msra.mxu0 %v6480_v13  ;;  %v336_v28 = vld [vmem:[#allocation6 + $0x188] sm:$0xff] }
 0x104   :  { %v8017_v0 = vld [vmem:[%s8571_s2 + $0x8] sm:$0xff]  ;;  %v8022_v1 = vld [vmem:[%s8571_s2] sm:$0xff]  ;;  %6513 = vmatpush1.bf16.msra.mxu1 %v6512_v17  ;;  %v6484_v26 = vpack.c.bf16 %v323_v23, %v311_v21  ;;  %v6516_v27 = vpack.c.bf16 %v325_v25, %v313_v24  ;;  %6483 = vmatprep.subr.bf16.mxu0 %v6482_v18  ;;  %v337_v37 = vld [vmem:[#allocation6 + $0x190] sm:$0xff] }
 0x105   :  { %247 = vadd.xlane.f32.xlu1 %v8017_v0  ;;  %245 = vadd.xlane.f32.xlu0 %v8022_v1  ;;  %v252_v3 = vmul.f32 %v8017_v0, %v8017_v0  ;;  %v251_v4 = vmul.f32 %v8022_v1, %v8022_v1  ;;  %v348_v29 = vld [vmem:[#allocation6 + $0x1e8] sm:$0xff]  ;;  %v338_v30 = vld [vmem:[#allocation6 + $0x198] sm:$0xff]  ;;  %v335_v33 = vld [vmem:[#allocation6 + $0x180] sm:$0xff] }
 0x106   :  { %6515 = vmatprep.subr.bf16.mxu1 %v6514_v22  ;;  %v6486_v31 = vpack.c.bf16 %v348_v29, %v336_v28  ;;  %v350_v32 = vld [vmem:[#allocation6 + $0x1f8] sm:$0xff]  ;;  %v347_v34 = vld [vmem:[#allocation6 + $0x1e0] sm:$0xff]  ;;  %v349_v38 = vld [vmem:[#allocation6 + $0x1f0] sm:$0xff] }
 0x107   :  { %6485 = vmatpush1.bf16.msra.mxu0 %v6484_v26  ;;  %v6518_v35 = vpack.c.bf16 %v350_v32, %v338_v30  ;;  %v6488_v36 = vpack.c.bf16 %v347_v34, %v335_v33  ;;  %v6520_v39 = vpack.c.bf16 %v349_v38, %v337_v37  ;;  %v360_v40 = vld [vmem:[#allocation6 + $0x248] sm:$0xff]  ;;  %v362_v42 = vld [vmem:[#allocation6 + $0x258] sm:$0xff]  ;;  %v359_v45 = vld [vmem:[#allocation6 + $0x240] sm:$0xff] }
 0x108   :  { %6517 = vmatpush1.bf16.msra.mxu1 %v6516_v27  ;;  %6487 = vmatprep.subr.bf16.mxu0 %v6486_v31  ;;  %v372_v41 = vld [vmem:[#allocation6 + $0x2a8] sm:$0xff]  ;;  %v374_v44 = vld [vmem:[#allocation6 + $0x2b8] sm:$0xff]  ;;  %v371_v46 = vld [vmem:[#allocation6 + $0x2a0] sm:$0xff] }
 0x109   :  { %255 = vadd.xlane.f32.xlu1 %v252_v3  ;;  %253 = vadd.xlane.f32.xlu0 %v251_v4  ;;  %v6490_v43 = vpack.c.bf16 %v372_v41, %v360_v40  ;;  %v6522_v47 = vpack.c.bf16 %v374_v44, %v362_v42  ;;  %v6492_v48 = vpack.c.bf16 %v371_v46, %v359_v45  ;;  %v361_v49 = vld [vmem:[#allocation6 + $0x250] sm:$0xff]  ;;  %v384_v52 = vld [vmem:[#allocation6 + $0x308] sm:$0xff]  ;;  %v386_v54 = vld [vmem:[#allocation6 + $0x318] sm:$0xff]  ;;  %v7722_v44 = vmov 0.0  }
 0x10a   :  { %6519 = vmatprep.subr.bf16.mxu1 %v6518_v35  ;;  %v373_v50 = vld [vmem:[#allocation6 + $0x2b0] sm:$0xff]  ;;  %v396_v53 = vld [vmem:[#allocation6 + $0x368] sm:$0xff]  ;;  %v398_v56 = vld [vmem:[#allocation6 + $0x378] sm:$0xff]  ;;  %607 = vmatprep.mubr.f32.mxu0 %v7722_v44 }
 0x10b   :  { %6489 = vmatpush1.bf16.msra.mxu0 %v6488_v36  ;;  %v6524_v51 = vpack.c.bf16 %v373_v50, %v361_v49  ;;  %v6494_v55 = vpack.c.bf16 %v396_v53, %v384_v52  ;;  %v383_v57 = vld [vmem:[#allocation6 + $0x300] sm:$0xff]  ;;  %v6526_v59 = vpack.c.bf16 %v398_v56, %v386_v54  ;;  %v385_v61 = vld [vmem:[#allocation6 + $0x310] sm:$0xff]  ;;  %v408_v2 = vld [vmem:[#allocation6 + $0x3c8] sm:$0xff]  ;;  %684 = vmatprep.mubr.f32.mxu1 %v7722_v44 }
 0x10c   :  { %6521 = vmatpush1.bf16.msra.mxu1 %v6520_v39  ;;  %6491 = vmatprep.subr.bf16.mxu0 %v6490_v43  ;;  %v395_v58 = vld [vmem:[#allocation6 + $0x360] sm:$0xff]  ;;  %v397_v62 = vld [vmem:[#allocation6 + $0x370] sm:$0xff]  ;;  %v420_v3 = vld [vmem:[#allocation6 + $0x428] sm:$0xff] }
 0x10d   :  { %6523 = vmatprep.subr.bf16.mxu1 %v6522_v47  ;;  %v6496_v60 = vpack.c.bf16 %v395_v58, %v383_v57  ;;  %v6528_v63 = vpack.c.bf16 %v397_v62, %v385_v61  ;;  %v410_v4 = vld [vmem:[#allocation6 + $0x3d8] sm:$0xff]  ;;  %v6498_v5 = vpack.c.bf16 %v420_v3, %v408_v2  ;;  %v407_v7 = vld [vmem:[#allocation6 + $0x3c0] sm:$0xff]  ;;  %v409_v11 = vld [vmem:[#allocation6 + $0x3d0] sm:$0xff] }
 0x10e   :  { %v422_v6 = vld [vmem:[#allocation6 + $0x438] sm:$0xff]  ;;  %v419_v8 = vld [vmem:[#allocation6 + $0x420] sm:$0xff]  ;;  %v421_v12 = vld [vmem:[#allocation6 + $0x430] sm:$0xff] }
 0x10f   :  { %6493 = vmatpush1.bf16.msra.mxu0 %v6492_v48  ;;  %v6530_v9 = vpack.c.bf16 %v422_v6, %v410_v4  ;;  %v6500_v10 = vpack.c.bf16 %v419_v8, %v407_v7  ;;  %v6532_v13 = vpack.c.bf16 %v421_v12, %v409_v11  ;;  %v432_v14 = vld [vmem:[#allocation6 + $0x488] sm:$0xff]  ;;  %v434_v16 = vld [vmem:[#allocation6 + $0x498] sm:$0xff]  ;;  %v431_v19 = vld [vmem:[#allocation6 + $0x480] sm:$0xff] }
 0x110   :  { %6525 = vmatpush1.bf16.msra.mxu1 %v6524_v51  ;;  %6495 = vmatprep.subr.bf16.mxu0 %v6494_v55  ;;  %v444_v15 = vld [vmem:[#allocation6 + $0x4e8] sm:$0xff]  ;;  %v446_v18 = vld [vmem:[#allocation6 + $0x4f8] sm:$0xff]  ;;  %v443_v20 = vld [vmem:[#allocation6 + $0x4e0] sm:$0xff] }
 0x111   :  { %6527 = vmatprep.subr.bf16.mxu1 %v6526_v59  ;;  %v6502_v17 = vpack.c.bf16 %v444_v15, %v432_v14  ;;  %v6534_v21 = vpack.c.bf16 %v446_v18, %v434_v16  ;;  %v6504_v22 = vpack.c.bf16 %v443_v20, %v431_v19  ;;  %v433_v23 = vld [vmem:[#allocation6 + $0x490] sm:$0xff]  ;;  %v456_v26 = vld [vmem:[#allocation6 + $0x548] sm:$0xff]  ;;  %v458_v28 = vld [vmem:[#allocation6 + $0x558] sm:$0xff] }
 0x112   :  { %v445_v24 = vld [vmem:[#allocation6 + $0x4f0] sm:$0xff]  ;;  %v468_v27 = vld [vmem:[#allocation6 + $0x5a8] sm:$0xff]  ;;  %v470_v30 = vld [vmem:[#allocation6 + $0x5b8] sm:$0xff] }
 0x113   :  { %6497 = vmatpush1.bf16.msra.mxu0 %v6496_v60  ;;  %v6536_v25 = vpack.c.bf16 %v445_v24, %v433_v23  ;;  %v6506_v29 = vpack.c.bf16 %v468_v27, %v456_v26  ;;  %v455_v31 = vld [vmem:[#allocation6 + $0x540] sm:$0xff]  ;;  %v6538_v33 = vpack.c.bf16 %v470_v30, %v458_v28  ;;  %v457_v35 = vld [vmem:[#allocation6 + $0x550] sm:$0xff]  ;;  %v292_v38 = vld [vmem:[#allocation6 + $0x28] sm:$0xff] }
 0x114   :  { %6529 = vmatpush1.bf16.msra.mxu1 %v6528_v63  ;;  %6499 = vmatprep.subr.bf16.mxu0 %v6498_v5  ;;  %v467_v32 = vld [vmem:[#allocation6 + $0x5a0] sm:$0xff]  ;;  %v469_v36 = vld [vmem:[#allocation6 + $0x5b0] sm:$0xff]  ;;  %v304_v39 = vld [vmem:[#allocation6 + $0x88] sm:$0xff] }
 0x115   :  { %6531 = vmatprep.subr.bf16.mxu1 %v6530_v9  ;;  %v6508_v34 = vpack.c.bf16 %v467_v32, %v455_v31  ;;  %v6540_v37 = vpack.c.bf16 %v469_v36, %v457_v35  ;;  %v294_v40 = vld [vmem:[#allocation6 + $0x38] sm:$0xff]  ;;  %v6542_v41 = vpack.c.bf16 %v304_v39, %v292_v38  ;;  %v291_v2 = vld [vmem:[#allocation6 + $0x20] sm:$0xff]  ;;  %v293_v6 = vld [vmem:[#allocation6 + $0x30] sm:$0xff] }
 0x116   :  { %v306_v42 = vld [vmem:[#allocation6 + $0x98] sm:$0xff]  ;;  %v303_v5 = vld [vmem:[#allocation6 + $0x80] sm:$0xff]  ;;  %v305_v7 = vld [vmem:[#allocation6 + $0x90] sm:$0xff] }
 0x117   :  { %6501 = vmatpush1.bf16.msra.mxu0 %v6500_v10  ;;  %v6574_v43 = vpack.c.bf16 %v306_v42, %v294_v40  ;;  %v5586_v63 = vld [vmem:[#allocation2] ss:$0 sm:$0xff]  ;;  %v5587_v8 = vld [vmem:[#allocation4] ss:$0 sm:$0xff]  ;;  %v316_v9 = vld [vmem:[#allocation6 + $0xe8] sm:$0xff]  ;;  %v6544_v14 = vpack.c.bf16 %v303_v5, %v291_v2  ;;  %v6576_v15 = vpack.c.bf16 %v305_v7, %v293_v6 }
 0x118   :  { %6533 = vmatpush1.bf16.msra.mxu1 %v6532_v13  ;;  %6503 = vmatprep.subr.bf16.mxu0 %v6502_v17  ;;  %v328_v11 = vld [vmem:[#allocation6 + $0x148] sm:$0xff]  ;;  %v318_v12 = vld [vmem:[#allocation6 + $0xf8] sm:$0xff]  ;;  %v315_v16 = vld [vmem:[#allocation6 + $0xe0] sm:$0xff] }
 0x119   :  { %6535 = vmatprep.subr.bf16.mxu1 %v6534_v21  ;;  %v330_v13 = vld [vmem:[#allocation6 + $0x158] sm:$0xff]  ;;  %v317_v18 = vld [vmem:[#allocation6 + $0xf0] sm:$0xff]  ;;  %v340_v20 = vld [vmem:[#allocation6 + $0x1a8] sm:$0xff]  ;;  %v6546_v21 = vpack.c.bf16 %v328_v11, %v316_v9 }
 0x11a   :  { %v329_v19 = vld [vmem:[#allocation6 + $0x150] sm:$0xff]  ;;  %v352_v23 = vld [vmem:[#allocation6 + $0x208] sm:$0xff]  ;;  %v342_v24 = vld [vmem:[#allocation6 + $0x1b8] sm:$0xff] }
 0x11b   :  { %6505 = vmatpush1.bf16.msra.mxu0 %v6504_v22  ;;  %v6578_v22 = vpack.c.bf16 %v330_v13, %v318_v12  ;;  %v6580_v27 = vpack.c.bf16 %v329_v19, %v317_v18  ;;  %v339_v28 = vld [vmem:[#allocation6 + $0x1a0] sm:$0xff]  ;;  %v6550_v31 = vpack.c.bf16 %v352_v23, %v340_v20  ;;  %v364_v35 = vld [vmem:[#allocation6 + $0x268] sm:$0xff]  ;;  %v378_v38 = vld [vmem:[#allocation6 + $0x2d8] sm:$0xff] }
 0x11c   :  { %6537 = vmatpush1.bf16.msra.mxu1 %v6536_v25  ;;  %6507 = vmatprep.subr.bf16.mxu0 %v6506_v29  ;;  %v354_v25 = vld [vmem:[#allocation6 + $0x218] sm:$0xff]  ;;  %v351_v29 = vld [vmem:[#allocation6 + $0x200] sm:$0xff]  ;;  %v376_v36 = vld [vmem:[#allocation6 + $0x2c8] sm:$0xff] }
 0x11d   :  { %6539 = vmatprep.subr.bf16.mxu1 %v6538_v33  ;;  %v6582_v32 = vpack.c.bf16 %v354_v25, %v342_v24  ;;  %v341_v33 = vld [vmem:[#allocation6 + $0x1b0] sm:$0xff]  ;;  %v6552_v39 = vpack.c.bf16 %v351_v29, %v339_v28  ;;  %v375_v42 = vld [vmem:[#allocation6 + $0x2c0] sm:$0xff]  ;;  %v448_v11 = vld [vmem:[#allocation6 + $0x508] sm:$0xff] }
 0x11e   :  { %v423_v5 = vld [vmem:[#allocation6 + $0x440] sm:$0xff]  ;;  %v425_v9 = vld [vmem:[#allocation6 + $0x450] sm:$0xff]  ;;  %v438_v12 = vld [vmem:[#allocation6 + $0x4b8] sm:$0xff] }
 0x11f   :  { %6509 = vmatpush1.bf16.msra.mxu0 %v6508_v34  ;;  %v353_v34 = vld [vmem:[#allocation6 + $0x210] sm:$0xff]  ;;  %v450_v13 = vld [vmem:[#allocation6 + $0x518] sm:$0xff]  ;;  %v471_v28 = vld [vmem:[#allocation6 + $0x5c0] sm:$0xff] }
 0x120   :  { %6541 = vmatpush1.bf16.msra.mxu1 %v6540_v37  ;;  %6543 = vmatprep.subr.bf16.mxu0 %v6542_v41  ;;  %v366_v37 = vld [vmem:[#allocation6 + $0x278] sm:$0xff]  ;;  %v6584_v40 = vpack.c.bf16 %v353_v34, %v341_v33  ;;  %v363_v41 = vld [vmem:[#allocation6 + $0x260] sm:$0xff]  ;;  %v6598_v18 = vpack.c.bf16 %v450_v13, %v438_v12  ;;  %v437_v19 = vld [vmem:[#allocation6 + $0x4b0] sm:$0xff] }
 0x121   :  { %6575 = vmatprep.subr.bf16.mxu1 %v6574_v43  ;;  %v6554_v43 = vpack.c.bf16 %v376_v36, %v364_v35  ;;  %v449_v20 = vld [vmem:[#allocation6 + $0x510] sm:$0xff]  ;;  %v462_v23 = vld [vmem:[#allocation6 + $0x578] sm:$0xff]  ;;  %v296_v34 = vld [vmem:[#allocation6 + $0x48] sm:$0xff] }
 0x122   :  { %v474_v24 = vld [vmem:[#allocation6 + $0x5d8] sm:$0xff]  ;;  %v473_v33 = vld [vmem:[#allocation6 + $0x5d0] sm:$0xff]  ;;  %v308_v35 = vld [vmem:[#allocation6 + $0xa8] sm:$0xff] }
 0x123   :  { %v298_v36 = vld [vmem:[#allocation6 + $0x58] sm:$0xff] }
 0x124   :  { %v382_v12 = vld [vmem:[#allocation6 + $0x2f8] sm:$0xff] }
 0x192   :  { %v248_v45 = vpop.xlane.xlu1 %247  ;;  %v246_v46 = vpop.xlane.xlu0 %245 }
 0x193   :  { %v250_v47 = vmul.f32 0.03125, %v248_v45  ;;  %v249_v48 = vmul.f32 0.03125, %v246_v46  ;;  %v6586_v45 = vpack.c.bf16 %v378_v38, %v366_v37  ;;  %v365_v46 = vld [vmem:[#allocation6 + $0x270] sm:$0xff]  ;;  %v310_v37 = vld [vmem:[#allocation6 + $0xb8] sm:$0xff] }
 0x195   :  { %v260_v49 = vmul.f32 %v250_v47, %v250_v47  ;;  %v259_v52 = vmul.f32 %v249_v48, %v249_v48  ;;  %v264_v60 = vsub.f32 %v8017_v0, %v250_v47  ;;  %v263_v61 = vsub.f32 %v8022_v1, %v249_v48  ;;  %v327_v0 = vld [vmem:[#allocation6 + $0x140] sm:$0xff]  ;;  %v377_v47 = vld [vmem:[#allocation6 + $0x2d0] sm:$0xff]  ;;  %v388_v48 = vld [vmem:[#allocation6 + $0x328] sm:$0xff] }
 0x196   :  { %v256_v50 = vpop.xlane.xlu1 %255  ;;  %v254_v51 = vpop.xlane.xlu0 %253  ;;  %v6548_v26 = vpack.c.bf16 %v327_v0, %v315_v16  ;;  %v435_v16 = vld [vmem:[#allocation6 + $0x4a0] sm:$0xff] }
 0x197   :  { %v258_v53 = vmul.f32 0.03125, %v256_v50  ;;  %v257_v54 = vmul.f32 0.03125, %v254_v51  ;;  %v390_v50 = vld [vmem:[#allocation6 + $0x338] sm:$0xff]  ;;  %v447_v0 = vld [vmem:[#allocation6 + $0x500] sm:$0xff] }
 0x198   :  { %v402_v51 = vld [vmem:[#allocation6 + $0x398] sm:$0xff]  ;;  %v6568_v25 = vpack.c.bf16 %v447_v0, %v435_v16  ;;  %v379_v16 = vld [vmem:[#allocation6 + $0x2e0] sm:$0xff] }
 0x199   :  { %v262_v55 = vsub.f32 %v258_v53, %v260_v49  ;;  %v261_v56 = vsub.f32 %v257_v54, %v259_v52  ;;  %v400_v49 = vld [vmem:[#allocation6 + $0x388] sm:$0xff]  ;;  %v6556_v52 = vpack.c.bf16 %v375_v42, %v363_v41  ;;  %v6588_v53 = vpack.c.bf16 %v377_v47, %v365_v46  ;;  %v387_v54 = vld [vmem:[#allocation6 + $0x320] sm:$0xff]  ;;  %v309_v46 = vld [vmem:[#allocation6 + $0xb0] sm:$0xff] }
 0x19a   :  { %v6606_v41 = vpack.c.bf16 %v308_v35, %v296_v34  ;;  %v6638_v42 = vpack.c.bf16 %v310_v37, %v298_v36  ;;  %v320_v47 = vld [vmem:[#allocation6 + $0x108] sm:$0xff]  ;;  %v418_v35 = vld [vmem:[#allocation6 + $0x418] sm:$0xff] }
 0x19b   :  { %v266_v57 = vadd.f32 1e-12, %v262_v55  ;;  %v265_v58 = vadd.f32 1e-12, %v261_v56  ;;  %v399_v55 = vld [vmem:[#allocation6 + $0x380] sm:$0xff]  ;;  %v6558_v56 = vpack.c.bf16 %v400_v49, %v388_v48  ;;  %v332_v48 = vld [vmem:[#allocation6 + $0x168] sm:$0xff] }
 0x19c   :  { %v6560_v2 = vpack.c.bf16 %v399_v55, %v387_v54  ;;  %v322_v49 = vld [vmem:[#allocation6 + $0x118] sm:$0xff]  ;;  %v331_v54 = vld [vmem:[#allocation6 + $0x160] sm:$0xff]  ;;  %v321_v55 = vld [vmem:[#allocation6 + $0x110] sm:$0xff] }
 0x19d   :  { %7282 = vrsqrt.f32 %v266_v57  ;;  %v6590_v57 = vpack.c.bf16 %v402_v51, %v390_v50  ;;  %v334_v50 = vld [vmem:[#allocation6 + $0x178] sm:$0xff]  ;;  %v428_v34 = vld [vmem:[#allocation6 + $0x468] sm:$0xff] }
 0x19e   :  { %7284 = vrsqrt.f32 %v265_v58  ;;  %v389_v58 = vld [vmem:[#allocation6 + $0x330] sm:$0xff]  ;;  %v430_v36 = vld [vmem:[#allocation6 + $0x478] sm:$0xff] }
 0x1a7   :  { %v7283_v59 = vpop.eup %7282 }
 0x1a8   :  { %v7285_v62 = vpop.eup %7284  ;;  %v270_v3 = vmul.f32 %v7283_v59, %v264_v60  ;;  %v401_v59 = vld [vmem:[#allocation6 + $0x390] sm:$0xff]  ;;  %v412_v60 = vld [vmem:[#allocation6 + $0x3e8] sm:$0xff] }
 0x1a9   :  { %v269_v4 = vmul.f32 %v7285_v62, %v263_v61  ;;  %v424_v61 = vld [vmem:[#allocation6 + $0x448] sm:$0xff]  ;;  %v414_v62 = vld [vmem:[#allocation6 + $0x3f8] sm:$0xff] }
 0x1aa   :  { %v278_v17 = vmul.f32 %v5586_v63, %v270_v3  ;;  %v6592_v3 = vpack.c.bf16 %v401_v59, %v389_v58  ;;  %v6562_v6 = vpack.c.bf16 %v424_v61, %v412_v60  ;;  %v6610_v58 = vpack.c.bf16 %v332_v48, %v320_v47  ;;  %v356_v60 = vld [vmem:[#allocation6 + $0x228] sm:$0xff]  ;;  %v346_v61 = vld [vmem:[#allocation6 + $0x1d8] sm:$0xff] }
 0x1ab   :  { %v277_v10 = vmul.f32 %v5586_v63, %v269_v4  ;;  %v426_v63 = vld [vmem:[#allocation6 + $0x458] sm:$0xff]  ;;  %v411_v4 = vld [vmem:[#allocation6 + $0x3e0] sm:$0xff]  ;;  %v6642_v59 = vpack.c.bf16 %v334_v50, %v322_v49  ;;  %v452_v47 = vld [vmem:[#allocation6 + $0x528] sm:$0xff] }
 0x1ac   :  { %v8038_v30 = vadd.f32 %v5587_v8, %v278_v17  ;;  %v6594_v7 = vpack.c.bf16 %v426_v63, %v414_v62  ;;  %v358_v62 = vld [vmem:[#allocation6 + $0x238] sm:$0xff] }
 0x1ad   :  { %v8034_v1 = vadd.f32 %v5587_v8, %v277_v10  ;;  %v413_v8 = vld [vmem:[#allocation6 + $0x3f0] sm:$0xff]  ;;  %v436_v10 = vld [vmem:[#allocation6 + $0x4a8] sm:$0xff]  ;;  %v442_v48 = vld [vmem:[#allocation6 + $0x4d8] sm:$0xff] }
 0x1ae   :  { %v6566_v17 = vpack.c.bf16 %v448_v11, %v436_v10  ;;  %v380_v10 = vld [vmem:[#allocation6 + $0x2e8] sm:$0xff]  ;;  %v370_v11 = vld [vmem:[#allocation6 + $0x298] sm:$0xff] }
 0x1af   :  { %608 = vmatmul.mubr.f32.vlgmr.msra.gmra.mrb[0].mxu0 %v8034_v1  ;;  %685 = vmatmul.mubr.f32.vlgmr.msra.gmra.mrb[0].mxu1 %v8034_v1  ;;  %v454_v49 = vld [vmem:[#allocation6 + $0x538] sm:$0xff] }
 0x1b0   :  { %6545 = vmatpush1.bf16.msra.mxu0 %v6544_v14  ;;  %6577 = vmatpush1.bf16.msra.mxu1 %v6576_v15  ;;  %v6564_v14 = vpack.c.bf16 %v423_v5, %v411_v4  ;;  %v6596_v15 = vpack.c.bf16 %v425_v9, %v413_v8  ;;  %v355_v4 = vld [vmem:[#allocation6 + $0x220] sm:$0xff]  ;;  %v357_v8 = vld [vmem:[#allocation6 + $0x230] sm:$0xff]  ;;  %v368_v9 = vld [vmem:[#allocation6 + $0x288] sm:$0xff] }
 0x1b1   :  { %613 = vmatprep.mubr.f32.mxu0 %v7722_v44  ;;  %690 = vmatprep.mubr.f32.mxu1 %v7722_v44  ;;  %v6618_v0 = vpack.c.bf16 %v380_v10, %v368_v9  ;;  %v483_v10 = vlaneseq }
 0x1b2   :  { %6547 = vmatprep.subr.bf16.mxu0 %v6546_v21  ;;  %6579 = vmatprep.subr.bf16.mxu1 %v6578_v22  ;;  %v460_v21 = vld [vmem:[#allocation6 + $0x568] sm:$0xff] }
 0x1b3   :  { %614 = vmatmul.mubr.f32.gmra.mrb[2].mxu0 %v8038_v30  ;;  %691 = vmatmul.mubr.f32.gmra.mrb[2].mxu1 %v8038_v30  ;;  %v472_v22 = vld [vmem:[#allocation6 + $0x5c8] sm:$0xff] }
 0x1b4   :  { %6549 = vmatpush1.bf16.msra.mxu0 %v6548_v26  ;;  %6581 = vmatpush1.bf16.msra.mxu1 %v6580_v27  ;;  %v6600_v26 = vpack.c.bf16 %v449_v20, %v437_v19  ;;  %v459_v27 = vld [vmem:[#allocation6 + $0x560] sm:$0xff]  ;;  %v6570_v29 = vpack.c.bf16 %v472_v22, %v460_v21  ;;  %v381_v19 = vld [vmem:[#allocation6 + $0x2f0] sm:$0xff]  ;;  %v392_v20 = vld [vmem:[#allocation6 + $0x348] sm:$0xff] }
 0x1b5   :  { %6551 = vmatprep.subr.bf16.mxu0 %v6550_v31  ;;  %6583 = vmatprep.subr.bf16.mxu1 %v6582_v32  ;;  %v6602_v31 = vpack.c.bf16 %v474_v24, %v462_v23  ;;  %v461_v32 = vld [vmem:[#allocation6 + $0x570] sm:$0xff]  ;;  %v6572_v38 = vpack.c.bf16 %v471_v28, %v459_v27  ;;  %v404_v21 = vld [vmem:[#allocation6 + $0x3a8] sm:$0xff]  ;;  %v394_v22 = vld [vmem:[#allocation6 + $0x358] sm:$0xff] }
 0x1b6   :  { %761 = vmatprep.mubr.f32.mxu0 %v7722_v44  ;;  %838 = vmatprep.mubr.f32.mxu1 %v7722_v44  ;;  %v406_v23 = vld [vmem:[#allocation6 + $0x3b8] sm:$0xff]  ;;  %v403_v27 = vld [vmem:[#allocation6 + $0x3a0] sm:$0xff]  ;;  %v6622_v28 = vpack.c.bf16 %v404_v21, %v392_v20 }
 0x1b8   :  { %6553 = vmatpush1.bf16.msra.mxu0 %v6552_v39  ;;  %6585 = vmatpush1.bf16.msra.mxu1 %v6584_v40  ;;  %v6604_v39 = vpack.c.bf16 %v473_v33, %v461_v32  ;;  %v295_v40 = vld [vmem:[#allocation6 + $0x40] sm:$0xff]  ;;  %v405_v32 = vld [vmem:[#allocation6 + $0x3b0] sm:$0xff]  ;;  %v416_v33 = vld [vmem:[#allocation6 + $0x408] sm:$0xff] }
 0x1b9   :  { %6555 = vmatprep.subr.bf16.mxu0 %v6554_v43  ;;  %6587 = vmatprep.subr.bf16.mxu1 %v6586_v45  ;;  %v307_v43 = vld [vmem:[#allocation6 + $0xa0] sm:$0xff]  ;;  %v297_v45 = vld [vmem:[#allocation6 + $0x50] sm:$0xff] }
 0x1ba   :  { %v6608_v51 = vpack.c.bf16 %v307_v43, %v295_v40  ;;  %v427_v40 = vld [vmem:[#allocation6 + $0x460] sm:$0xff]  ;;  %v417_v43 = vld [vmem:[#allocation6 + $0x410] sm:$0xff] }
 0x1bc   :  { %6557 = vmatpush1.bf16.msra.mxu0 %v6556_v52  ;;  %6589 = vmatpush1.bf16.msra.mxu1 %v6588_v53  ;;  %v6640_v52 = vpack.c.bf16 %v309_v46, %v297_v45  ;;  %v319_v53 = vld [vmem:[#allocation6 + $0x100] sm:$0xff]  ;;  %v429_v45 = vld [vmem:[#allocation6 + $0x470] sm:$0xff]  ;;  %v440_v46 = vld [vmem:[#allocation6 + $0x4c8] sm:$0xff] }
 0x1bd   :  { %6559 = vmatprep.subr.bf16.mxu0 %v6558_v56  ;;  %6591 = vmatprep.subr.bf16.mxu1 %v6590_v57  ;;  %v333_v56 = vld [vmem:[#allocation6 + $0x170] sm:$0xff]  ;;  %v344_v57 = vld [vmem:[#allocation6 + $0x1c8] sm:$0xff]  ;;  %v6612_v63 = vpack.c.bf16 %v331_v54, %v319_v53  ;;  %v451_v53 = vld [vmem:[#allocation6 + $0x520] sm:$0xff]  ;;  %v6630_v54 = vpack.c.bf16 %v452_v47, %v440_v46 }
 0x1be   :  { %v6614_v5 = vpack.c.bf16 %v356_v60, %v344_v57  ;;  %v453_v57 = vld [vmem:[#allocation6 + $0x530] sm:$0xff]  ;;  %v466_v60 = vld [vmem:[#allocation6 + $0x598] sm:$0xff]  ;;  %v480_v46 = vld [vmem:[#allocation7 + $0x8] sm:$0xf] }
 0x1c0   :  { %6561 = vmatpush1.bf16.msra.mxu0 %v6560_v2  ;;  %6593 = vmatpush1.bf16.msra.mxu1 %v6592_v3  ;;  %v6644_v2 = vpack.c.bf16 %v333_v56, %v321_v55  ;;  %v343_v3 = vld [vmem:[#allocation6 + $0x1c0] sm:$0xff]  ;;  %v6662_v55 = vpack.c.bf16 %v454_v49, %v442_v48  ;;  %v441_v56 = vld [vmem:[#allocation6 + $0x4d0] sm:$0xff] }
 0x1c1   :  { %6563 = vmatprep.subr.bf16.mxu0 %v6562_v6  ;;  %6595 = vmatprep.subr.bf16.mxu1 %v6594_v7  ;;  %v6646_v6 = vpack.c.bf16 %v358_v62, %v346_v61  ;;  %v345_v7 = vld [vmem:[#allocation6 + $0x1d0] sm:$0xff]  ;;  %v6616_v13 = vpack.c.bf16 %v355_v4, %v343_v3  ;;  %v478_v61 = vld [vmem:[#allocation6 + $0x5f8] sm:$0xff] }
 0x1c2   :  { %v6666_v4 = vpack.c.bf16 %v478_v61, %v466_v60 }
 0x1c4   :  { %6565 = vmatpush1.bf16.msra.mxu0 %v6564_v14  ;;  %6597 = vmatpush1.bf16.msra.mxu1 %v6596_v15  ;;  %v6648_v14 = vpack.c.bf16 %v357_v8, %v345_v7  ;;  %v367_v15 = vld [vmem:[#allocation6 + $0x280] sm:$0xff]  ;;  %v477_v7 = vld [vmem:[#allocation6 + $0x5f0] sm:$0xff] }
 0x1c5   :  { %6567 = vmatprep.subr.bf16.mxu0 %v6566_v17  ;;  %6599 = vmatprep.subr.bf16.mxu1 %v6598_v18  ;;  %v6650_v17 = vpack.c.bf16 %v382_v12, %v370_v11  ;;  %v369_v18 = vld [vmem:[#allocation6 + $0x290] sm:$0xff]  ;;  %v6620_v24 = vpack.c.bf16 %v379_v16, %v367_v15  ;;  %v8066_v11 = vshrl.u32 %v483_v10, 7 }
 0x1c7   :  { %v8069_v12 = vsub.s32 1, %v8066_v11  ;;  %v8079_v16 = vsub.s32 2, %v8066_v11  ;;  %v8117_v47 = vsub.s32 3, %v8066_v11 }
 0x1c8   :  { %6569 = vmatpush1.bf16.msra.mxu0 %v6568_v25  ;;  %6601 = vmatpush1.bf16.msra.mxu1 %v6600_v26  ;;  %v6652_v25 = vpack.c.bf16 %v381_v19, %v369_v18  ;;  %v391_v26 = vld [vmem:[#allocation6 + $0x340] sm:$0xff] }
 0x1c9   :  { %6571 = vmatprep.subr.bf16.mxu0 %v6570_v29  ;;  %6603 = vmatprep.subr.bf16.mxu1 %v6602_v31  ;;  %v6654_v29 = vpack.c.bf16 %v406_v23, %v394_v22  ;;  %v393_v31 = vld [vmem:[#allocation6 + $0x350] sm:$0xff]  ;;  %v6624_v37 = vpack.c.bf16 %v403_v27, %v391_v26  ;;  %v526_v48 = vrot.slane %v480_v46, %v8079_v16 }
 0x1ca   :  { %v522_v49 = vrot.slane %v480_v46, %v8069_v12 }
 0x1cc   :  { %6573 = vmatpush1.bf16.msra.mxu0 %v6572_v38  ;;  %6605 = vmatpush1.bf16.msra.mxu1 %v6604_v39  ;;  %v6656_v38 = vpack.c.bf16 %v405_v32, %v393_v31  ;;  %v415_v39 = vld [vmem:[#allocation6 + $0x400] sm:$0xff] }
 0x1cd   :  { %6607 = vmatprep.subr.bf16.mxu0 %v6606_v41  ;;  %6639 = vmatprep.subr.bf16.mxu1 %v6638_v42  ;;  %v6626_v41 = vpack.c.bf16 %v428_v34, %v416_v33  ;;  %v6658_v42 = vpack.c.bf16 %v430_v36, %v418_v35  ;;  %v6628_v50 = vpack.c.bf16 %v427_v40, %v415_v39  ;;  %v505_v33 = vsub.s32 5, %v8066_v11 }
 0x1cf   :  { %762 = vmatmul.mubr.f32.vlgmr.msra.gmra.mrb[4].mxu0 %v8034_v1  ;;  %839 = vmatmul.mubr.f32.vlgmr.msra.gmra.mrb[4].mxu1 %v8034_v1 }
 0x1d0   :  { %6609 = vmatpush1.bf16.msra.mxu0 %v6608_v51  ;;  %6641 = vmatpush1.bf16.msra.mxu1 %v6640_v52  ;;  %v6660_v51 = vpack.c.bf16 %v429_v45, %v417_v43  ;;  %v439_v52 = vld [vmem:[#allocation6 + $0x4c0] sm:$0xff] }
 0x1d1   :  { %767 = vmatprep.mubr.f32.mxu0 %v7722_v44  ;;  %844 = vmatprep.mubr.f32.mxu1 %v7722_v44  ;;  %v6632_v62 = vpack.c.bf16 %v451_v53, %v439_v52 }
 0x1d2   :  { %6611 = vmatprep.subr.bf16.mxu0 %v6610_v58  ;;  %6643 = vmatprep.subr.bf16.mxu1 %v6642_v59  ;;  %v464_v58 = vld [vmem:[#allocation6 + $0x588] sm:$0xff] }
 0x1d3   :  { %768 = vmatmul.mubr.f32.gmra.mrb[6].mxu0 %v8038_v30  ;;  %845 = vmatmul.mubr.f32.gmra.mrb[6].mxu1 %v8038_v30  ;;  %v476_v59 = vld [vmem:[#allocation6 + $0x5e8] sm:$0xff] }
 0x1d4   :  { %6613 = vmatpush1.bf16.msra.mxu0 %v6612_v63  ;;  %6645 = vmatpush1.bf16.msra.mxu1 %v6644_v2  ;;  %v6664_v63 = vpack.c.bf16 %v453_v57, %v441_v56  ;;  %v463_v2 = vld [vmem:[#allocation6 + $0x580] sm:$0xff]  ;;  %v6634_v3 = vpack.c.bf16 %v476_v59, %v464_v58 }
 0x1d5   :  { %6615 = vmatprep.subr.bf16.mxu0 %v6614_v5  ;;  %6647 = vmatprep.subr.bf16.mxu1 %v6646_v6  ;;  %v475_v5 = vld [vmem:[#allocation6 + $0x5e0] sm:$0xff]  ;;  %v465_v6 = vld [vmem:[#allocation6 + $0x590] sm:$0xff] }
 0x1d6   :  { %915 = vmatprep.mubr.f32.mxu0 %v7722_v44  ;;  %992 = vmatprep.mubr.f32.mxu1 %v7722_v44  ;;  %v6636_v8 = vpack.c.bf16 %v475_v5, %v463_v2  ;;  %v6668_v9 = vpack.c.bf16 %v477_v7, %v465_v6  ;;  %v8145_v5 = vld [vmem:[%s8553_s1] sm:$0xff] }
 0x1d8   :  { %6617 = vmatpush1.bf16.msra.mxu0 %v6616_v13  ;;  %6649 = vmatpush1.bf16.msra.mxu1 %v6648_v14  ;;  %v8071_v13 = vld [vmem:[#allocation7] sm:$0xff]  ;;  %v8074_v14 = vsub.s32 0, %v8066_v11 }
 0x1d9   :  { %6619 = vmatprep.subr.bf16.mxu0 %v6618_v0  ;;  %6651 = vmatprep.subr.bf16.mxu1 %v6650_v17  ;;  %v490_v15 = vrot.slane %v8071_v13, %v8069_v12  ;;  %v494_v22 = vrot.slane %v8071_v13, %v8079_v16  ;;  %v506_v34 = vrot.slane %v8071_v13, %v505_v33 }
 0x1da   :  { %v486_v18 = vrot.slane %v8071_v13, %v8074_v14  ;;  %v8131_v58 = vrot.slane %v480_v46, %v8074_v14 }
 0x1dc   :  { %6621 = vmatpush1.bf16.msra.mxu0 %v6620_v24  ;;  %6653 = vmatpush1.bf16.msra.mxu1 %v6652_v25 }
 0x1dd   :  { %6623 = vmatprep.subr.bf16.mxu0 %v6622_v28  ;;  %6655 = vmatprep.subr.bf16.mxu1 %v6654_v29 }
 0x1e0   :  { %6625 = vmatpush1.bf16.msra.mxu0 %v6624_v37  ;;  %6657 = vmatpush1.bf16.msra.mxu1 %v6656_v38 }
 0x1e1   :  { %6627 = vmatprep.subr.bf16.mxu0 %v6626_v41  ;;  %6659 = vmatprep.subr.bf16.mxu1 %v6658_v42 }
 0x1e4   :  { %6629 = vmatpush1.bf16.msra.mxu0 %v6628_v50  ;;  %6661 = vmatpush1.bf16.msra.mxu1 %v6660_v51  ;;  %v530_v50 = vrot.slane %v480_v46, %v8117_v47 }
 0x1e5   :  { %6631 = vmatprep.subr.bf16.mxu0 %v6630_v54  ;;  %6663 = vmatprep.subr.bf16.mxu1 %v6662_v55 }
 0x1e8   :  { %6633 = vmatpush1.bf16.msra.mxu0 %v6632_v62  ;;  %6665 = vmatpush1.bf16.msra.mxu1 %v6664_v63 }
 0x1e9   :  { %6635 = vmatprep.subr.bf16.mxu0 %v6634_v3  ;;  %6667 = vmatprep.subr.bf16.mxu1 %v6666_v4 }
 0x1ec   :  { %6637 = vmatpush1.bf16.msra.mxu0 %v6636_v8  ;;  %6669 = vmatpush1.bf16.msra.mxu1 %v6668_v9  ;;  %v8151_v9 = vld [vmem:[%s8553_s1 + $0x8] sm:$0xff] }
 0x1ed   :  { %5898 = vmatprep.subr.mxu1 %v7722_v44  ;;  %5928 = vmatprep.subr.mxu0 %v7722_v44 }
 0x1ef   :  { %916 = vmatmul.mubr.f32.vlgmr.msra.gmra.mrb[8].mxu0 %v8034_v1  ;;  %993 = vmatmul.mubr.f32.vlgmr.msra.gmra.mrb[8].mxu1 %v8034_v1 }
 0x1f0   :  { %921 = vmatprep.mubr.f32.mxu0 %v7722_v44  ;;  %998 = vmatprep.mubr.f32.mxu1 %v7722_v44 }
 0x1f3   :  { %922 = vmatmul.mubr.f32.gmra.mrb[10].mxu0 %v8038_v30  ;;  %999 = vmatmul.mubr.f32.gmra.mrb[10].mxu1 %v8038_v30 }
 0x1f4   :  { %5900 = vmatprep.mubr.msk.f32.mxu1 %vm7723_vm0, %v7722_v44  ;;  %5930 = vmatprep.mubr.msk.f32.mxu0 %vm7723_vm0, %v7722_v44 }
 0x282   :  { %v609_v0 = vpop.f32.mrb[0].mxu0  ;;  %v686_v17 = vpop.f32.mrb[0].mxu1 }
 0x283   :  { %v611_v19 = vpop.f32.mrb[1].mxu0  ;;  %v8083_v20 = vpop.f32.mrb[1].mxu1  ;;  %v610_v25 = vadd.f32 %v609_v0, %v486_v18  ;;  %v687_v32 = vadd.f32 %v686_v17, %v494_v22 }
 0x284   :  { %v612_v21 = vadd.f32 %v611_v19, %v490_v15 }
 0x286   :  { %v615_v23 = vpop.f32.mrb[2].mxu0  ;;  %v692_v24 = vpop.f32.mrb[2].mxu1  ;;  %5899 = vmatpush3.xpose.msra.mxu1 %v612_v21 }
 0x287   :  { %v8087_v26 = vadd.f32 %v692_v24, %v494_v22  ;;  %v617_v27 = vpop.f32.mrb[3].mxu0  ;;  %v8089_v28 = vpop.f32.mrb[3].mxu1  ;;  %5903 = vmatprep.subr.mxu1 %v7722_v44  ;;  %v616_v31 = vadd.f32 %v615_v23, %v486_v18 }
 0x288   :  { %v618_v29 = vadd.f32 %v617_v27, %v490_v15 }
 0x289   :  { %5901 = vmatmul.mubr.f32.vlgmr.msra.gmra.mrb[12].mxu1 %v610_v25 }
 0x28a   :  { %5904 = vmatpush3.xpose.msra.mxu1 %v618_v29  ;;  %5905 = vmatprep.mubr.msk.f32.mxu1 %vm7723_vm0, %v7722_v44 }
 0x28b   :  { %5908 = vmatprep.subr.mxu1 %v7722_v44 }
 0x28d   :  { %5906 = vmatmul.mubr.f32.vlgmr.msra.gmra.mrb[14].mxu1 %v616_v31 }
 0x28e   :  { %5909 = vmatpush3.msra.mxu1 %v687_v32  ;;  %5910 = vmatprep.mubr.msk.f32.mxu1 %vm7723_vm0, %v7722_v44 }
 0x28f   :  { %5913 = vmatprep.subr.mxu1 %v7722_v44 }
 0x2a2   :  { %v8102_v35 = vpop.f32.mrb[4].mxu0  ;;  %v8104_v36 = vpop.f32.mrb[4].mxu1 }
 0x2a3   :  { %v765_v37 = vpop.f32.mrb[5].mxu0  ;;  %v8106_v38 = vpop.f32.mrb[5].mxu1 }
 0x2a4   :  { %v766_v39 = vadd.f32 %v765_v37, %v506_v34 }
 0x2a6   :  { %v8108_v40 = vpop.f32.mrb[6].mxu0  ;;  %v8110_v41 = vpop.f32.mrb[6].mxu1  ;;  %5929 = vmatpush3.msra.mxu0 %v766_v39 }
 0x2a7   :  { %v771_v42 = vpop.f32.mrb[7].mxu0  ;;  %v8112_v43 = vpop.f32.mrb[7].mxu1 }
 0x2a8   :  { %v8114_v45 = vadd.f32 %v771_v42, %v506_v34  ;;  %v501_v42 = vsub.s32 4, %v8066_v11 }
 0x2c2   :  { %v8122_v51 = vpop.f32.mrb[8].mxu0  ;;  %v994_v52 = vpop.f32.mrb[8].mxu1 }
 0x2c3   :  { %v8124_v53 = vadd.f32 %v994_v52, %v526_v48  ;;  %v919_v54 = vpop.f32.mrb[9].mxu0  ;;  %v996_v55 = vpop.f32.mrb[9].mxu1  ;;  %v498_v52 = vrot.slane %v8071_v13, %v8117_v47 }
 0x2c4   :  { %v8126_v56 = vadd.f32 %v919_v54, %v522_v49  ;;  %v8128_v57 = vadd.f32 %v996_v55, %v530_v50 }
 0x2c5   :  { %v689_v54 = vadd.f32 %v8083_v20, %v498_v52 }
 0x2c6   :  { %v923_v59 = vpop.f32.mrb[10].mxu0  ;;  %v1000_v60 = vpop.f32.mrb[10].mxu1 }
 0x2c7   :  { %v8134_v61 = vadd.f32 %v923_v59, %v8131_v58  ;;  %v8136_v62 = vadd.f32 %v1000_v60, %v526_v48  ;;  %v925_v63 = vpop.f32.mrb[11].mxu0  ;;  %v1002_v2 = vpop.f32.mrb[11].mxu1  ;;  %v695_v59 = vadd.f32 %v8089_v28, %v498_v52 }
 0x2c8   :  { %v8138_v3 = vadd.f32 %v925_v63, %v522_v49  ;;  %v8140_v4 = vadd.f32 %v1002_v2, %v530_v50  ;;  %v502_v49 = vrot.slane %v8071_v13, %v501_v42 }
 0x2ca   :  { %v770_v55 = vadd.f32 %v8108_v40, %v502_v49 }
 0x35c   :  { %v1071_v6 = vpop.f32.mrb[12].mxu1 }
 0x35d   :  { %v1072_v7 = vadd.f32 %v1071_v6, %v8145_v5  ;;  %v5902_v8 = vpop.f32.mrb[13].mxu1 }
 0x35f   :  { %v1146_v10 = vsel %vm1145_vm1, %v1072_v7, -inf }
 0x360   :  { %v1141_v15 = vpop.f32.mrb[14].mxu1  ;;  %1147 = vmax.xlane.f32.xlu0 %v1146_v10 }
 0x361   :  { %v1142_v0 = vadd.f32 %v1141_v15, %v8151_v9  ;;  %v5907_v17 = vpop.f32.mrb[15].mxu1 }
 0x363   :  { %v1149_v18 = vsel %vm1145_vm1, %v1142_v0, -inf }
 0x364   :  { %1150 = vmax.xlane.f32.xlu1 %v1149_v18 }
 0x3ed   :  { %v1148_v19 = vpop.xlane.xlu0 %1147 }
 0x3ee   :  { %v1152_v21 = vsub.f32 %v1072_v7, %v1148_v19  ;;  %v513_v19 = vsub.s32 7, %v8066_v11 }
 0x3f0   :  { %v1154_v22 = vmul.f32 1.442695, %v1152_v21  ;;  %v509_v21 = vsub.s32 6, %v8066_v11 }
 0x3f1   :  { %v1151_v23 = vpop.xlane.xlu1 %1150 }
 0x3f2   :  { %7286 = vpow2.f32 %v1154_v22  ;;  %v1153_v24 = vsub.f32 %v1142_v0, %v1151_v23  ;;  %v514_v22 = vrot.slane %v8071_v13, %v513_v19 }
 0x3f4   :  { %v1156_v25 = vmul.f32 1.442695, %v1153_v24  ;;  %v510_v24 = vrot.slane %v8071_v13, %v509_v21 }
 0x3f6   :  { %7288 = vpow2.f32 %v1156_v25  ;;  %v847_v13 = vadd.f32 %v8110_v41, %v510_v24 }
 0x3fc   :  { %v7287_v27 = vpop.eup %7286 }
 0x3fd   :  { %v1158_v29 = vsel %vm1145_vm1, %v7287_v27, 0.0 }
 0x3fe   :  { %1159 = vadd.xlane.f32.xlu0 %v1158_v29  ;;  %v841_v29 = vadd.f32 %v8104_v36, %v510_v24  ;;  %v1642_v24 = vld [vmem:[#allocation9 + $0x98] sm:$0xff] }
 0x400   :  { %v7289_v31 = vpop.eup %7288 }
 0x401   :  { %v1161_v32 = vsel %vm1145_vm1, %v7289_v31, 0.0 }
 0x402   :  { %1162 = vadd.xlane.f32.xlu1 %v1161_v32 }
 0x48b   :  { %v1160_v34 = vpop.xlane.xlu0 %1159 }
 0x48c   :  { %7290 = vrcp.f32 %v1160_v34 }
 0x48f   :  { %v1163_v37 = vpop.xlane.xlu1 %1162 }
 0x490   :  { %7292 = vrcp.f32 %v1163_v37 }
 0x496   :  { %v7291_v39 = vpop.eup %7290 }
 0x497   :  { %v1166_v46 = vmul.f32 %v7291_v39, %v7287_v27  ;;  %v843_v27 = vadd.f32 %v8106_v38, %v514_v22  ;;  %v918_v38 = vadd.f32 %v8122_v51, %v8131_v58 }
 0x499   :  { %5911 = vmatmul.mubr.msk.f32.vlgmr.msra.gmra.mrb[16].mxu1 %vm1145_vm1, %v1166_v46 }
 0x49a   :  { %v7293_v48 = vpop.eup %7292  ;;  %5914 = vmatpush3.msra.mxu1 %v8087_v26  ;;  %5915 = vmatprep.mubr.msk.f32.mxu1 %vm7723_vm0, %v7722_v44  ;;  %v764_v26 = vadd.f32 %v8102_v35, %v502_v49 }
 0x49b   :  { %v1167_v50 = vmul.f32 %v7293_v48, %v7289_v31  ;;  %5918 = vmatprep.subr.mxu1 %v7722_v44  ;;  %v849_v31 = vadd.f32 %v8112_v43, %v514_v22 }
 0x49d   :  { %5916 = vmatmul.mubr.msk.f32.vlgmr.msra.gmra.mrb[18].mxu1 %vm1145_vm1, %v1167_v50 }
 0x49e   :  { %5920 = vmatprep.mubr.msk.f32.mxu1 %vm7723_vm0, %v7722_v44 }
 0x4a1   :  { %5919 = vmatpush3.xpose.msra.mxu1 %v764_v26 }
 0x4a2   :  { %5923 = vmatprep.subr.mxu1 %v7722_v44 }
 0x4a4   :  { %5921 = vmatmul.mubr.f32.vlgmr.msra.gmra.mrb[20].mxu1 %v689_v54 }
 0x4a5   :  { %5924 = vmatpush3.xpose.msra.mxu1 %v770_v55  ;;  %5925 = vmatprep.mubr.msk.f32.mxu1 %vm7723_vm0, %v7722_v44 }
 0x4a6   :  { %5933 = vmatprep.subr.mxu1 %v7722_v44 }
 0x4a8   :  { %5926 = vmatmul.mubr.f32.vlgmr.msra.gmra.mrb[22].mxu1 %v695_v59 }
 0x4a9   :  { %5934 = vmatpush3.msra.mxu1 %v8114_v45  ;;  %5935 = vmatprep.mubr.msk.f32.mxu1 %vm7723_vm0, %v7722_v44 }
 0x4aa   :  { %6008 = vmatprep.subr.mxu1 %v7722_v44 }
 0x56c   :  { %v8184_v20 = vpop.f32.mrb[16].mxu1 }
 0x56d   :  { %v5912_v35 = vpop.f32.mrb[17].mxu1 }
 0x570   :  { %v8186_v40 = vpop.f32.mrb[18].mxu1 }
 0x571   :  { %v5917_v60 = vpop.f32.mrb[19].mxu1 }
 0x577   :  { %v1396_v63 = vpop.f32.mrb[20].mxu1 }
 0x578   :  { %v5922_v2 = vpop.f32.mrb[21].mxu1  ;;  %v1397_v59 = vadd.f32 %v1396_v63, %v8145_v5 }
 0x57a   :  { %v1470_v2 = vsel %vm1145_vm1, %v1397_v59, -inf }
 0x57b   :  { %v1466_v6 = vpop.f32.mrb[22].mxu1 }
 0x57c   :  { %v1467_v28 = vadd.f32 %v1466_v6, %v8151_v9  ;;  %v5927_v7 = vpop.f32.mrb[23].mxu1 }
 0x57e   :  { %v1473_v8 = vsel %vm1145_vm1, %v1467_v28, -inf }
 0x57f   :  { %1474 = vmax.xlane.f32.xlu0 %v1473_v8 }
 0x60c   :  { %v1475_v45 = vpop.xlane.xlu0 %1474 }
 0x60d   :  { %v1477_v10 = vsub.f32 %v1467_v28, %v1475_v45 }
 0x60f   :  { %v1480_v15 = vmul.f32 1.442695, %v1477_v10 }
 0x611   :  { %7294 = vpow2.f32 %v1480_v15 }
 0x61b   :  { %v7295_v0 = vpop.eup %7294 }
 0x61c   :  { %v1485_v17 = vsel %vm1145_vm1, %v7295_v0, 0.0 }
 0x61d   :  { %1486 = vadd.xlane.f32.xlu1 %v1485_v17 }
 0x6aa   :  { %v1487_v18 = vpop.xlane.xlu1 %1486 }
 0x6ab   :  { %7296 = vrcp.f32 %v1487_v18 }
 0x6b5   :  { %v7297_v23 = vpop.eup %7296 }
 0x6b6   :  { %v1491_v25 = vmul.f32 %v7297_v23, %v7295_v0 }
 0x6b8   :  { %5936 = vmatmul.mubr.msk.f32.vlgmr.msra.gmra.mrb[24].mxu1 %vm1145_vm1, %v1491_v25 }
 0x6b9   :  { %6009 = vmatpush3.xpose.msra.mxu1 %v843_v27  ;;  %6010 = vmatprep.mubr.msk.f32.mxu1 %vm7723_vm0, %v7722_v44 }
 0x6ba   :  { %6013 = vmatprep.subr.mxu1 %v7722_v44 }
 0x6bc   :  { %6011 = vmatmul.mubr.f32.vlgmr.msra.gmra.mrb[26].mxu1 %v841_v29 }
 0x6bd   :  { %6014 = vmatpush3.xpose.msra.mxu1 %v849_v31  ;;  %6015 = vmatprep.mubr.msk.f32.mxu1 %vm7723_vm0, %v7722_v44  ;;  %v1643_v31 = vld [vmem:[#allocation9 + $0xa0] sm:$0xff] }
 0x6be   :  { %6018 = vmatprep.subr.mxu1 %v7722_v44 }
 0x6c0   :  { %6016 = vmatmul.mubr.f32.vlgmr.msra.gmra.mrb[28].mxu1 %v847_v13  ;;  %v1645_v13 = vld [vmem:[#allocation9 + $0xb0] sm:$0xff] }
 0x6c1   :  { %6019 = vmatpush3.msra.mxu1 %v918_v38  ;;  %6020 = vmatprep.mubr.msk.f32.mxu1 %vm7723_vm0, %v7722_v44  ;;  %v1646_v38 = vld [vmem:[#allocation9 + $0xb8] sm:$0xff] }
 0x6c2   :  { %6023 = vmatprep.subr.mxu1 %v7722_v44 }
 0x78b   :  { %v8215_v36 = vpop.f32.mrb[24].mxu1 }
 0x78c   :  { %v5937_v43 = vpop.f32.mrb[25].mxu1 }
 0x78d   :  { %v6682_v43 = vpack.c.bf16 %v1646_v38, %v1645_v13  ;;  %v1322_v13 = vld [vmem:[#allocation9 + $0x40] sm:$0xff]  ;;  %v1323_v38 = vld [vmem:[#allocation9 + $0x48] sm:$0xff] }
 0x78f   :  { %v1871_v32 = vpop.f32.mrb[26].mxu1 }
 0x790   :  { %v1872_v34 = vadd.f32 %v1871_v32, %v8145_v5  ;;  %v6012_v37 = vpop.f32.mrb[27].mxu1  ;;  %v1647_v32 = vld [vmem:[#allocation9 + $0xc0] sm:$0xff] }
 0x792   :  { %v1945_v41 = vsel %vm1145_vm1, %v1872_v34, -inf }
 0x793   :  { %1946 = vmax.xlane.f32.xlu0 %v1945_v41  ;;  %v1941_v39 = vpop.f32.mrb[28].mxu1  ;;  %v1649_v41 = vld [vmem:[#allocation9 + $0xd0] sm:$0xff] }
 0x794   :  { %v1942_v51 = vadd.f32 %v1941_v39, %v8151_v9  ;;  %v6017_v58 = vpop.f32.mrb[29].mxu1  ;;  %v1650_v39 = vld [vmem:[#allocation9 + $0xd8] sm:$0xff] }
 0x795   :  { %v1651_v58 = vld [vmem:[#allocation9 + $0xe0] sm:$0xff] }
 0x796   :  { %v1948_v46 = vsel %vm1145_vm1, %v1942_v51, -inf }
 0x797   :  { %1949 = vmax.xlane.f32.xlu1 %v1948_v46  ;;  %v1652_v46 = vld [vmem:[#allocation9 + $0xe8] sm:$0xff] }
 0x820   :  { %v1947_v48 = vpop.xlane.xlu0 %1946 }
 0x821   :  { %v1951_v49 = vsub.f32 %v1872_v34, %v1947_v48  ;;  %v1648_v34 = vld [vmem:[#allocation9 + $0xc8] sm:$0xff]  ;;  %v6694_v48 = vpack.c.bf16 %v1652_v46, %v1651_v58  ;;  %v1328_v46 = vld [vmem:[#allocation9 + $0x70] sm:$0xff] }
 0x822   :  { %v6686_v37 = vpack.c.bf16 %v1648_v34, %v1647_v32  ;;  %v1325_v34 = vld [vmem:[#allocation9 + $0x58] sm:$0xff] }
 0x823   :  { %v1953_v50 = vmul.f32 1.442695, %v1951_v49 }
 0x824   :  { %v1950_v52 = vpop.xlane.xlu1 %1949 }
 0x825   :  { %7298 = vpow2.f32 %v1953_v50  ;;  %v1952_v26 = vsub.f32 %v1942_v51, %v1950_v52  ;;  %v6690_v51 = vpack.c.bf16 %v1650_v39, %v1649_v41  ;;  %v1326_v39 = vld [vmem:[#allocation9 + $0x60] sm:$0xff] }
 0x827   :  { %v1955_v54 = vmul.f32 1.442695, %v1952_v26 }
 0x829   :  { %7300 = vpow2.f32 %v1955_v54 }
 0x82f   :  { %v7299_v55 = vpop.eup %7298 }
 0x830   :  { %v1957_v35 = vsel %vm1145_vm1, %v7299_v55, 0.0 }
 0x831   :  { %1958 = vadd.xlane.f32.xlu0 %v1957_v35 }
 0x833   :  { %v7301_v60 = vpop.eup %7300 }
 0x834   :  { %v1960_v6 = vsel %vm1145_vm1, %v7301_v60, 0.0 }
 0x835   :  { %1471 = vmax.xlane.f32.xlu0 %v1470_v2  ;;  %1961 = vadd.xlane.f32.xlu1 %v1960_v6 }
 0x8be   :  { %v1959_v28 = vpop.xlane.xlu0 %1958 }
 0x8bf   :  { %7302 = vrcp.f32 %v1959_v28 }
 0x8c2   :  { %v1472_v7 = vpop.xlane.xlu0 %1471  ;;  %v1962_v8 = vpop.xlane.xlu1 %1961 }
 0x8c3   :  { %v1476_v45 = vsub.f32 %v1397_v59, %v1472_v7  ;;  %7304 = vrcp.f32 %v1962_v8  ;;  %v1653_v7 = vld [vmem:[#allocation9 + $0xf0] sm:$0xff]  ;;  %v1654_v8 = vld [vmem:[#allocation9 + $0xf8] sm:$0xff] }
 0x8c5   :  { %v1478_v10 = vmul.f32 1.442695, %v1476_v45  ;;  %v6698_v45 = vpack.c.bf16 %v1654_v8, %v1653_v7  ;;  %v2120_v7 = vld [vmem:[#allocation9 + $0x130] sm:$0xff]  ;;  %v2121_v8 = vld [vmem:[#allocation9 + $0x138] sm:$0xff] }
 0x8c7   :  { %7306 = vpow2.f32 %v1478_v10  ;;  %v1314_v10 = vld [vmem:[#allocation9] sm:$0xff] }
 0x8c9   :  { %v7303_v15 = vpop.eup %7302 }
 0x8ca   :  { %v1965_v63 = vmul.f32 %v7303_v15, %v7299_v55  ;;  %v1315_v15 = vld [vmem:[#allocation9 + $0x8] sm:$0xff] }
 0x8cc   :  { %6021 = vmatmul.mubr.msk.f32.vlgmr.msra.gmra.mrb[30].mxu1 %vm1145_vm1, %v1965_v63  ;;  %v6702_v63 = vpack.c.bf16 %v1315_v15, %v1314_v10  ;;  %v2122_v10 = vld [vmem:[#allocation9 + $0x140] sm:$0xff]  ;;  %v2123_v15 = vld [vmem:[#allocation9 + $0x148] sm:$0xff] }
 0x8cd   :  { %v7305_v0 = vpop.eup %7304  ;;  %6024 = vmatpush3.msra.mxu1 %v8134_v61  ;;  %6025 = vmatprep.mubr.msk.f32.mxu1 %vm7723_vm0, %v7722_v44  ;;  %v1640_v61 = vld [vmem:[#allocation9 + $0x88] sm:$0xff] }
 0x8ce   :  { %v1966_v17 = vmul.f32 %v7305_v0, %v7301_v60  ;;  %6063 = vmatprep.subr.mxu1 %v7722_v44 }
 0x8d0   :  { %6026 = vmatmul.mubr.msk.f32.vlgmr.msra.gmra.mrb[32].mxu1 %vm1145_vm1, %v1966_v17 }
 0x8d1   :  { %v7307_v18 = vpop.eup %7306  ;;  %6065 = vmatprep.mubr.msk.f32.mxu1 %vm7723_vm0, %v7722_v44 }
 0x8d2   :  { %v1482_v22 = vsel %vm1145_vm1, %v7307_v18, 0.0 }
 0x8d3   :  { %1483 = vadd.xlane.f32.xlu1 %v1482_v22  ;;  %v1317_v22 = vld [vmem:[#allocation9 + $0x18] sm:$0xff] }
 0x8d4   :  { %6064 = vmatpush3.xpose.msra.mxu1 %v8124_v53  ;;  %v1639_v53 = vld [vmem:[#allocation9 + $0x80] sm:$0xff] }
 0x8d5   :  { %6068 = vmatprep.subr.mxu1 %v7722_v44  ;;  %v6670_v23 = vpack.c.bf16 %v1640_v61, %v1639_v53 }
 0x8d7   :  { %6066 = vmatmul.mubr.f32.vlgmr.msra.gmra.mrb[34].mxu1 %v8126_v56  ;;  %6671 = vmatprep.subr.bf16.mxu0 %v6670_v23 }
 0x8d8   :  { %6069 = vmatpush3.xpose.msra.mxu1 %v8136_v62  ;;  %6070 = vmatprep.mubr.msk.f32.mxu1 %vm7723_vm0, %v7722_v44  ;;  %v1641_v62 = vld [vmem:[#allocation9 + $0x90] sm:$0xff] }
 0x8d9   :  { %6073 = vmatprep.subr.mxu1 %v7722_v44  ;;  %v6674_v29 = vpack.c.bf16 %v1642_v24, %v1641_v62  ;;  %v1318_v24 = vld [vmem:[#allocation9 + $0x20] sm:$0xff] }
 0x8db   :  { %6071 = vmatmul.mubr.f32.vlgmr.msra.gmra.mrb[36].mxu1 %v8138_v3  ;;  %v1644_v3 = vld [vmem:[#allocation9 + $0xa8] sm:$0xff] }
 0x8dc   :  { %6074 = vmatpush3.msra.mxu1 %v8128_v57  ;;  %6075 = vmatprep.mubr.msk.f32.mxu1 %vm7723_vm0, %v7722_v44  ;;  %v6678_v57 = vpack.c.bf16 %v1644_v3, %v1643_v31  ;;  %v1321_v31 = vld [vmem:[#allocation9 + $0x38] sm:$0xff] }
 0x8dd   :  { %6078 = vmatprep.subr.mxu1 %v7722_v44 }
 0x960   :  { %v1484_v56 = vpop.xlane.xlu1 %1483 }
 0x961   :  { %7308 = vrcp.f32 %v1484_v56 }
 0x96b   :  { %v7309_v25 = vpop.eup %7308 }
 0x96c   :  { %v1490_v27 = vmul.f32 %v7309_v25, %v7307_v18  ;;  %v1316_v18 = vld [vmem:[#allocation9 + $0x10] sm:$0xff]  ;;  %v1319_v25 = vld [vmem:[#allocation9 + $0x28] sm:$0xff] }
 0x96e   :  { %5931 = vmatmul.mubr.msk.f32.vlgmr.msra.gmra.mrb[12].mxu0 %vm1145_vm1, %v1490_v27  ;;  %v6710_v27 = vpack.c.bf16 %v1319_v25, %v1318_v24  ;;  %v2519_v24 = vld [vmem:[#allocation9 + $0x198] sm:$0xff] }
 0x96f   :  { %6673 = vmatpush3.bf16.msra.mxu0 %v6670_v23  ;;  %v6706_v23 = vpack.c.bf16 %v1317_v22, %v1316_v18  ;;  %v2127_v18 = vld [vmem:[#allocation9 + $0x168] sm:$0xff]  ;;  %v2128_v22 = vld [vmem:[#allocation9 + $0x170] sm:$0xff] }
 0x970   :  { %6675 = vmatprep.subr.bf16.mxu0 %v6674_v29 }
 0x973   :  { %6677 = vmatpush3.bf16.msra.mxu0 %v6674_v29  ;;  %v1320_v29 = vld [vmem:[#allocation9 + $0x30] sm:$0xff] }
 0x974   :  { %6679 = vmatprep.subr.bf16.mxu0 %v6678_v57  ;;  %v6714_v3 = vpack.c.bf16 %v1321_v31, %v1320_v29  ;;  %v2521_v29 = vld [vmem:[#allocation9 + $0x1a8] sm:$0xff] }
 0x977   :  { %6681 = vmatpush3.bf16.msra.mxu0 %v6678_v57 }
 0x978   :  { %6683 = vmatprep.subr.bf16.mxu0 %v6682_v43 }
 0x97b   :  { %6685 = vmatpush3.bf16.msra.mxu0 %v6682_v43 }
 0x97c   :  { %6687 = vmatprep.subr.bf16.mxu0 %v6686_v37 }
 0x97f   :  { %6689 = vmatpush3.bf16.msra.mxu0 %v6686_v37 }
 0x980   :  { %6691 = vmatprep.subr.bf16.mxu0 %v6690_v51 }
 0x983   :  { %6693 = vmatpush3.bf16.msra.mxu0 %v6690_v51  ;;  %v1327_v51 = vld [vmem:[#allocation9 + $0x68] sm:$0xff] }
 0x984   :  { %6695 = vmatprep.subr.bf16.mxu0 %v6694_v48  ;;  %v6726_v58 = vpack.c.bf16 %v1327_v51, %v1326_v39  ;;  %v2528_v39 = vld [vmem:[#allocation9 + $0x1e0] sm:$0xff] }
 0x987   :  { %6697 = vmatpush3.bf16.msra.mxu0 %v6694_v48  ;;  %v1329_v48 = vld [vmem:[#allocation9 + $0x78] sm:$0xff] }
 0x988   :  { %6699 = vmatprep.subr.bf16.mxu0 %v6698_v45 }
 0x98b   :  { %6701 = vmatpush3.bf16.msra.mxu0 %v6698_v45  ;;  %v6746_v45 = vpack.c.bf16 %v2121_v8, %v2120_v7 }
 0x98c   :  { %6703 = vmatprep.subr.bf16.mxu0 %v6702_v63 }
 0x99f   :  { %v8247_v49 = vpop.f32.mrb[30].mxu1 }
 0x9a0   :  { %v6022_v50 = vpop.f32.mrb[31].mxu1 }
 0x9a1   :  { %v6730_v50 = vpack.c.bf16 %v1329_v48, %v1328_v46 }
 0x9a3   :  { %v8249_v52 = vpop.f32.mrb[32].mxu1 }
 0x9a4   :  { %v6027_v26 = vpop.f32.mrb[33].mxu1 }
 0x9a5   :  { %v2114_v26 = vld [vmem:[#allocation9 + $0x100] sm:$0xff] }
 0x9aa   :  { %v2273_v54 = vpop.f32.mrb[34].mxu1 }
 0x9ab   :  { %v2274_v55 = vadd.f32 %v2273_v54, %v8145_v5  ;;  %v6067_v59 = vpop.f32.mrb[35].mxu1  ;;  %v2115_v54 = vld [vmem:[#allocation9 + $0x108] sm:$0xff] }
 0x9ac   :  { %v2116_v59 = vld [vmem:[#allocation9 + $0x110] sm:$0xff] }
 0x9ad   :  { %v2347_v35 = vsel %vm1145_vm1, %v2274_v55, -inf }
 0x9ae   :  { %2348 = vmax.xlane.f32.xlu0 %v2347_v35  ;;  %v2343_v60 = vpop.f32.mrb[36].mxu1  ;;  %v2117_v35 = vld [vmem:[#allocation9 + $0x118] sm:$0xff] }
 0x9af   :  { %v2344_v2 = vadd.f32 %v2343_v60, %v8151_v9  ;;  %v6072_v6 = vpop.f32.mrb[37].mxu1  ;;  %v6738_v60 = vpack.c.bf16 %v2117_v35, %v2116_v59  ;;  %v2531_v59 = vld [vmem:[#allocation9 + $0x1f8] sm:$0xff] }
 0x9b0   :  { %v2119_v6 = vld [vmem:[#allocation9 + $0x128] sm:$0xff] }
 0x9b1   :  { %v2350_v28 = vsel %vm1145_vm1, %v2344_v2, -inf }
 0x9b2   :  { %2351 = vmax.xlane.f32.xlu1 %v2350_v28 }
 0xa3b   :  { %v2349_v5 = vpop.xlane.xlu0 %2348 }
 0xa3c   :  { %v2353_v0 = vsub.f32 %v2274_v55, %v2349_v5  ;;  %v6734_v55 = vpack.c.bf16 %v2115_v54, %v2114_v26  ;;  %v2124_v5 = vld [vmem:[#allocation9 + $0x150] sm:$0xff] }
 0xa3e   :  { %v2355_v17 = vmul.f32 1.442695, %v2353_v0  ;;  %v2125_v0 = vld [vmem:[#allocation9 + $0x158] sm:$0xff] }
 0xa3f   :  { %v2352_v53 = vpop.xlane.xlu1 %2351 }
 0xa40   :  { %7310 = vpow2.f32 %v2355_v17  ;;  %v2354_v9 = vsub.f32 %v2344_v2, %v2352_v53  ;;  %v2118_v2 = vld [vmem:[#allocation9 + $0x120] sm:$0xff]  ;;  %v2129_v53 = vld [vmem:[#allocation9 + $0x178] sm:$0xff] }
 0xa41   :  { %v1561_v61 = vpop.f32.mrb[12].mxu0  ;;  %v6742_v28 = vpack.c.bf16 %v2119_v6, %v2118_v2  ;;  %v2126_v17 = vld [vmem:[#allocation9 + $0x160] sm:$0xff] }
 0xa42   :  { %v2357_v56 = vmul.f32 1.442695, %v2354_v9  ;;  %v5932_v62 = vpop.f32.mrb[13].mxu0  ;;  %5970 = vmatprep.mubr.f32.mxu0 %v1561_v61  ;;  %v6762_v9 = vpack.c.bf16 %v2129_v53, %v2128_v22  ;;  %v2516_v61 = vld [vmem:[#allocation9 + $0x180] sm:$0xff]  ;;  %v2670_v53 = vld [vmem:[#allocation15 + $0x30] sm:$0xff] }
 0xa43   :  { %5971 = vmatmul.mubr.f32.vlgmr.msra.gmra.mrb[14].mxu0 %v8215_v36  ;;  %v6718_v36 = vpack.c.bf16 %v1323_v38, %v1322_v13  ;;  %v2518_v62 = vld [vmem:[#allocation9 + $0x190] sm:$0xff]  ;;  %v2523_v13 = vld [vmem:[#allocation9 + $0x1b8] sm:$0xff] }
 0xa44   :  { %7312 = vpow2.f32 %v2357_v56  ;;  %6705 = vmatpush3.bf16.msra.mxu0 %v6702_v63  ;;  %6005 = vmatprep.mubr.f32.mxu0 %v8184_v20  ;;  %v1324_v20 = vld [vmem:[#allocation9 + $0x50] sm:$0xff]  ;;  %v6750_v63 = vpack.c.bf16 %v2123_v15, %v2122_v10  ;;  %v6770_v25 = vpack.c.bf16 %v2519_v24, %v2518_v62 }
 0xa45   :  { %6707 = vmatprep.subr.bf16.mxu0 %v6706_v23  ;;  %v6722_v41 = vpack.c.bf16 %v1325_v34, %v1324_v20  ;;  %v2526_v34 = vld [vmem:[#allocation9 + $0x1d0] sm:$0xff] }
 0xa46   :  { %v2674_v62 = vld [vmem:[#allocation15 + $0x50] sm:$0xff] }
 0xa48   :  { %6709 = vmatpush3.bf16.msra.mxu0 %v6706_v23  ;;  %v2517_v23 = vld [vmem:[#allocation9 + $0x188] sm:$0xff] }
 0xa49   :  { %6711 = vmatprep.subr.bf16.mxu0 %v6710_v27  ;;  %v6766_v56 = vpack.c.bf16 %v2517_v23, %v2516_v61  ;;  %v2672_v23 = vld [vmem:[#allocation15 + $0x40] sm:$0xff] }
 0xa4a   :  { %v8257_v57 = vpop.eup %7310 }
 0xa4b   :  { %v2359_v43 = vsel %vm1145_vm1, %v8257_v57, 0.0 }
 0xa4c   :  { %6713 = vmatpush3.bf16.msra.mxu0 %v6710_v27  ;;  %2360 = vadd.xlane.f32.xlu0 %v2359_v43  ;;  %v2520_v27 = vld [vmem:[#allocation9 + $0x1a0] sm:$0xff] }
 0xa4d   :  { %6715 = vmatprep.subr.bf16.mxu0 %v6714_v3  ;;  %v6774_v31 = vpack.c.bf16 %v2521_v29, %v2520_v27  ;;  %v2524_v43 = vld [vmem:[#allocation9 + $0x1c0] sm:$0xff] }
 0xa4e   :  { %v8261_v32 = vpop.eup %7312  ;;  %v2676_v29 = vld [vmem:[#allocation15 + $0x60] sm:$0xff] }
 0xa4f   :  { %v2362_v37 = vsel %vm1145_vm1, %v8261_v32, 0.0 }
 0xa50   :  { %6717 = vmatpush3.bf16.msra.mxu0 %v6714_v3  ;;  %2363 = vadd.xlane.f32.xlu1 %v2362_v37  ;;  %v2522_v3 = vld [vmem:[#allocation9 + $0x1b0] sm:$0xff]  ;;  %v2527_v37 = vld [vmem:[#allocation9 + $0x1d8] sm:$0xff] }
 0xa51   :  { %6719 = vmatprep.subr.bf16.mxu0 %v6718_v36  ;;  %v6778_v38 = vpack.c.bf16 %v2523_v13, %v2522_v3  ;;  %v2678_v13 = vld [vmem:[#allocation15 + $0x70] sm:$0xff] }
 0xa54   :  { %6721 = vmatpush3.bf16.msra.mxu0 %v6718_v36  ;;  %v2525_v36 = vld [vmem:[#allocation9 + $0x1c8] sm:$0xff] }
 0xa55   :  { %6723 = vmatprep.subr.bf16.mxu0 %v6722_v41  ;;  %v6782_v20 = vpack.c.bf16 %v2525_v36, %v2524_v43  ;;  %v2780_v36 = vld [vmem:[#allocation18] sm:$0xff] }
 0xa58   :  { %6725 = vmatpush3.bf16.msra.mxu0 %v6722_v41  ;;  %v6786_v41 = vpack.c.bf16 %v2527_v37, %v2526_v34 }
 0xa59   :  { %6727 = vmatprep.subr.bf16.mxu0 %v6726_v58 }
 0xa5c   :  { %6729 = vmatpush3.bf16.msra.mxu0 %v6726_v58 }
 0xa5d   :  { %6731 = vmatprep.subr.bf16.mxu0 %v6730_v50 }
 0xa60   :  { %6733 = vmatpush3.bf16.msra.mxu0 %v6730_v50 }
 0xa61   :  { %6735 = vmatprep.subr.bf16.mxu0 %v6734_v55 }
 0xa63   :  { %6006 = vmatmul.mubr.f32.vlgmr.msra.gmra.mrb[14].mxu0 %v8186_v40  ;;  %v6754_v40 = vpack.c.bf16 %v2125_v0, %v2124_v5 }
 0xa64   :  { %6737 = vmatpush3.bf16.msra.mxu0 %v6734_v55  ;;  %6060 = vmatprep.mubr.f32.mxu0 %v8247_v49  ;;  %v6758_v49 = vpack.c.bf16 %v2127_v18, %v2126_v17  ;;  %v2530_v55 = vld [vmem:[#allocation9 + $0x1f0] sm:$0xff]  ;;  %v2667_v18 = vld [vmem:[#allocation15 + $0x18] sm:$0xff] }
 0xa65   :  { %6739 = vmatprep.subr.bf16.mxu0 %v6738_v60  ;;  %v6794_v35 = vpack.c.bf16 %v2531_v59, %v2530_v55  ;;  %v2666_v17 = vld [vmem:[#allocation15 + $0x10] sm:$0xff] }
 0xa68   :  { %6741 = vmatpush3.bf16.msra.mxu0 %v6738_v60 }
 0xa69   :  { %6743 = vmatprep.subr.bf16.mxu0 %v6742_v28 }
 0xa6c   :  { %6745 = vmatpush3.bf16.msra.mxu0 %v6742_v28  ;;  %v2665_v28 = vld [vmem:[#allocation15 + $0x8] sm:$0xff] }
 0xa6d   :  { %6747 = vmatprep.subr.bf16.mxu0 %v6746_v45 }
 0xa70   :  { %6749 = vmatpush3.bf16.msra.mxu0 %v6746_v45 }
 0xa71   :  { %6751 = vmatprep.subr.bf16.mxu0 %v6750_v63 }
 0xa74   :  { %6753 = vmatpush3.bf16.msra.mxu0 %v6750_v63 }
 0xa75   :  { %6755 = vmatprep.subr.bf16.mxu0 %v6754_v40 }
 0xa78   :  { %6757 = vmatpush3.bf16.msra.mxu0 %v6754_v40 }
 0xa79   :  { %6759 = vmatprep.subr.bf16.mxu0 %v6758_v49 }
 0xa7c   :  { %6761 = vmatpush3.bf16.msra.mxu0 %v6758_v49  ;;  %v6802_v49 = vpack.c.bf16 %v2667_v18, %v2666_v17  ;;  %v2785_v17 = vld [vmem:[#allocation18 + $0x28] sm:$0xff] }
 0xa7d   :  { %6763 = vmatprep.subr.bf16.mxu0 %v6762_v9 }
 0xa80   :  { %6765 = vmatpush3.bf16.msra.mxu0 %v6762_v9  ;;  %v2671_v9 = vld [vmem:[#allocation15 + $0x38] sm:$0xff] }
 0xa81   :  { %6767 = vmatprep.subr.bf16.mxu0 %v6766_v56  ;;  %v6810_v61 = vpack.c.bf16 %v2671_v9, %v2670_v53  ;;  %v2789_v53 = vld [vmem:[#allocation18 + $0x48] sm:$0xff] }
 0xa83   :  { %6061 = vmatmul.mubr.f32.vlgmr.msra.gmra.mrb[14].mxu0 %v8249_v52  ;;  %v2529_v52 = vld [vmem:[#allocation9 + $0x1e8] sm:$0xff] }
 0xa84   :  { %6769 = vmatpush3.bf16.msra.mxu0 %v6766_v56  ;;  %v6790_v51 = vpack.c.bf16 %v2529_v52, %v2528_v39  ;;  %v2673_v56 = vld [vmem:[#allocation15 + $0x48] sm:$0xff] }
 0xa85   :  { %6771 = vmatprep.subr.bf16.mxu0 %v6770_v25  ;;  %v6814_v24 = vpack.c.bf16 %v2673_v56, %v2672_v23  ;;  %v2791_v23 = vld [vmem:[#allocation18 + $0x58] sm:$0xff] }
 0xa88   :  { %6773 = vmatpush3.bf16.msra.mxu0 %v6770_v25  ;;  %v2675_v25 = vld [vmem:[#allocation15 + $0x58] sm:$0xff] }
 0xa89   :  { %6775 = vmatprep.subr.bf16.mxu0 %v6774_v31  ;;  %v6818_v27 = vpack.c.bf16 %v2675_v25, %v2674_v62  ;;  %v2792_v62 = vld [vmem:[#allocation18 + $0x60] sm:$0xff] }
 0xa8c   :  { %6777 = vmatpush3.bf16.msra.mxu0 %v6774_v31  ;;  %v2677_v31 = vld [vmem:[#allocation15 + $0x68] sm:$0xff] }
 0xa8d   :  { %6779 = vmatprep.subr.bf16.mxu0 %v6778_v38  ;;  %v6822_v3 = vpack.c.bf16 %v2677_v31, %v2676_v29  ;;  %v2795_v29 = vld [vmem:[#allocation18 + $0x78] sm:$0xff] }
 0xa90   :  { %6781 = vmatpush3.bf16.msra.mxu0 %v6778_v38  ;;  %v2679_v38 = vld [vmem:[#allocation15 + $0x78] sm:$0xff] }
 0xa91   :  { %6783 = vmatprep.subr.bf16.mxu0 %v6782_v20  ;;  %v6826_v43 = vpack.c.bf16 %v2679_v38, %v2678_v13 }
 0xa94   :  { %6785 = vmatpush3.bf16.msra.mxu0 %v6782_v20  ;;  %v2781_v20 = vld [vmem:[#allocation18 + $0x8] sm:$0xff] }
 0xa95   :  { %6787 = vmatprep.subr.bf16.mxu0 %v6786_v41  ;;  %v6830_v34 = vpack.c.bf16 %v2781_v20, %v2780_v36 }
 0xa98   :  { %6789 = vmatpush3.bf16.msra.mxu0 %v6786_v41 }
 0xa99   :  { %6791 = vmatprep.subr.bf16.mxu0 %v6790_v51 }
 0xa9c   :  { %6793 = vmatpush3.bf16.msra.mxu0 %v6790_v51 }
 0xa9d   :  { %6795 = vmatprep.subr.bf16.mxu0 %v6794_v35 }
 0xaa0   :  { %6797 = vmatpush3.bf16.msra.mxu0 %v6794_v35 }
 0xad9   :  { %v2361_v58 = vpop.xlane.xlu0 %2360 }
 0xada   :  { %7314 = vrcp.f32 %v2361_v58 }
 0xadd   :  { %v2364_v46 = vpop.xlane.xlu1 %2363 }
 0xade   :  { %7316 = vrcp.f32 %v2364_v46 }
 0xae4   :  { %v7315_v48 = vpop.eup %7314 }
 0xae5   :  { %v2367_v50 = vmul.f32 %v7315_v48, %v8257_v57 }
 0xae7   :  { %6076 = vmatmul.mubr.msk.f32.vlgmr.msra.gmra.mrb[38].mxu1 %vm1145_vm1, %v2367_v50 }
 0xae8   :  { %v7317_v26 = vpop.eup %7316  ;;  %6079 = vmatpush3.msra.mxu1 %v8140_v4  ;;  %6080 = vmatprep.mubr.msk.f32.mxu1 %vm7723_vm0, %v7722_v44  ;;  %v2664_v4 = vld [vmem:[#allocation15] sm:$0xff] }
 0xae9   :  { %v2368_v54 = vmul.f32 %v7317_v26, %v8261_v32  ;;  %v6798_v7 = vpack.c.bf16 %v2665_v28, %v2664_v4  ;;  %v5596_v32 = vld [vmem:[#allocation10] ss:$0 sm:$0xff] }
 0xaeb   :  { %6081 = vmatmul.mubr.msk.f32.vlgmr.msra.gmra.mrb[40].mxu1 %vm1145_vm1, %v2368_v54  ;;  %6799 = vmatprep.subr.bf16.mxu1 %v6798_v7 }
 0xaec   :  { %6801 = vmatpush3.bf16.msra.mxu1 %v6798_v7 }
 0xaed   :  { %6803 = vmatprep.subr.bf16.mxu1 %v6802_v49 }
 0xaf0   :  { %6805 = vmatpush3.bf16.msra.mxu1 %v6802_v49  ;;  %v2786_v49 = vld [vmem:[#allocation18 + $0x30] sm:$0xff] }
 0xbba   :  { %v2438_v60 = vpop.f32.mrb[38].mxu1 }
 0xbbb   :  { %v6077_v2 = vpop.f32.mrb[39].mxu1  ;;  %6115 = vmatprep.mubr.f32.mxu0 %v2438_v60 }
 0xbbe   :  { %v2511_v57 = vpop.f32.mrb[40].mxu1 }
 0xbbf   :  { %v6082_v6 = vpop.f32.mrb[41].mxu1  ;;  %6116 = vmatmul.mubr.f32.vlgmr.msra.gmra.mrb[14].mxu0 %v2511_v57 }
 0xbc0   :  { %3323 = vmatprep.mubr.f32.mxu0 %v7722_v44  ;;  %v5597_v6 = vld [vmem:[#allocation12] ss:$0 sm:$0xff] }
 0xc92   :  { %v6117_v8 = vpop.f32.mrb[14].mxu0 }
 0xc93   :  { %v2617_v45 = vadd.f32 %v6117_v8, %v5596_v32  ;;  %v2598_v10 = vpop.f32.mrb[15].mxu0 }
 0xc94   :  { %v2616_v15 = vadd.f32 %v5596_v32, %v2598_v10  ;;  %v5598_v32 = vld [vmem:[#allocation13] ss:$0 sm:$0xff] }
 0xc95   :  { %v8277_v63 = vadd.f32 %v2617_v45, %v8038_v30  ;;  %v2668_v30 = vld [vmem:[#allocation15 + $0x20] sm:$0xff] }
 0xc96   :  { %v8280_v5 = vadd.f32 %v2616_v15, %v8034_v1  ;;  %v2669_v1 = vld [vmem:[#allocation15 + $0x28] sm:$0xff] }
 0xc97   :  { %2624 = vadd.xlane.f32.xlu1 %v8277_v63  ;;  %v2629_v0 = vmul.f32 %v8277_v63, %v8277_v63  ;;  %v6806_v22 = vpack.c.bf16 %v2669_v1, %v2668_v30  ;;  %v2787_v30 = vld [vmem:[#allocation18 + $0x38] sm:$0xff] }
 0xc98   :  { %2622 = vadd.xlane.f32.xlu0 %v8280_v5  ;;  %v2628_v40 = vmul.f32 %v8280_v5, %v8280_v5  ;;  %v6842_v1 = vpack.c.bf16 %v2787_v30, %v2786_v49  ;;  %v2952_v49 = vld [vmem:[#allocation6 + $0x6d8] sm:$0xff] }
 0xc99   :  { %6807 = vmatprep.subr.bf16.mxu1 %v6806_v22  ;;  %v2964_v30 = vld [vmem:[#allocation6 + $0x738] sm:$0xff] }
 0xc9a   :  { %6809 = vmatpush3.bf16.msra.mxu1 %v6806_v22  ;;  %v2788_v22 = vld [vmem:[#allocation18 + $0x40] sm:$0xff] }
 0xc9b   :  { %2632 = vadd.xlane.f32.xlu1 %v2629_v0  ;;  %6811 = vmatprep.subr.bf16.mxu1 %v6810_v61  ;;  %v2783_v0 = vld [vmem:[#allocation18 + $0x18] sm:$0xff]  ;;  %v6846_v9 = vpack.c.bf16 %v2789_v53, %v2788_v22  ;;  %v6898_v22 = vpack.c.bf16 %v2964_v30, %v2952_v49  ;;  %v2949_v53 = vld [vmem:[#allocation6 + $0x6c0] sm:$0xff]  ;;  %v3046_v30 = vld [vmem:[#allocation6 + $0x9c8] sm:$0xff] }
 0xc9c   :  { %2630 = vadd.xlane.f32.xlu0 %v2628_v40 }
 0xc9e   :  { %6813 = vmatpush3.bf16.msra.mxu1 %v6810_v61  ;;  %v2790_v61 = vld [vmem:[#allocation18 + $0x50] sm:$0xff] }
 0xc9f   :  { %6815 = vmatprep.subr.bf16.mxu1 %v6814_v24  ;;  %v6850_v56 = vpack.c.bf16 %v2791_v23, %v2790_v61  ;;  %v2951_v61 = vld [vmem:[#allocation6 + $0x6d0] sm:$0xff] }
 0xca2   :  { %6817 = vmatpush3.bf16.msra.mxu1 %v6814_v24  ;;  %v2793_v24 = vld [vmem:[#allocation18 + $0x68] sm:$0xff] }
 0xca3   :  { %6819 = vmatprep.subr.bf16.mxu1 %v6818_v27  ;;  %v6854_v25 = vpack.c.bf16 %v2793_v24, %v2792_v62  ;;  %v5600_v24 = vld [vmem:[#allocation19] ss:$0 sm:$0xff] }
 0xca6   :  { %6821 = vmatpush3.bf16.msra.mxu1 %v6818_v27  ;;  %v2794_v27 = vld [vmem:[#allocation18 + $0x70] sm:$0xff] }
 0xca7   :  { %6823 = vmatprep.subr.bf16.mxu1 %v6822_v3  ;;  %v6858_v31 = vpack.c.bf16 %v2795_v29, %v2794_v27 }
 0xcaa   :  { %6825 = vmatpush3.bf16.msra.mxu1 %v6822_v3  ;;  %v5599_v3 = vld [vmem:[#allocation16] ss:$0 sm:$0xff] }
 0xcab   :  { %6827 = vmatprep.subr.bf16.mxu1 %v6826_v43 }
 0xcae   :  { %6829 = vmatpush3.bf16.msra.mxu1 %v6826_v43 }
 0xcaf   :  { %6831 = vmatprep.subr.bf16.mxu1 %v6830_v34 }
 0xd24   :  { %v2625_v37 = vpop.xlane.xlu1 %2624 }
 0xd25   :  { %v2627_v41 = vmul.f32 0.03125, %v2625_v37  ;;  %v2623_v39 = vpop.xlane.xlu0 %2622 }
 0xd26   :  { %v2626_v52 = vmul.f32 0.03125, %v2623_v39 }
 0xd27   :  { %v2637_v58 = vmul.f32 %v2627_v41, %v2627_v41  ;;  %v2641_v60 = vsub.f32 %v8277_v63, %v2627_v41  ;;  %v2782_v63 = vld [vmem:[#allocation18 + $0x10] sm:$0xff] }
 0xd28   :  { %v2633_v51 = vpop.xlane.xlu1 %2632  ;;  %v2636_v50 = vmul.f32 %v2626_v52, %v2626_v52  ;;  %v2640_v57 = vsub.f32 %v8280_v5, %v2626_v52  ;;  %v6834_v40 = vpack.c.bf16 %v2783_v0, %v2782_v63  ;;  %v2784_v5 = vld [vmem:[#allocation18 + $0x20] sm:$0xff]  ;;  %v2927_v0 = vld [vmem:[#allocation6 + $0x610] sm:$0xff] }
 0xd29   :  { %v2635_v46 = vmul.f32 0.03125, %v2633_v51  ;;  %v2631_v48 = vpop.xlane.xlu0 %2630  ;;  %v6838_v18 = vpack.c.bf16 %v2785_v17, %v2784_v5  ;;  %v2950_v5 = vld [vmem:[#allocation6 + $0x6c8] sm:$0xff] }
 0xd2a   :  { %v2634_v26 = vmul.f32 0.03125, %v2631_v48 }
 0xd2b   :  { %v2639_v54 = vsub.f32 %v2635_v46, %v2637_v58 }
 0xd2c   :  { %v2638_v55 = vsub.f32 %v2634_v26, %v2636_v50 }
 0xd2d   :  { %v2643_v59 = vadd.f32 1e-12, %v2639_v54 }
 0xd2e   :  { %v2642_v35 = vadd.f32 1e-12, %v2638_v55 }
 0xd2f   :  { %7318 = vrsqrt.f32 %v2643_v59 }
 0xd30   :  { %7320 = vrsqrt.f32 %v2642_v35 }
 0xd39   :  { %v7319_v2 = vpop.eup %7318 }
 0xd3a   :  { %v7321_v4 = vpop.eup %7320  ;;  %v2647_v28 = vmul.f32 %v7319_v2, %v2641_v60 }
 0xd3b   :  { %v2646_v7 = vmul.f32 %v7321_v4, %v2640_v57  ;;  %v2926_v57 = vld [vmem:[#allocation6 + $0x608] sm:$0xff]  ;;  %v2928_v4 = vld [vmem:[#allocation6 + $0x618] sm:$0xff] }
 0xd3c   :  { %v2655_v8 = vmul.f32 %v5597_v6, %v2647_v28 }
 0xd3d   :  { %v2654_v45 = vmul.f32 %v5597_v6, %v2646_v7  ;;  %v2938_v6 = vld [vmem:[#allocation6 + $0x668] sm:$0xff]  ;;  %v2940_v7 = vld [vmem:[#allocation6 + $0x678] sm:$0xff] }
 0xd3e   :  { %v8292_v15 = vadd.f32 %v5598_v32, %v2655_v8  ;;  %v6862_v28 = vpack.c.bf16 %v2938_v6, %v2926_v57  ;;  %v2937_v8 = vld [vmem:[#allocation6 + $0x660] sm:$0xff]  ;;  %v3011_v6 = vld [vmem:[#allocation6 + $0x8b0] sm:$0xff] }
 0xd3f   :  { %v8290_v10 = vadd.f32 %v5598_v32, %v2654_v45  ;;  %v2925_v32 = vld [vmem:[#allocation6 + $0x600] sm:$0xff]  ;;  %v6894_v45 = vpack.c.bf16 %v2940_v7, %v2928_v4  ;;  %v3034_v7 = vld [vmem:[#allocation6 + $0x968] sm:$0xff] }
 0xd40   :  { %v6864_v63 = vpack.c.bf16 %v2937_v8, %v2925_v32  ;;  %v3024_v32 = vld [vmem:[#allocation6 + $0x918] sm:$0xff] }
 0xd41   :  { %6150 = vmatprep.mubr.f32.mxu1 %v8290_v10  ;;  %6895 = vmatprep.subr.bf16.mxu0 %v6894_v45  ;;  %v3036_v45 = vld [vmem:[#allocation6 + $0x978] sm:$0xff] }
 0xd42   :  { %6151 = vmatmul.mubr.f32.vlgmr.msra.gmra.mrb[42].mxu1 %v8292_v15 }
 0xd43   :  { %6833 = vmatpush3.bf16.msra.mxu1 %v6830_v34 }
 0xd44   :  { %6835 = vmatprep.subr.bf16.mxu1 %v6834_v40 }
 0xd47   :  { %6837 = vmatpush3.bf16.msra.mxu1 %v6834_v40  ;;  %v2939_v40 = vld [vmem:[#allocation6 + $0x670] sm:$0xff] }
 0xd48   :  { %6839 = vmatprep.subr.bf16.mxu1 %v6838_v18  ;;  %v6896_v17 = vpack.c.bf16 %v2939_v40, %v2927_v0  ;;  %v3033_v0 = vld [vmem:[#allocation6 + $0x960] sm:$0xff]  ;;  %v6910_v40 = vpack.c.bf16 %v3036_v45, %v3024_v32 }
 0xd4a   :  { %6897 = vmatpush1.bf16.msra.mxu0 %v6896_v17  ;;  %v3023_v17 = vld [vmem:[#allocation6 + $0x910] sm:$0xff] }
 0xd4b   :  { %6841 = vmatpush3.bf16.msra.mxu1 %v6838_v18  ;;  %v2962_v18 = vld [vmem:[#allocation6 + $0x728] sm:$0xff]  ;;  %6899 = vmatprep.subr.bf16.mxu0 %v6898_v22  ;;  %v3048_v22 = vld [vmem:[#allocation6 + $0x9d8] sm:$0xff] }
 0xd4c   :  { %6843 = vmatprep.subr.bf16.mxu1 %v6842_v1 }
 0xd4f   :  { %6845 = vmatpush3.bf16.msra.mxu1 %v6842_v1  ;;  %v6866_v1 = vpack.c.bf16 %v2962_v18, %v2950_v5  ;;  %v3035_v18 = vld [vmem:[#allocation6 + $0x970] sm:$0xff] }
 0xd50   :  { %6847 = vmatprep.subr.bf16.mxu1 %v6846_v9  ;;  %v6912_v49 = vpack.c.bf16 %v3035_v18, %v3023_v17 }
 0xd53   :  { %6849 = vmatpush3.bf16.msra.mxu1 %v6846_v9  ;;  %v2961_v9 = vld [vmem:[#allocation6 + $0x720] sm:$0xff] }
 0xd54   :  { %6851 = vmatprep.subr.bf16.mxu1 %v6850_v56  ;;  %v6868_v23 = vpack.c.bf16 %v2961_v9, %v2949_v53  ;;  %v3060_v9 = vld [vmem:[#allocation6 + $0xa38] sm:$0xff] }
 0xd57   :  { %6853 = vmatpush3.bf16.msra.mxu1 %v6850_v56  ;;  %v2963_v56 = vld [vmem:[#allocation6 + $0x730] sm:$0xff] }
 0xd58   :  { %6855 = vmatprep.subr.bf16.mxu1 %v6854_v25  ;;  %v6900_v62 = vpack.c.bf16 %v2963_v56, %v2951_v61  ;;  %v3045_v61 = vld [vmem:[#allocation6 + $0x9c0] sm:$0xff]  ;;  %v6914_v56 = vpack.c.bf16 %v3060_v9, %v3048_v22 }
 0xd5a   :  { %6901 = vmatpush1.bf16.msra.mxu0 %v6900_v62 }
 0xd5b   :  { %6857 = vmatpush3.bf16.msra.mxu1 %v6854_v25 }
 0xd5c   :  { %6859 = vmatprep.subr.bf16.mxu1 %v6858_v31 }
 0xd5f   :  { %6861 = vmatpush3.bf16.msra.mxu1 %v6858_v31 }
 0xd60   :  { %6863 = vmatprep.subr.bf16.mxu1 %v6862_v28  ;;  %v3022_v28 = vld [vmem:[#allocation6 + $0x908] sm:$0xff] }
 0xd61   :  { %v6878_v8 = vpack.c.bf16 %v3034_v7, %v3022_v28  ;;  %v2944_v28 = vld [vmem:[#allocation6 + $0x698] sm:$0xff] }
 0xe15   :  { %v6152_v13 = vpop.f32.mrb[42].mxu1 }
 0xe16   :  { %v2759_v38 = vadd.f32 %v6152_v13, %v5599_v3  ;;  %v2753_v43 = vpop.f32.mrb[43].mxu1 }
 0xe17   :  { %v2754_v36 = vadd.f32 %v5599_v3, %v2753_v43 }
 0xe18   :  { %v2765_v20 = vmul.f32 0.044715, %v2759_v38  ;;  %v2763_v35 = vmul.f32 0.5, %v2759_v38 }
 0xe19   :  { %v2764_v34 = vmul.f32 0.044715, %v2754_v36  ;;  %v2762_v55 = vmul.f32 0.5, %v2754_v36 }
 0xe1a   :  { %v2767_v37 = vmul.f32 %v2765_v20, %v2759_v38  ;;  %v2986_v20 = vld [vmem:[#allocation6 + $0x7e8] sm:$0xff] }
 0xe1b   :  { %v2766_v41 = vmul.f32 %v2764_v34, %v2754_v36  ;;  %v2976_v34 = vld [vmem:[#allocation6 + $0x798] sm:$0xff] }
 0xe1c   :  { %v2769_v39 = vmul.f32 %v2767_v37, %v2759_v38  ;;  %v2988_v37 = vld [vmem:[#allocation6 + $0x7f8] sm:$0xff] }
 0xe1d   :  { %v2768_v52 = vmul.f32 %v2766_v41, %v2754_v36  ;;  %v2973_v41 = vld [vmem:[#allocation6 + $0x780] sm:$0xff] }
 0xe1e   :  { %v2771_v51 = vadd.f32 %v2769_v39, %v2759_v38  ;;  %v6902_v39 = vpack.c.bf16 %v2988_v37, %v2976_v34  ;;  %v3081_v34 = vld [vmem:[#allocation6 + $0xae0] sm:$0xff] }
 0xe1f   :  { %v2770_v58 = vadd.f32 %v2768_v52, %v2754_v36  ;;  %v2974_v36 = vld [vmem:[#allocation6 + $0x788] sm:$0xff] }
 0xe20   :  { %v2773_v46 = vmul.f32 0.7978846, %v2771_v51  ;;  %v2975_v51 = vld [vmem:[#allocation6 + $0x790] sm:$0xff]  ;;  %6903 = vmatprep.subr.bf16.mxu0 %v6902_v39 }
 0xe21   :  { %v2772_v48 = vmul.f32 0.7978846, %v2770_v58  ;;  %v2987_v58 = vld [vmem:[#allocation6 + $0x7f0] sm:$0xff] }
 0xe22   :  { %7322 = vtanh.f32 %v2773_v46  ;;  %v6904_v46 = vpack.c.bf16 %v2987_v58, %v2975_v51  ;;  %v3106_v51 = vld [vmem:[#allocation6 + $0xba8] sm:$0xff]  ;;  %v3096_v58 = vld [vmem:[#allocation6 + $0xb58] sm:$0xff] }
 0xe23   :  { %7324 = vtanh.f32 %v2772_v48  ;;  %v2998_v48 = vld [vmem:[#allocation6 + $0x848] sm:$0xff] }
 0xe24   :  { %6905 = vmatpush1.bf16.msra.mxu0 %v6904_v46 }
 0xe2c   :  { %v7323_v50 = vpop.eup %7322 }
 0xe2d   :  { %v7325_v26 = vpop.eup %7324  ;;  %v2777_v54 = vadd.f32 1.0, %v7323_v50  ;;  %v3010_v50 = vld [vmem:[#allocation6 + $0x8a8] sm:$0xff] }
 0xe2e   :  { %v2776_v59 = vadd.f32 1.0, %v7325_v26  ;;  %v3000_v26 = vld [vmem:[#allocation6 + $0x858] sm:$0xff] }
 0xe2f   :  { %v2779_v2 = vmul.f32 %v2777_v54, %v2763_v35  ;;  %v3012_v54 = vld [vmem:[#allocation6 + $0x8b8] sm:$0xff]  ;;  %v2997_v35 = vld [vmem:[#allocation6 + $0x840] sm:$0xff] }
 0xe30   :  { %v2778_v60 = vmul.f32 %v2776_v59, %v2762_v55  ;;  %v6874_v55 = vpack.c.bf16 %v3010_v50, %v2998_v48  ;;  %v6906_v59 = vpack.c.bf16 %v3012_v54, %v3000_v26  ;;  %v3108_v48 = vld [vmem:[#allocation6 + $0xbb8] sm:$0xff]  ;;  %v3093_v50 = vld [vmem:[#allocation6 + $0xb40] sm:$0xff] }
 0xe31   :  { %v3105_v26 = vld [vmem:[#allocation6 + $0xba0] sm:$0xff]  ;;  %v6922_v54 = vpack.c.bf16 %v3108_v48, %v3096_v58  ;;  %v2967_v58 = vld [vmem:[#allocation6 + $0x750] sm:$0xff] }
 0xe32   :  { %6185 = vmatprep.mubr.f32.mxu1 %v2778_v60  ;;  %v3009_v60 = vld [vmem:[#allocation6 + $0x8a0] sm:$0xff]  ;;  %6907 = vmatprep.subr.bf16.mxu0 %v6906_v59  ;;  %v3095_v59 = vld [vmem:[#allocation6 + $0xb50] sm:$0xff] }
 0xe33   :  { %6186 = vmatmul.mubr.f32.vlgmr.msra.gmra.mrb[44].mxu1 %v2779_v2  ;;  %v2999_v2 = vld [vmem:[#allocation6 + $0x850] sm:$0xff]  ;;  %v6876_v57 = vpack.c.bf16 %v3009_v60, %v2997_v35 }
 0xe34   :  { %3246 = vmatprep.mubr.f32.mxu1 %v7722_v44  ;;  %6865 = vmatpush1.bf16.msra.mxu1 %v6864_v63  ;;  %v6908_v4 = vpack.c.bf16 %v3011_v6, %v2999_v2  ;;  %v3021_v63 = vld [vmem:[#allocation6 + $0x900] sm:$0xff]  ;;  %v3107_v35 = vld [vmem:[#allocation6 + $0xbb0] sm:$0xff]  ;;  %v2930_v2 = vld [vmem:[#allocation6 + $0x628] sm:$0xff] }
 0xe35   :  { %6867 = vmatprep.subr.bf16.mxu1 %v6866_v1  ;;  %v6880_v5 = vpack.c.bf16 %v3033_v0, %v3021_v63  ;;  %v3058_v1 = vld [vmem:[#allocation6 + $0xa28] sm:$0xff]  ;;  %v6924_v60 = vpack.c.bf16 %v3107_v35, %v3095_v59  ;;  %v2932_v6 = vld [vmem:[#allocation6 + $0x638] sm:$0xff] }
 0xe36   :  { %6909 = vmatpush1.bf16.msra.mxu0 %v6908_v4  ;;  %v6882_v53 = vpack.c.bf16 %v3058_v1, %v3046_v30  ;;  %v6958_v7 = vpack.c.bf16 %v2944_v28, %v2932_v6  ;;  %v2979_v28 = vld [vmem:[#allocation6 + $0x7b0] sm:$0xff] }
 0xe37   :  { %6911 = vmatprep.subr.bf16.mxu0 %v6910_v40 }
 0xe38   :  { %6869 = vmatpush1.bf16.msra.mxu1 %v6868_v23  ;;  %v3057_v23 = vld [vmem:[#allocation6 + $0xa20] sm:$0xff] }
 0xe39   :  { %v6884_v62 = vpack.c.bf16 %v3057_v23, %v3045_v61  ;;  %v5601_v23 = vld [vmem:[#allocation21] ss:$0 sm:$0xff] }
 0xe3a   :  { %6913 = vmatpush1.bf16.msra.mxu0 %v6912_v49 }
 0xe3b   :  { %6915 = vmatprep.subr.bf16.mxu0 %v6914_v56  ;;  %v2929_v56 = vld [vmem:[#allocation6 + $0x620] sm:$0xff] }
 0xf06   :  { %v6187_v25 = vpop.f32.mrb[44].mxu1 }
 0xf07   :  { %v2869_v27 = vpop.f32.mrb[45].mxu1  ;;  %v2875_v29 = vadd.f32 %v6187_v25, %v5600_v24  ;;  %v3059_v25 = vld [vmem:[#allocation6 + $0xa30] sm:$0xff] }
 0xf08   :  { %v2870_v31 = vadd.f32 %v5600_v24, %v2869_v27  ;;  %v3047_v24 = vld [vmem:[#allocation6 + $0x9d0] sm:$0xff] }
 0xf09   :  { %v8301_v13 = vadd.f32 %v2875_v29, %v8292_v15  ;;  %v2985_v15 = vld [vmem:[#allocation6 + $0x7e0] sm:$0xff]  ;;  %v6916_v27 = vpack.c.bf16 %v3059_v25, %v3047_v24  ;;  %v3070_v29 = vld [vmem:[#allocation6 + $0xa88] sm:$0xff]  ;;  %v2931_v25 = vld [vmem:[#allocation6 + $0x630] sm:$0xff] }
 0xf0a   :  { %v8298_v3 = vadd.f32 %v2870_v31, %v8290_v10  ;;  %v6870_v10 = vpack.c.bf16 %v2986_v20, %v2974_v36  ;;  %v6872_v52 = vpack.c.bf16 %v2985_v15, %v2973_v41  ;;  %v3082_v31 = vld [vmem:[#allocation6 + $0xae8] sm:$0xff]  ;;  %v3084_v36 = vld [vmem:[#allocation6 + $0xaf8] sm:$0xff]  ;;  %v3069_v20 = vld [vmem:[#allocation6 + $0xa80] sm:$0xff] }
 0xf0b   :  { %v2889_v43 = vmul.f32 %v8301_v13, %v8301_v13  ;;  %6917 = vmatpush1.bf16.msra.mxu0 %v6916_v27  ;;  %v6888_v37 = vpack.c.bf16 %v3081_v34, %v3069_v20  ;;  %v3071_v41 = vld [vmem:[#allocation6 + $0xa90] sm:$0xff]  ;;  %v2941_v24 = vld [vmem:[#allocation6 + $0x680] sm:$0xff]  ;;  %v2956_v20 = vld [vmem:[#allocation6 + $0x6f8] sm:$0xff] }
 0xf0c   :  { %2882 = vadd.xlane.f32.xlu0 %v8298_v3  ;;  %v2888_v38 = vmul.f32 %v8298_v3, %v8298_v3  ;;  %6871 = vmatprep.subr.bf16.mxu1 %v6870_v10  ;;  %v3083_v15 = vld [vmem:[#allocation6 + $0xaf0] sm:$0xff]  ;;  %v2968_v34 = vld [vmem:[#allocation6 + $0x758] sm:$0xff] }
 0xf0d   :  { %6873 = vmatpush1.bf16.msra.mxu1 %v6872_v52  ;;  %v6920_v39 = vpack.c.bf16 %v3083_v15, %v3071_v41  ;;  %v3094_v52 = vld [vmem:[#allocation6 + $0xb48] sm:$0xff]  ;;  %v2943_v27 = vld [vmem:[#allocation6 + $0x690] sm:$0xff]  ;;  %v2953_v15 = vld [vmem:[#allocation6 + $0x6e0] sm:$0xff] }
 0xf0e   :  { %2890 = vadd.xlane.f32.xlu1 %v2888_v38  ;;  %6875 = vmatprep.subr.bf16.mxu1 %v6874_v55  ;;  %v3072_v38 = vld [vmem:[#allocation6 + $0xa98] sm:$0xff]  ;;  %v6890_v46 = vpack.c.bf16 %v3106_v51, %v3094_v52  ;;  %v6892_v55 = vpack.c.bf16 %v3105_v26, %v3093_v50  ;;  %v6960_v41 = vpack.c.bf16 %v2943_v27, %v2931_v25  ;;  %v2955_v51 = vld [vmem:[#allocation6 + $0x6f0] sm:$0xff]  ;;  %v2990_v26 = vld [vmem:[#allocation6 + $0x808] sm:$0xff] }
 0xf0f   :  { %v6918_v10 = vpack.c.bf16 %v3084_v36, %v3072_v38  ;;  %v2966_v36 = vld [vmem:[#allocation6 + $0x748] sm:$0xff]  ;;  %v6962_v50 = vpack.c.bf16 %v2968_v34, %v2956_v20  ;;  %v6964_v35 = vpack.c.bf16 %v2967_v58, %v2955_v51  ;;  %v3064_v20 = vld [vmem:[#allocation6 + $0xa58] sm:$0xff]  ;;  %v3063_v51 = vld [vmem:[#allocation6 + $0xa50] sm:$0xff] }
 0xf10   :  { %2884 = vadd.xlane.f32.xlu0 %v8301_v13  ;;  %v3074_v58 = vld [vmem:[#allocation6 + $0xaa8] sm:$0xff] }
 0xf11   :  { %6877 = vmatpush1.bf16.msra.mxu1 %v6876_v57  ;;  %6919 = vmatprep.subr.bf16.mxu0 %v6918_v10  ;;  %v2942_v57 = vld [vmem:[#allocation6 + $0x688] sm:$0xff] }
 0xf12   :  { %2892 = vadd.xlane.f32.xlu1 %v2889_v43  ;;  %6879 = vmatprep.subr.bf16.mxu1 %v6878_v8  ;;  %v6886_v43 = vpack.c.bf16 %v3082_v31, %v3070_v29  ;;  %v6926_v4 = vpack.c.bf16 %v2942_v57, %v2930_v2  ;;  %v5602_v29 = vld [vmem:[#allocation22] ss:$0 sm:$0xff]  ;;  %v2954_v31 = vld [vmem:[#allocation6 + $0x6e8] sm:$0xff] }
 0xf13   :  { %6921 = vmatpush1.bf16.msra.mxu0 %v6920_v39  ;;  %v6930_v48 = vpack.c.bf16 %v2966_v36, %v2954_v31  ;;  %v2989_v2 = vld [vmem:[#allocation6 + $0x800] sm:$0xff]  ;;  %v3039_v31 = vld [vmem:[#allocation6 + $0x990] sm:$0xff]  ;;  %v3052_v36 = vld [vmem:[#allocation6 + $0x9f8] sm:$0xff] }
 0xf14   :  { %6923 = vmatprep.subr.bf16.mxu0 %v6922_v54  ;;  %v2980_v54 = vld [vmem:[#allocation6 + $0x7b8] sm:$0xff] }
 0xf15   :  { %6881 = vmatpush1.bf16.msra.mxu1 %v6880_v5 }
 0xf16   :  { %6883 = vmatprep.subr.bf16.mxu1 %v6882_v53 }
 0xf17   :  { %6925 = vmatpush1.bf16.msra.mxu0 %v6924_v60  ;;  %v2977_v60 = vld [vmem:[#allocation6 + $0x7a0] sm:$0xff] }
 0xf18   :  { %6959 = vmatprep.subr.bf16.mxu0 %v6958_v7  ;;  %v2991_v7 = vld [vmem:[#allocation6 + $0x810] sm:$0xff] }
 0xf19   :  { %6885 = vmatpush1.bf16.msra.mxu1 %v6884_v62 }
 0xf1a   :  { %6887 = vmatprep.subr.bf16.mxu1 %v6886_v43 }
 0xf1d   :  { %6889 = vmatpush1.bf16.msra.mxu1 %v6888_v37  ;;  %v6928_v37 = vpack.c.bf16 %v2941_v24, %v2929_v56  ;;  %v3037_v24 = vld [vmem:[#allocation6 + $0x980] sm:$0xff] }
 0xf1e   :  { %6891 = vmatprep.subr.bf16.mxu1 %v6890_v46  ;;  %v2978_v46 = vld [vmem:[#allocation6 + $0x7a8] sm:$0xff] }
 0xf1f   :  { %v6934_v6 = vpack.c.bf16 %v2990_v26, %v2978_v46  ;;  %v3086_v46 = vld [vmem:[#allocation6 + $0xb08] sm:$0xff] }
 0xf21   :  { %6893 = vmatpush1.bf16.msra.mxu1 %v6892_v55  ;;  %v2992_v55 = vld [vmem:[#allocation6 + $0x818] sm:$0xff] }
 0xf22   :  { %6927 = vmatprep.subr.bf16.mxu1 %v6926_v4  ;;  %v6966_v4 = vpack.c.bf16 %v2992_v55, %v2980_v54  ;;  %v3073_v55 = vld [vmem:[#allocation6 + $0xaa0] sm:$0xff] }
 0xf99   :  { %v2883_v32 = vpop.xlane.xlu0 %2882 }
 0xf9a   :  { %v2886_v8 = vmul.f32 0.03125, %v2883_v32  ;;  %v3002_v32 = vld [vmem:[#allocation6 + $0x868] sm:$0xff] }
 0xf9b   :  { %v2891_v45 = vpop.xlane.xlu1 %2890 }
 0xf9c   :  { %v2896_v63 = vmul.f32 %v2886_v8, %v2886_v8  ;;  %v2894_v0 = vmul.f32 0.03125, %v2891_v45  ;;  %v2900_v9 = vsub.f32 %v8298_v3, %v2886_v8  ;;  %v2965_v3 = vld [vmem:[#allocation6 + $0x740] sm:$0xff]  ;;  %v3014_v8 = vld [vmem:[#allocation6 + $0x8c8] sm:$0xff]  ;;  %v3004_v45 = vld [vmem:[#allocation6 + $0x878] sm:$0xff] }
 0xf9d   :  { %v2885_v40 = vpop.xlane.xlu0 %2884  ;;  %v6932_v59 = vpack.c.bf16 %v2965_v3, %v2953_v15  ;;  %v6978_v3 = vpack.c.bf16 %v3064_v20, %v3052_v36  ;;  %v2957_v36 = vld [vmem:[#allocation6 + $0x700] sm:$0xff] }
 0xf9e   :  { %v2898_v5 = vsub.f32 %v2894_v0, %v2896_v63  ;;  %v2887_v17 = vmul.f32 0.03125, %v2885_v40  ;;  %v3016_v63 = vld [vmem:[#allocation6 + $0x8d8] sm:$0xff]  ;;  %v6936_v0 = vpack.c.bf16 %v2989_v2, %v2977_v60  ;;  %v6968_v40 = vpack.c.bf16 %v2991_v7, %v2979_v28  ;;  %v3075_v60 = vld [vmem:[#allocation6 + $0xab0] sm:$0xff]  ;;  %v2969_v20 = vld [vmem:[#allocation6 + $0x760] sm:$0xff] }
 0xf9f   :  { %v2893_v18 = vpop.xlane.xlu1 %2892  ;;  %v3087_v2 = vld [vmem:[#allocation6 + $0xb10] sm:$0xff]  ;;  %v3100_v28 = vld [vmem:[#allocation6 + $0xb78] sm:$0xff] }
 0xfa0   :  { %v2902_v49 = vadd.f32 1e-12, %v2898_v5  ;;  %v2897_v30 = vmul.f32 %v2887_v17, %v2887_v17  ;;  %v2895_v1 = vmul.f32 0.03125, %v2893_v18  ;;  %v2901_v43 = vsub.f32 %v8301_v13, %v2887_v17  ;;  %v3001_v5 = vld [vmem:[#allocation6 + $0x860] sm:$0xff]  ;;  %v3112_v7 = vld [vmem:[#allocation6 + $0xbd8] sm:$0xff] }
 0xfa1   :  { %v3013_v17 = vld [vmem:[#allocation6 + $0x8c0] sm:$0xff]  ;;  %v6938_v18 = vpack.c.bf16 %v3014_v8, %v3002_v32  ;;  %v6984_v8 = vpack.c.bf16 %v3087_v2, %v3075_v60  ;;  %v3008_v60 = vld [vmem:[#allocation6 + $0x898] sm:$0xff] }
 0xfa2   :  { %7326 = vrsqrt.f32 %v2902_v49  ;;  %v2899_v22 = vsub.f32 %v2895_v1, %v2897_v30  ;;  %v6970_v49 = vpack.c.bf16 %v3016_v63, %v3004_v45  ;;  %v3003_v30 = vld [vmem:[#allocation6 + $0x870] sm:$0xff]  ;;  %v3097_v45 = vld [vmem:[#allocation6 + $0xb60] sm:$0xff]  ;;  %v3020_v2 = vld [vmem:[#allocation6 + $0x8f8] sm:$0xff] }
 0xfa3   :  { %v3015_v1 = vld [vmem:[#allocation6 + $0x8d0] sm:$0xff]  ;;  %v3109_v63 = vld [vmem:[#allocation6 + $0xbc0] sm:$0xff] }
 0xfa4   :  { %v2903_v53 = vadd.f32 1e-12, %v2899_v22  ;;  %v3026_v22 = vld [vmem:[#allocation6 + $0x928] sm:$0xff]  ;;  %v6972_v56 = vpack.c.bf16 %v3015_v1, %v3003_v30  ;;  %v2936_v30 = vld [vmem:[#allocation6 + $0x658] sm:$0xff] }
 0xfa5   :  { %v2948_v1 = vld [vmem:[#allocation6 + $0x6b8] sm:$0xff] }
 0xfa6   :  { %7328 = vrsqrt.f32 %v2903_v53  ;;  %v3038_v53 = vld [vmem:[#allocation6 + $0x988] sm:$0xff] }
 0xfa7   :  { %v6942_v25 = vpack.c.bf16 %v3038_v53, %v3026_v22  ;;  %v6956_v22 = vpack.c.bf16 %v3109_v63, %v3097_v45  ;;  %v3007_v45 = vld [vmem:[#allocation6 + $0x890] sm:$0xff] }
 0xfa8   :  { %v3019_v63 = vld [vmem:[#allocation6 + $0x8f0] sm:$0xff] }
 0xfac   :  { %v7327_v61 = vpop.eup %7326 }
 0xfad   :  { %v2906_v62 = vmul.f32 %v7327_v61, %v2900_v9  ;;  %v3028_v9 = vld [vmem:[#allocation6 + $0x938] sm:$0xff] }
 0xfae   :  { %v3040_v61 = vld [vmem:[#allocation6 + $0x998] sm:$0xff] }
 0xfaf   :  { %v2914_v38 = vmul.f32 %v5601_v23, %v2906_v62  ;;  %v3025_v62 = vld [vmem:[#allocation6 + $0x920] sm:$0xff]  ;;  %v6974_v27 = vpack.c.bf16 %v3040_v61, %v3028_v9 }
 0xfb0   :  { %v7329_v10 = vpop.eup %7328  ;;  %v6944_v34 = vpack.c.bf16 %v3037_v24, %v3025_v62  ;;  %v2933_v9 = vld [vmem:[#allocation6 + $0x640] sm:$0xff]  ;;  %v2935_v62 = vld [vmem:[#allocation6 + $0x650] sm:$0xff] }
 0xfb1   :  { %v8311_v39 = vadd.f32 %v5602_v29, %v2914_v38  ;;  %v2907_v52 = vmul.f32 %v7329_v10, %v2901_v43  ;;  %v3050_v38 = vld [vmem:[#allocation6 + $0x9e8] sm:$0xff]  ;;  %v2947_v24 = vld [vmem:[#allocation6 + $0x6b0] sm:$0xff] }
 0xfb2   :  { %v3062_v43 = vld [vmem:[#allocation6 + $0xa48] sm:$0xff] }
 0xfb3   :  { %v2915_v13 = vmul.f32 %v5601_v23, %v2907_v52  ;;  %3247 = vmatmul.mubr.f32.vlgmr.msra.gmra.mrb[46].mxu1 %v8311_v39  ;;  %3324 = vmatmul.mubr.f32.vlgmr.msra.gmra.mrb[16].mxu0 %v8311_v39  ;;  %v6940_v23 = vpack.c.bf16 %v3013_v17, %v3001_v5  ;;  %v6946_v15 = vpack.c.bf16 %v3062_v43, %v3050_v38  ;;  %v3051_v52 = vld [vmem:[#allocation6 + $0x9f0] sm:$0xff] }
 0xfb4   :  { %6929 = vmatpush1.bf16.msra.mxu1 %v6928_v37  ;;  %6961 = vmatpush1.bf16.msra.mxu0 %v6960_v41  ;;  %v3049_v37 = vld [vmem:[#allocation6 + $0x9e0] sm:$0xff]  ;;  %v6980_v54 = vpack.c.bf16 %v3063_v51, %v3051_v52  ;;  %v3099_v5 = vld [vmem:[#allocation6 + $0xb70] sm:$0xff]  ;;  %v7024_v43 = vpack.c.bf16 %v2947_v24, %v2935_v62  ;;  %v2984_v52 = vld [vmem:[#allocation6 + $0x7d8] sm:$0xff] }
 0xfb5   :  { %v8315_v57 = vadd.f32 %v5602_v29, %v2915_v13  ;;  %3252 = vmatprep.mubr.f32.mxu1 %v7722_v44  ;;  %3329 = vmatprep.mubr.f32.mxu0 %v7722_v44  ;;  %v3027_v29 = vld [vmem:[#allocation6 + $0x930] sm:$0xff]  ;;  %v3061_v41 = vld [vmem:[#allocation6 + $0xa40] sm:$0xff]  ;;  %v2996_v51 = vld [vmem:[#allocation6 + $0x838] sm:$0xff] }
 0xfb6   :  { %6931 = vmatprep.subr.bf16.mxu1 %v6930_v48  ;;  %6963 = vmatprep.subr.bf16.mxu0 %v6962_v50  ;;  %v6976_v10 = vpack.c.bf16 %v3039_v31, %v3027_v29  ;;  %v3076_v48 = vld [vmem:[#allocation6 + $0xab8] sm:$0xff]  ;;  %v6948_v26 = vpack.c.bf16 %v3061_v41, %v3049_v37  ;;  %v3085_v13 = vld [vmem:[#allocation6 + $0xb00] sm:$0xff]  ;;  %v3111_v17 = vld [vmem:[#allocation6 + $0xbd0] sm:$0xff] }
 0xfb7   :  { %3253 = vmatmul.mubr.f32.gmra.mrb[48].mxu1 %v8315_v57  ;;  %3330 = vmatmul.mubr.f32.gmra.mrb[18].mxu0 %v8315_v57  ;;  %v3088_v50 = vld [vmem:[#allocation6 + $0xb18] sm:$0xff]  ;;  %v6952_v32 = vpack.c.bf16 %v3085_v13, %v3073_v55  ;;  %v6988_v53 = vpack.c.bf16 %v3111_v17, %v3099_v5  ;;  %v2982_v37 = vld [vmem:[#allocation6 + $0x7c8] sm:$0xff]  ;;  %v2983_v55 = vld [vmem:[#allocation6 + $0x7d0] sm:$0xff] }
 0xfb8   :  { %6933 = vmatpush1.bf16.msra.mxu1 %v6932_v59  ;;  %6965 = vmatpush1.bf16.msra.mxu0 %v6964_v35  ;;  %v6950_v59 = vpack.c.bf16 %v3086_v46, %v3074_v58  ;;  %v6982_v35 = vpack.c.bf16 %v3088_v50, %v3076_v48  ;;  %v2960_v29 = vld [vmem:[#allocation6 + $0x718] sm:$0xff]  ;;  %v6996_v58 = vpack.c.bf16 %v2969_v20, %v2957_v36  ;;  %v2981_v48 = vld [vmem:[#allocation6 + $0x7c0] sm:$0xff]  ;;  %v2995_v13 = vld [vmem:[#allocation6 + $0x830] sm:$0xff] }
 0xfb9   :  { %6935 = vmatprep.subr.bf16.mxu1 %v6934_v6  ;;  %6967 = vmatprep.subr.bf16.mxu0 %v6966_v4  ;;  %v3098_v6 = vld [vmem:[#allocation6 + $0xb68] sm:$0xff]  ;;  %v2972_v31 = vld [vmem:[#allocation6 + $0x778] sm:$0xff]  ;;  %v2993_v50 = vld [vmem:[#allocation6 + $0x820] sm:$0xff] }
 0xfba   :  { %3400 = vmatprep.mubr.f32.mxu1 %v7722_v44  ;;  %3477 = vmatprep.mubr.f32.mxu0 %v7722_v44  ;;  %v3110_v4 = vld [vmem:[#allocation6 + $0xbc8] sm:$0xff]  ;;  %v3032_v5 = vld [vmem:[#allocation6 + $0x958] sm:$0xff]  ;;  %v3055_v36 = vld [vmem:[#allocation6 + $0xa10] sm:$0xff] }
 0xfbb   :  { %v3044_v17 = vld [vmem:[#allocation6 + $0x9b8] sm:$0xff]  ;;  %v3067_v20 = vld [vmem:[#allocation6 + $0xa70] sm:$0xff] }
 0xfbc   :  { %6937 = vmatpush1.bf16.msra.mxu1 %v6936_v0  ;;  %6969 = vmatpush1.bf16.msra.mxu0 %v6968_v40  ;;  %v6954_v0 = vpack.c.bf16 %v3110_v4, %v3098_v6  ;;  %v6986_v40 = vpack.c.bf16 %v3112_v7, %v3100_v28  ;;  %v7000_v6 = vpack.c.bf16 %v2993_v50, %v2981_v48  ;;  %v3005_v28 = vld [vmem:[#allocation6 + $0x880] sm:$0xff]  ;;  %v3056_v62 = vld [vmem:[#allocation6 + $0xa18] sm:$0xff]  ;;  %v3079_v48 = vld [vmem:[#allocation6 + $0xad0] sm:$0xff] }
 0xfbd   :  { %6939 = vmatprep.subr.bf16.mxu1 %v6938_v18  ;;  %6971 = vmatprep.subr.bf16.mxu0 %v6970_v49  ;;  %v2934_v18 = vld [vmem:[#allocation6 + $0x648] sm:$0xff]  ;;  %v7032_v4 = vpack.c.bf16 %v2995_v13, %v2983_v55  ;;  %v3017_v7 = vld [vmem:[#allocation6 + $0x8e0] sm:$0xff]  ;;  %v3068_v24 = vld [vmem:[#allocation6 + $0xa78] sm:$0xff] }
 0xfbe   :  { %v2946_v49 = vld [vmem:[#allocation6 + $0x6a8] sm:$0xff]  ;;  %v3091_v50 = vld [vmem:[#allocation6 + $0xb30] sm:$0xff]  ;;  %v3104_v55 = vld [vmem:[#allocation6 + $0xb98] sm:$0xff] }
 0xfbf   :  { %v6990_v61 = vpack.c.bf16 %v2946_v49, %v2934_v18  ;;  %v7004_v18 = vpack.c.bf16 %v3017_v7, %v3005_v28  ;;  %v7036_v49 = vpack.c.bf16 %v3019_v63, %v3007_v45  ;;  %v3116_v13 = vld [vmem:[#allocation6 + $0xbf8] sm:$0xff]  ;;  %v3103_v28 = vld [vmem:[#allocation6 + $0xb90] sm:$0xff] }
 0xfc0   :  { %6941 = vmatpush1.bf16.msra.mxu1 %v6940_v23  ;;  %6973 = vmatpush1.bf16.msra.mxu0 %v6972_v56  ;;  %v7022_v23 = vpack.c.bf16 %v2948_v1, %v2936_v30  ;;  %v2945_v56 = vld [vmem:[#allocation6 + $0x6a0] sm:$0xff]  ;;  %v3115_v7 = vld [vmem:[#allocation6 + $0xbf0] sm:$0xff] }
 0xfc1   :  { %6943 = vmatprep.subr.bf16.mxu1 %v6942_v25  ;;  %6975 = vmatprep.subr.bf16.mxu0 %v6974_v27  ;;  %v2958_v25 = vld [vmem:[#allocation6 + $0x708] sm:$0xff]  ;;  %v6992_v38 = vpack.c.bf16 %v2945_v56, %v2933_v9  ;;  %v3029_v30 = vld [vmem:[#allocation6 + $0x940] sm:$0xff]  ;;  %v3031_v9 = vld [vmem:[#allocation6 + $0x950] sm:$0xff] }
 0xfc2   :  { %v2970_v27 = vld [vmem:[#allocation6 + $0x768] sm:$0xff]  ;;  %v3041_v1 = vld [vmem:[#allocation6 + $0x9a0] sm:$0xff] }
 0xfc3   :  { %v6994_v41 = vpack.c.bf16 %v2970_v27, %v2958_v25  ;;  %v3066_v56 = vld [vmem:[#allocation6 + $0xa68] sm:$0xff]  ;;  %v7008_v25 = vpack.c.bf16 %v3041_v1, %v3029_v30 }
 0xfc4   :  { %6945 = vmatpush1.bf16.msra.mxu1 %v6944_v34  ;;  %6977 = vmatpush1.bf16.msra.mxu0 %v6976_v10  ;;  %v2959_v34 = vld [vmem:[#allocation6 + $0x710] sm:$0xff] }
 0xfc5   :  { %6947 = vmatprep.subr.bf16.mxu1 %v6946_v15  ;;  %6979 = vmatprep.subr.bf16.mxu0 %v6978_v3  ;;  %v2971_v10 = vld [vmem:[#allocation6 + $0x770] sm:$0xff]  ;;  %v7026_v15 = vpack.c.bf16 %v2972_v31, %v2960_v29  ;;  %v2994_v3 = vld [vmem:[#allocation6 + $0x828] sm:$0xff]  ;;  %v3053_v29 = vld [vmem:[#allocation6 + $0xa00] sm:$0xff] }
 0xfc6   :  { %v7028_v46 = vpack.c.bf16 %v2971_v10, %v2959_v34  ;;  %v3065_v31 = vld [vmem:[#allocation6 + $0xa60] sm:$0xff]  ;;  %v3078_v34 = vld [vmem:[#allocation6 + $0xac8] sm:$0xff] }
 0xfc7   :  { %v3090_v10 = vld [vmem:[#allocation6 + $0xb28] sm:$0xff] }
 0xfc8   :  { %6949 = vmatpush1.bf16.msra.mxu1 %v6948_v26  ;;  %6981 = vmatpush1.bf16.msra.mxu0 %v6980_v54  ;;  %v6998_v26 = vpack.c.bf16 %v2994_v3, %v2982_v37  ;;  %v7030_v54 = vpack.c.bf16 %v2996_v51, %v2984_v52  ;;  %v3080_v37 = vld [vmem:[#allocation6 + $0xad8] sm:$0xff]  ;;  %v7044_v3 = vpack.c.bf16 %v3067_v20, %v3055_v36  ;;  %v3077_v52 = vld [vmem:[#allocation6 + $0xac0] sm:$0xff]  ;;  %v8340_v45 = vld [vmem:[#allocation7 + $0xc] sm:$0xff] }
 0xfc9   :  { %6951 = vmatprep.subr.bf16.mxu1 %v6950_v59  ;;  %6983 = vmatprep.subr.bf16.mxu0 %v6982_v35  ;;  %v3006_v59 = vld [vmem:[#allocation6 + $0x888] sm:$0xff]  ;;  %v3089_v51 = vld [vmem:[#allocation6 + $0xb20] sm:$0xff]  ;;  %v3129_v63 = vrot.slane %v8340_v45, %v8069_v12  ;;  %v3133_v30 = vrot.slane %v8340_v45, %v8079_v16 }
 0xfca   :  { %v3018_v35 = vld [vmem:[#allocation6 + $0x8e8] sm:$0xff] }
 0xfcc   :  { %6953 = vmatpush1.bf16.msra.mxu1 %v6952_v32  ;;  %6985 = vmatpush1.bf16.msra.mxu0 %v6984_v8  ;;  %v7002_v32 = vpack.c.bf16 %v3018_v35, %v3006_v59  ;;  %v7034_v8 = vpack.c.bf16 %v3020_v2, %v3008_v60  ;;  %v7016_v59 = vpack.c.bf16 %v3089_v51, %v3077_v52  ;;  %v3101_v60 = vld [vmem:[#allocation6 + $0xb80] sm:$0xff] }
 0xfcd   :  { %6955 = vmatprep.subr.bf16.mxu1 %v6954_v0  ;;  %6987 = vmatprep.subr.bf16.mxu0 %v6986_v40  ;;  %v3030_v0 = vld [vmem:[#allocation6 + $0x948] sm:$0xff]  ;;  %v7048_v35 = vpack.c.bf16 %v3091_v50, %v3079_v48 }
 0xfce   :  { %v3042_v40 = vld [vmem:[#allocation6 + $0x9a8] sm:$0xff] }
 0xfd0   :  { %6957 = vmatpush1.bf16.msra.mxu1 %v6956_v22  ;;  %6989 = vmatpush1.bf16.msra.mxu0 %v6988_v53  ;;  %v7006_v22 = vpack.c.bf16 %v3042_v40, %v3030_v0  ;;  %v7038_v53 = vpack.c.bf16 %v3044_v17, %v3032_v5  ;;  %v3125_v5 = vrot.slane %v8340_v45, %v8074_v14 }
 0xfd1   :  { %6991 = vmatprep.subr.bf16.mxu1 %v6990_v61  ;;  %7023 = vmatprep.subr.bf16.mxu0 %v7022_v23  ;;  %v3043_v61 = vld [vmem:[#allocation6 + $0x9b0] sm:$0xff]  ;;  %v3054_v23 = vld [vmem:[#allocation6 + $0xa08] sm:$0xff] }
 0xfd2   :  { %v7040_v27 = vpack.c.bf16 %v3043_v61, %v3031_v9 }
 0xfd3   :  { %3401 = vmatmul.mubr.f32.vlgmr.msra.gmra.mrb[50].mxu1 %v8311_v39  ;;  %3478 = vmatmul.mubr.f32.vlgmr.msra.gmra.mrb[20].mxu0 %v8311_v39 }
 0xfd4   :  { %6993 = vmatpush1.bf16.msra.mxu1 %v6992_v38  ;;  %7025 = vmatpush1.bf16.msra.mxu0 %v7024_v43  ;;  %v7010_v38 = vpack.c.bf16 %v3066_v56, %v3054_v23  ;;  %v7042_v43 = vpack.c.bf16 %v3068_v24, %v3056_v62 }
 0xfd5   :  { %3406 = vmatprep.mubr.f32.mxu1 %v7722_v44  ;;  %3483 = vmatprep.mubr.f32.mxu0 %v7722_v44 }
 0xfd6   :  { %6995 = vmatprep.subr.bf16.mxu1 %v6994_v41  ;;  %7027 = vmatprep.subr.bf16.mxu0 %v7026_v15  ;;  %v3092_v41 = vld [vmem:[#allocation6 + $0xb38] sm:$0xff]  ;;  %v7012_v15 = vpack.c.bf16 %v3065_v31, %v3053_v29 }
 0xfd7   :  { %3407 = vmatmul.mubr.f32.gmra.mrb[52].mxu1 %v8315_v57  ;;  %3484 = vmatmul.mubr.f32.gmra.mrb[22].mxu0 %v8315_v57 }
 0xfd8   :  { %6997 = vmatpush1.bf16.msra.mxu1 %v6996_v58  ;;  %7029 = vmatpush1.bf16.msra.mxu0 %v7028_v46  ;;  %v7014_v58 = vpack.c.bf16 %v3090_v10, %v3078_v34  ;;  %v7046_v46 = vpack.c.bf16 %v3092_v41, %v3080_v37  ;;  %v3119_v37 = vld [vmem:[#allocation7 + $0x14] sm:$0xf] }
 0xfd9   :  { %6999 = vmatprep.subr.bf16.mxu1 %v6998_v26  ;;  %7031 = vmatprep.subr.bf16.mxu0 %v7030_v54  ;;  %v3102_v26 = vld [vmem:[#allocation6 + $0xb88] sm:$0xff]  ;;  %v3165_v41 = vrot.slane %v3119_v37, %v8079_v16 }
 0xfda   :  { %3554 = vmatprep.mubr.f32.mxu1 %v7722_v44  ;;  %3631 = vmatprep.mubr.f32.mxu0 %v7722_v44  ;;  %v3114_v54 = vld [vmem:[#allocation6 + $0xbe8] sm:$0xff] }
 0xfdb   :  { %v7018_v2 = vpack.c.bf16 %v3114_v54, %v3102_v26  ;;  %v8395_v26 = vrot.slane %v3119_v37, %v8074_v14 }
 0xfdc   :  { %7001 = vmatpush1.bf16.msra.mxu1 %v7000_v6  ;;  %7033 = vmatpush1.bf16.msra.mxu0 %v7032_v4  ;;  %v7050_v6 = vpack.c.bf16 %v3116_v13, %v3104_v55  ;;  %v3113_v4 = vld [vmem:[#allocation6 + $0xbe0] sm:$0xff] }
 0xfdd   :  { %7003 = vmatprep.subr.bf16.mxu1 %v7002_v32  ;;  %7035 = vmatprep.subr.bf16.mxu0 %v7034_v8  ;;  %v7020_v32 = vpack.c.bf16 %v3113_v4, %v3101_v60  ;;  %v7052_v8 = vpack.c.bf16 %v3115_v7, %v3103_v28 }
 0xfe0   :  { %7005 = vmatpush1.bf16.msra.mxu1 %v7004_v18  ;;  %7037 = vmatpush1.bf16.msra.mxu0 %v7036_v49 }
 0xfe1   :  { %7007 = vmatprep.subr.bf16.mxu1 %v7006_v22  ;;  %7039 = vmatprep.subr.bf16.mxu0 %v7038_v53 }
 0xfe4   :  { %7009 = vmatpush1.bf16.msra.mxu1 %v7008_v25  ;;  %7041 = vmatpush1.bf16.msra.mxu0 %v7040_v27 }
 0xfe5   :  { %7011 = vmatprep.subr.bf16.mxu1 %v7010_v38  ;;  %7043 = vmatprep.subr.bf16.mxu0 %v7042_v43  ;;  %v8372_v38 = vrot.slane %v8340_v45, %v505_v33 }
 0xfe8   :  { %7013 = vmatpush1.bf16.msra.mxu1 %v7012_v15  ;;  %7045 = vmatpush1.bf16.msra.mxu0 %v7044_v3  ;;  %v3161_v15 = vrot.slane %v3119_v37, %v8069_v12  ;;  %v3169_v3 = vrot.slane %v3119_v37, %v8117_v47 }
 0xfe9   :  { %7015 = vmatprep.subr.bf16.mxu1 %v7014_v58  ;;  %7047 = vmatprep.subr.bf16.mxu0 %v7046_v46 }
 0xfec   :  { %7017 = vmatpush1.bf16.msra.mxu1 %v7016_v59  ;;  %7049 = vmatpush1.bf16.msra.mxu0 %v7048_v35 }
 0xfed   :  { %7019 = vmatprep.subr.bf16.mxu1 %v7018_v2  ;;  %7051 = vmatprep.subr.bf16.mxu0 %v7050_v6  ;;  %v8409_v6 = vld [vmem:[%s8553_s1] sm:$0xff] }
 0xff0   :  { %7021 = vmatpush1.bf16.msra.mxu1 %v7020_v32  ;;  %7053 = vmatpush1.bf16.msra.mxu0 %v7052_v8  ;;  %v8416_v32 = vld [vmem:[%s8553_s1 + $0x8] sm:$0xff] }
 0xff1   :  { %6188 = vmatprep.subr.mxu1 %v7722_v44 }
 0xff3   :  { %3555 = vmatmul.mubr.f32.vlgmr.msra.gmra.mrb[54].mxu1 %v8311_v39  ;;  %3632 = vmatmul.mubr.f32.vlgmr.msra.gmra.mrb[24].mxu0 %v8311_v39 }
 0xff4   :  { %3560 = vmatprep.mubr.f32.mxu1 %v7722_v44  ;;  %3637 = vmatprep.mubr.f32.mxu0 %v7722_v44 }
 0xff7   :  { %3561 = vmatmul.mubr.f32.gmra.mrb[56].mxu1 %v8315_v57  ;;  %3638 = vmatmul.mubr.f32.gmra.mrb[26].mxu0 %v8315_v57 }
 0xff8   :  { %6190 = vmatprep.mubr.msk.f32.mxu1 %vm7723_vm0, %v7722_v44 }
0x1086   :  { %v3248_v0 = vpop.f32.mrb[46].mxu1  ;;  %v3325_v40 = vpop.f32.mrb[16].mxu0 }
0x1087   :  { %v3250_v17 = vpop.f32.mrb[47].mxu1  ;;  %v8346_v18 = vpop.f32.mrb[17].mxu0  ;;  %v3249_v53 = vadd.f32 %v3248_v0, %v3125_v5  ;;  %v3326_v24 = vadd.f32 %v3325_v40, %v3133_v30 }
0x1088   :  { %v3251_v49 = vadd.f32 %v3250_v17, %v3129_v63 }
0x108a   :  { %v3254_v1 = vpop.f32.mrb[48].mxu1  ;;  %v3331_v22 = vpop.f32.mrb[18].mxu0  ;;  %6189 = vmatpush3.xpose.msra.mxu1 %v3251_v49 }
0x108b   :  { %v8350_v9 = vadd.f32 %v3331_v22, %v3133_v30  ;;  %v3256_v61 = vpop.f32.mrb[49].mxu1  ;;  %v8352_v23 = vpop.f32.mrb[19].mxu0  ;;  %6193 = vmatprep.subr.mxu1 %v7722_v44  ;;  %v3255_v62 = vadd.f32 %v3254_v1, %v3125_v5 }
0x108c   :  { %v3257_v56 = vadd.f32 %v3256_v61, %v3129_v63 }
0x108d   :  { %6191 = vmatmul.mubr.f32.vlgmr.msra.gmra.mrb[58].mxu1 %v3249_v53 }
0x108e   :  { %6194 = vmatpush3.xpose.msra.mxu1 %v3257_v56  ;;  %6195 = vmatprep.mubr.msk.f32.mxu1 %vm7723_vm0, %v7722_v44 }
0x108f   :  { %6198 = vmatprep.subr.mxu1 %v7722_v44 }
0x1091   :  { %6196 = vmatmul.mubr.f32.vlgmr.msra.gmra.mrb[60].mxu1 %v3255_v62 }
0x1092   :  { %6199 = vmatpush3.msra.mxu1 %v3326_v24  ;;  %6200 = vmatprep.mubr.msk.f32.mxu1 %vm7723_vm0, %v7722_v44 }
0x1093   :  { %6203 = vmatprep.subr.mxu1 %v7722_v44 }
0x10a6   :  { %v8361_v25 = vpop.f32.mrb[50].mxu1  ;;  %v8363_v27 = vpop.f32.mrb[20].mxu0 }
0x10a7   :  { %v8365_v29 = vpop.f32.mrb[51].mxu1  ;;  %v8367_v31 = vpop.f32.mrb[21].mxu0 }
0x10aa   :  { %v8374_v43 = vpop.f32.mrb[52].mxu1  ;;  %v8376_v36 = vpop.f32.mrb[22].mxu0 }
0x10ab   :  { %v3410_v20 = vpop.f32.mrb[53].mxu1  ;;  %v8378_v34 = vpop.f32.mrb[23].mxu0 }
0x10ac   :  { %v8381_v10 = vadd.f32 %v3410_v20, %v8372_v38 }
0x10c6   :  { %v8386_v52 = vpop.f32.mrb[54].mxu1  ;;  %v3633_v33 = vpop.f32.mrb[24].mxu0 }
0x10c7   :  { %v8388_v51 = vadd.f32 %v3633_v33, %v3165_v41  ;;  %v3558_v58 = vpop.f32.mrb[55].mxu1  ;;  %v3635_v46 = vpop.f32.mrb[25].mxu0  ;;  %v3137_v33 = vrot.slane %v8340_v45, %v8117_v47  ;;  %v3405_v47 = vadd.f32 %v8365_v29, %v8372_v38 }
0x10c8   :  { %v8390_v48 = vadd.f32 %v3558_v58, %v3161_v15  ;;  %v8392_v50 = vadd.f32 %v3635_v46, %v3169_v3 }
0x10c9   :  { %v3328_v58 = vadd.f32 %v8346_v18, %v3137_v33  ;;  %v3334_v46 = vadd.f32 %v8352_v23, %v3137_v33  ;;  %v4287_v33 = vld [vmem:[#allocation9 + $0x2c8] sm:$0xff] }
0x10ca   :  { %v3562_v54 = vpop.f32.mrb[56].mxu1  ;;  %v3639_v16 = vpop.f32.mrb[26].mxu0 }
0x10cb   :  { %v8398_v12 = vadd.f32 %v3562_v54, %v8395_v26  ;;  %v8400_v55 = vadd.f32 %v3639_v16, %v3165_v41  ;;  %v3564_v13 = vpop.f32.mrb[57].mxu1  ;;  %v3641_v59 = vpop.f32.mrb[27].mxu0 }
0x10cc   :  { %v8402_v35 = vadd.f32 %v3564_v13, %v3161_v15  ;;  %v8404_v60 = vadd.f32 %v3641_v59, %v3169_v3  ;;  %v3141_v15 = vrot.slane %v8340_v45, %v501_v42 }
0x10ce   :  { %v3409_v42 = vadd.f32 %v8374_v43, %v3141_v15 }
0x1160   :  { %v3710_v2 = vpop.f32.mrb[58].mxu1 }
0x1161   :  { %v3711_v14 = vadd.f32 %v8409_v6, %v3710_v2  ;;  %v6192_v4 = vpop.f32.mrb[59].mxu1 }
0x1163   :  { %v3784_v28 = vsel %vm1145_vm1, %v3711_v14, -inf }
0x1164   :  { %3785 = vmax.xlane.f32.xlu0 %v3784_v28  ;;  %v3780_v7 = vpop.f32.mrb[60].mxu1 }
0x1165   :  { %v3781_v8 = vadd.f32 %v8416_v32, %v3780_v7  ;;  %v6197_v63 = vpop.f32.mrb[61].mxu1 }
0x1167   :  { %v3787_v0 = vsel %vm1145_vm1, %v3781_v8, -inf }
0x1168   :  { %3788 = vmax.xlane.f32.xlu1 %v3787_v0 }
0x11f1   :  { %v3786_v40 = vpop.xlane.xlu0 %3785 }
0x11f2   :  { %v3790_v5 = vsub.f32 %v3711_v14, %v3786_v40 }
0x11f4   :  { %v3792_v17 = vmul.f32 1.442695, %v3790_v5 }
0x11f5   :  { %v3789_v49 = vpop.xlane.xlu1 %3788 }
0x11f6   :  { %7330 = vpow2.f32 %v3792_v17  ;;  %v3791_v30 = vsub.f32 %v3781_v8, %v3789_v49 }
0x11f8   :  { %v3794_v1 = vmul.f32 1.442695, %v3791_v30  ;;  %v4278_v30 = vld [vmem:[#allocation9 + $0x280] sm:$0xff] }
0x11fa   :  { %7332 = vpow2.f32 %v3794_v1  ;;  %v4279_v1 = vld [vmem:[#allocation9 + $0x288] sm:$0xff] }
0x1200   :  { %v7331_v22 = vpop.eup %7330 }
0x1201   :  { %v3796_v53 = vsel %vm1145_vm1, %v7331_v22, 0.0 }
0x1202   :  { %3797 = vadd.xlane.f32.xlu0 %v3796_v53  ;;  %v7054_v53 = vpack.c.bf16 %v4279_v1, %v4278_v30  ;;  %v3959_v30 = vld [vmem:[#allocation9 + $0x230] sm:$0xff]  ;;  %v3960_v1 = vld [vmem:[#allocation9 + $0x238] sm:$0xff] }
0x1204   :  { %v7333_v61 = vpop.eup %7332  ;;  %7055 = vmatprep.subr.bf16.mxu0 %v7054_v53 }
0x1205   :  { %v3799_v56 = vsel %vm1145_vm1, %v7333_v61, 0.0  ;;  %7057 = vmatpush3.bf16.msra.mxu0 %v7054_v53  ;;  %v7098_v53 = vpack.c.bf16 %v3960_v1, %v3959_v30  ;;  %v4766_v30 = vld [vmem:[#allocation9 + $0x368] sm:$0xff] }
0x1206   :  { %3800 = vadd.xlane.f32.xlu1 %v3799_v56 }
0x128f   :  { %v3798_v62 = vpop.xlane.xlu0 %3797 }
0x1290   :  { %7334 = vrcp.f32 %v3798_v62  ;;  %v4282_v62 = vld [vmem:[#allocation9 + $0x2a0] sm:$0xff] }
0x1293   :  { %v3801_v24 = vpop.xlane.xlu1 %3800 }
0x1294   :  { %7336 = vrcp.f32 %v3801_v24  ;;  %v4283_v24 = vld [vmem:[#allocation9 + $0x2a8] sm:$0xff] }
0x129a   :  { %v7335_v20 = vpop.eup %7334 }
0x129b   :  { %v3804_v37 = vmul.f32 %v7335_v20, %v7331_v22  ;;  %v4280_v22 = vld [vmem:[#allocation9 + $0x290] sm:$0xff]  ;;  %v7062_v20 = vpack.c.bf16 %v4283_v24, %v4282_v62  ;;  %v3961_v62 = vld [vmem:[#allocation9 + $0x240] sm:$0xff]  ;;  %v3962_v24 = vld [vmem:[#allocation9 + $0x248] sm:$0xff] }
0x129d   :  { %6201 = vmatmul.mubr.msk.f32.vlgmr.msra.gmra.mrb[62].mxu1 %vm1145_vm1, %v3804_v37  ;;  %v4284_v37 = vld [vmem:[#allocation9 + $0x2b0] sm:$0xff] }
0x129e   :  { %v7337_v41 = vpop.eup %7336  ;;  %6204 = vmatpush3.msra.mxu1 %v8350_v9  ;;  %6205 = vmatprep.mubr.msk.f32.mxu1 %vm7723_vm0, %v7722_v44  ;;  %v3403_v9 = vadd.f32 %v8361_v25, %v3141_v15 }
0x129f   :  { %v3805_v3 = vmul.f32 %v7337_v41, %v7333_v61  ;;  %6208 = vmatprep.subr.mxu1 %v7722_v44  ;;  %v4281_v61 = vld [vmem:[#allocation9 + $0x298] sm:$0xff] }
0x12a0   :  { %v7058_v56 = vpack.c.bf16 %v4281_v61, %v4280_v22  ;;  %v4285_v41 = vld [vmem:[#allocation9 + $0x2b8] sm:$0xff] }
0x12a1   :  { %6206 = vmatmul.mubr.msk.f32.vlgmr.msra.gmra.mrb[64].mxu1 %vm1145_vm1, %v3805_v3  ;;  %v7066_v15 = vpack.c.bf16 %v4285_v41, %v4284_v37  ;;  %v4286_v3 = vld [vmem:[#allocation9 + $0x2c0] sm:$0xff] }
0x12a2   :  { %6210 = vmatprep.mubr.msk.f32.mxu1 %vm7723_vm0, %v7722_v44  ;;  %7059 = vmatprep.subr.bf16.mxu0 %v7058_v56 }
0x12a3   :  { %7061 = vmatpush3.bf16.msra.mxu0 %v7058_v56 }
0x12a4   :  { %7063 = vmatprep.subr.bf16.mxu0 %v7062_v20 }
0x12a5   :  { %6209 = vmatpush3.xpose.msra.mxu1 %v3403_v9  ;;  %v7070_v9 = vpack.c.bf16 %v4287_v33, %v4286_v3  ;;  %v3963_v3 = vld [vmem:[#allocation9 + $0x250] sm:$0xff]  ;;  %v3964_v33 = vld [vmem:[#allocation9 + $0x258] sm:$0xff] }
0x12a6   :  { %6213 = vmatprep.subr.mxu1 %v7722_v44 }
0x12a7   :  { %7065 = vmatpush3.bf16.msra.mxu0 %v7062_v20 }
0x12a8   :  { %6211 = vmatmul.mubr.f32.vlgmr.msra.gmra.mrb[66].mxu1 %v3328_v58  ;;  %7067 = vmatprep.subr.bf16.mxu0 %v7066_v15  ;;  %v4288_v58 = vld [vmem:[#allocation9 + $0x2d0] sm:$0xff] }
0x12a9   :  { %6214 = vmatpush3.xpose.msra.mxu1 %v3409_v42  ;;  %6215 = vmatprep.mubr.msk.f32.mxu1 %vm7723_vm0, %v7722_v44  ;;  %v4289_v42 = vld [vmem:[#allocation9 + $0x2d8] sm:$0xff] }
0x12aa   :  { %6218 = vmatprep.subr.mxu1 %v7722_v44 }
0x12ab   :  { %7069 = vmatpush3.bf16.msra.mxu0 %v7066_v15 }
0x12ac   :  { %6216 = vmatmul.mubr.f32.vlgmr.msra.gmra.mrb[68].mxu1 %v3334_v46  ;;  %7071 = vmatprep.subr.bf16.mxu0 %v7070_v9  ;;  %v7074_v46 = vpack.c.bf16 %v4289_v42, %v4288_v58  ;;  %v7106_v58 = vpack.c.bf16 %v3964_v33, %v3963_v3  ;;  %v3965_v42 = vld [vmem:[#allocation9 + $0x260] sm:$0xff] }
0x12ad   :  { %6219 = vmatpush3.msra.mxu1 %v3405_v47  ;;  %6220 = vmatprep.mubr.msk.f32.mxu1 %vm7723_vm0, %v7722_v44  ;;  %v4290_v47 = vld [vmem:[#allocation9 + $0x2e0] sm:$0xff] }
0x12ae   :  { %6223 = vmatprep.subr.mxu1 %v7722_v44 }
0x12af   :  { %7073 = vmatpush3.bf16.msra.mxu0 %v7070_v9 }
0x12b0   :  { %7075 = vmatprep.subr.bf16.mxu0 %v7074_v46 }
0x12b3   :  { %7077 = vmatpush3.bf16.msra.mxu0 %v7074_v46  ;;  %v3966_v46 = vld [vmem:[#allocation9 + $0x268] sm:$0xff] }
0x1370   :  { %v8448_v18 = vpop.f32.mrb[62].mxu1 }
0x1371   :  { %v6202_v25 = vpop.f32.mrb[63].mxu1 }
0x1372   :  { %v4291_v25 = vld [vmem:[#allocation9 + $0x2e8] sm:$0xff] }
0x1374   :  { %v8450_v43 = vpop.f32.mrb[64].mxu1 }
0x1375   :  { %v6207_v54 = vpop.f32.mrb[65].mxu1 }
0x1376   :  { %v7078_v54 = vpack.c.bf16 %v4291_v25, %v4290_v47  ;;  %v7110_v47 = vpack.c.bf16 %v3966_v46, %v3965_v42  ;;  %v3967_v25 = vld [vmem:[#allocation9 + $0x270] sm:$0xff] }
0x1378   :  { %7079 = vmatprep.subr.bf16.mxu0 %v7078_v54 }
0x1379   :  { %7081 = vmatpush3.bf16.msra.mxu0 %v7078_v54  ;;  %v3968_v54 = vld [vmem:[#allocation9 + $0x278] sm:$0xff] }
0x137b   :  { %v4035_v16 = vpop.f32.mrb[66].mxu1 }
0x137c   :  { %v4036_v23 = vadd.f32 %v8409_v6, %v4035_v16  ;;  %v6212_v13 = vpop.f32.mrb[67].mxu1 }
0x137e   :  { %v4109_v59 = vsel %vm1145_vm1, %v4036_v23, -inf }
0x137f   :  { %4110 = vmax.xlane.f32.xlu0 %v4109_v59  ;;  %v4105_v29 = vpop.f32.mrb[68].mxu1 }
0x1380   :  { %v4106_v38 = vadd.f32 %v8416_v32, %v4105_v29  ;;  %v6217_v2 = vpop.f32.mrb[69].mxu1 }
0x1382   :  { %v4112_v14 = vsel %vm1145_vm1, %v4106_v38, -inf }
0x1383   :  { %4113 = vmax.xlane.f32.xlu1 %v4112_v14  ;;  %v3149_v14 = vrot.slane %v8340_v45, %v509_v21  ;;  %v3557_v21 = vadd.f32 %v8386_v52, %v8395_v26 }
0x1385   :  { %v3486_v11 = vadd.f32 %v8376_v36, %v3149_v14 }
0x140c   :  { %v4111_v4 = vpop.xlane.xlu0 %4110 }
0x140d   :  { %v4115_v28 = vsub.f32 %v4036_v23, %v4111_v4  ;;  %v3480_v4 = vadd.f32 %v8363_v27, %v3149_v14  ;;  %v4293_v27 = vld [vmem:[#allocation9 + $0x2f8] sm:$0xff] }
0x140f   :  { %v4117_v7 = vmul.f32 1.442695, %v4115_v28  ;;  %v3954_v28 = vld [vmem:[#allocation9 + $0x208] sm:$0xff] }
0x1410   :  { %v4114_v8 = vpop.xlane.xlu1 %4113 }
0x1411   :  { %7338 = vpow2.f32 %v4117_v7  ;;  %v4116_v63 = vsub.f32 %v4106_v38, %v4114_v8  ;;  %v3153_v38 = vrot.slane %v8340_v45, %v513_v19  ;;  %v4292_v45 = vld [vmem:[#allocation9 + $0x2f0] sm:$0xff] }
0x1412   :  { %v3955_v8 = vld [vmem:[#allocation9 + $0x210] sm:$0xff] }
0x1413   :  { %v4119_v0 = vmul.f32 1.442695, %v4116_v63  ;;  %v3488_v19 = vadd.f32 %v8378_v34, %v3153_v38  ;;  %v3953_v34 = vld [vmem:[#allocation9 + $0x200] sm:$0xff]  ;;  %v3956_v63 = vld [vmem:[#allocation9 + $0x218] sm:$0xff] }
0x1414   :  { %v7086_v36 = vpack.c.bf16 %v3954_v28, %v3953_v34  ;;  %v7090_v26 = vpack.c.bf16 %v3956_v63, %v3955_v8  ;;  %v4757_v34 = vld [vmem:[#allocation9 + $0x320] sm:$0xff]  ;;  %v4758_v28 = vld [vmem:[#allocation9 + $0x328] sm:$0xff]  ;;  %v4760_v8 = vld [vmem:[#allocation9 + $0x338] sm:$0xff] }
0x1415   :  { %7340 = vpow2.f32 %v4119_v0 }
0x141b   :  { %v7339_v40 = vpop.eup %7338 }
0x141c   :  { %v4121_v5 = vsel %vm1145_vm1, %v7339_v40, 0.0 }
0x141d   :  { %4122 = vadd.xlane.f32.xlu0 %v4121_v5  ;;  %v3958_v5 = vld [vmem:[#allocation9 + $0x228] sm:$0xff] }
0x141f   :  { %v7341_v17 = vpop.eup %7340 }
0x1420   :  { %v4124_v49 = vsel %vm1145_vm1, %v7341_v17, 0.0 }
0x1421   :  { %4125 = vadd.xlane.f32.xlu1 %v4124_v49 }
0x14aa   :  { %v4123_v16 = vpop.xlane.xlu0 %4122 }
0x14ab   :  { %7342 = vrcp.f32 %v4123_v16  ;;  %v7114_v16 = vpack.c.bf16 %v3968_v54, %v3967_v25 }
0x14ae   :  { %v4126_v23 = vpop.xlane.xlu1 %4125 }
0x14af   :  { %7344 = vrcp.f32 %v4126_v23 }
0x14b5   :  { %v7343_v13 = vpop.eup %7342 }
0x14b6   :  { %v4129_v59 = vmul.f32 %v7343_v13, %v7339_v40  ;;  %v3957_v40 = vld [vmem:[#allocation9 + $0x220] sm:$0xff] }
0x14b7   :  { %v7094_v49 = vpack.c.bf16 %v3958_v5, %v3957_v40  ;;  %v4763_v40 = vld [vmem:[#allocation9 + $0x350] sm:$0xff]  ;;  %v4764_v5 = vld [vmem:[#allocation9 + $0x358] sm:$0xff] }
0x14b8   :  { %6221 = vmatmul.mubr.msk.f32.vlgmr.msra.gmra.mrb[70].mxu1 %vm1145_vm1, %v4129_v59 }
0x14b9   :  { %v7345_v29 = vpop.eup %7344  ;;  %6224 = vmatpush3.msra.mxu1 %v8381_v10  ;;  %6225 = vmatprep.mubr.msk.f32.mxu1 %vm7723_vm0, %v7722_v44  ;;  %v3482_v10 = vadd.f32 %v8367_v31, %v3153_v38  ;;  %v7082_v31 = vpack.c.bf16 %v4293_v27, %v4292_v45  ;;  %v4755_v45 = vld [vmem:[#allocation9 + $0x310] sm:$0xff]  ;;  %v4756_v27 = vld [vmem:[#allocation9 + $0x318] sm:$0xff] }
0x14ba   :  { %v4130_v2 = vmul.f32 %v7345_v29, %v7341_v17  ;;  %6298 = vmatprep.subr.mxu1 %v7722_v44 }
0x14bb   :  { %7083 = vmatprep.subr.bf16.mxu0 %v7082_v31 }
0x14bc   :  { %6226 = vmatmul.mubr.msk.f32.vlgmr.msra.gmra.mrb[72].mxu1 %vm1145_vm1, %v4130_v2  ;;  %7085 = vmatpush3.bf16.msra.mxu0 %v7082_v31  ;;  %v7122_v31 = vpack.c.bf16 %v4756_v27, %v4755_v45  ;;  %v5162_v45 = vld [vmem:[#allocation9 + $0x3b8] sm:$0xff]  ;;  %v5163_v27 = vld [vmem:[#allocation9 + $0x3c0] sm:$0xff] }
0x14bd   :  { %6300 = vmatprep.mubr.msk.f32.mxu1 %vm7723_vm0, %v7722_v44  ;;  %7087 = vmatprep.subr.bf16.mxu0 %v7086_v36 }
0x14c0   :  { %6299 = vmatpush3.xpose.msra.mxu1 %v3482_v10 }
0x14c1   :  { %6303 = vmatprep.subr.mxu1 %v7722_v44 }
0x14c3   :  { %6301 = vmatmul.mubr.f32.vlgmr.msra.gmra.mrb[74].mxu1 %v3480_v4 }
0x14c4   :  { %6304 = vmatpush3.xpose.msra.mxu1 %v3488_v19  ;;  %6305 = vmatprep.mubr.msk.f32.mxu1 %vm7723_vm0, %v7722_v44 }
0x14c5   :  { %6308 = vmatprep.subr.mxu1 %v7722_v44 }
0x14c7   :  { %6306 = vmatmul.mubr.f32.vlgmr.msra.gmra.mrb[76].mxu1 %v3486_v11  ;;  %v4753_v11 = vld [vmem:[#allocation9 + $0x300] sm:$0xff] }
0x14c8   :  { %6309 = vmatpush3.msra.mxu1 %v3557_v21  ;;  %6310 = vmatprep.mubr.msk.f32.mxu1 %vm7723_vm0, %v7722_v44  ;;  %v4754_v21 = vld [vmem:[#allocation9 + $0x308] sm:$0xff] }
0x14c9   :  { %6313 = vmatprep.subr.mxu1 %v7722_v44 }
0x158b   :  { %v4200_v7 = vpop.f32.mrb[70].mxu1 }
0x158c   :  { %v6222_v52 = vpop.f32.mrb[71].mxu1  ;;  %6260 = vmatprep.mubr.f32.mxu0 %v4200_v7  ;;  %v4759_v7 = vld [vmem:[#allocation9 + $0x330] sm:$0xff] }
0x158d   :  { %v7130_v63 = vpack.c.bf16 %v4760_v8, %v4759_v7  ;;  %v4761_v52 = vld [vmem:[#allocation9 + $0x340] sm:$0xff] }
0x158e   :  { %v5167_v8 = vld [vmem:[#allocation9 + $0x3e0] sm:$0xff] }
0x158f   :  { %v4273_v0 = vpop.f32.mrb[72].mxu1 }
0x1590   :  { %v6227_v17 = vpop.f32.mrb[73].mxu1  ;;  %6261 = vmatmul.mubr.f32.vlgmr.msra.gmra.mrb[28].mxu0 %v4273_v0 }
0x1591   :  { %7089 = vmatpush3.bf16.msra.mxu0 %v7086_v36  ;;  %6295 = vmatprep.mubr.f32.mxu0 %v8448_v18  ;;  %v7102_v18 = vpack.c.bf16 %v3962_v24, %v3961_v62  ;;  %v7126_v36 = vpack.c.bf16 %v4758_v28, %v4757_v34  ;;  %v7138_v17 = vpack.c.bf16 %v4764_v5, %v4763_v40  ;;  %v5165_v28 = vld [vmem:[#allocation9 + $0x3d0] sm:$0xff] }
0x1592   :  { %7091 = vmatprep.subr.bf16.mxu0 %v7090_v26 }
0x1595   :  { %7093 = vmatpush3.bf16.msra.mxu0 %v7090_v26  ;;  %v4762_v26 = vld [vmem:[#allocation9 + $0x348] sm:$0xff] }
0x1596   :  { %v4510_v22 = vpop.f32.mrb[74].mxu1  ;;  %7095 = vmatprep.subr.bf16.mxu0 %v7094_v49  ;;  %v7134_v0 = vpack.c.bf16 %v4762_v26, %v4761_v52 }
0x1597   :  { %v4511_v61 = vadd.f32 %v8409_v6, %v4510_v22  ;;  %v6302_v56 = vpop.f32.mrb[75].mxu1 }
0x1599   :  { %7097 = vmatpush3.bf16.msra.mxu0 %v7094_v49  ;;  %v4584_v20 = vsel %vm1145_vm1, %v4511_v61, -inf  ;;  %v4765_v49 = vld [vmem:[#allocation9 + $0x360] sm:$0xff] }
0x159a   :  { %4585 = vmax.xlane.f32.xlu0 %v4584_v20  ;;  %v4580_v37 = vpop.f32.mrb[76].mxu1  ;;  %7099 = vmatprep.subr.bf16.mxu0 %v7098_v53  ;;  %v7142_v1 = vpack.c.bf16 %v4766_v30, %v4765_v49  ;;  %v5169_v30 = vld [vmem:[#allocation9 + $0x3f0] sm:$0xff] }
0x159b   :  { %v4581_v41 = vadd.f32 %v8416_v32, %v4580_v37  ;;  %v6307_v15 = vpop.f32.mrb[77].mxu1 }
0x159d   :  { %7101 = vmatpush3.bf16.msra.mxu0 %v7098_v53  ;;  %v4587_v9 = vsel %vm1145_vm1, %v4581_v41, -inf }
0x159e   :  { %4588 = vmax.xlane.f32.xlu1 %v4587_v9  ;;  %7103 = vmatprep.subr.bf16.mxu0 %v7102_v18 }
0x15a1   :  { %7105 = vmatpush3.bf16.msra.mxu0 %v7102_v18 }
0x15a2   :  { %7107 = vmatprep.subr.bf16.mxu0 %v7106_v58 }
0x15a5   :  { %7109 = vmatpush3.bf16.msra.mxu0 %v7106_v58 }
0x15a6   :  { %7111 = vmatprep.subr.bf16.mxu0 %v7110_v47 }
0x15a9   :  { %7113 = vmatpush3.bf16.msra.mxu0 %v7110_v47 }
0x15aa   :  { %7115 = vmatprep.subr.bf16.mxu0 %v7114_v16 }
0x15ad   :  { %7117 = vmatpush3.bf16.msra.mxu0 %v7114_v16 }
0x15b0   :  { %6296 = vmatmul.mubr.f32.vlgmr.msra.gmra.mrb[28].mxu0 %v8450_v43  ;;  %v7118_v43 = vpack.c.bf16 %v4754_v21, %v4753_v11  ;;  %v5161_v21 = vld [vmem:[#allocation9 + $0x3b0] sm:$0xff] }
0x15b2   :  { %7119 = vmatprep.subr.bf16.mxu0 %v7118_v43 }
0x15b3   :  { %7121 = vmatpush3.bf16.msra.mxu0 %v7118_v43  ;;  %v7162_v43 = vpack.c.bf16 %v5162_v45, %v5161_v21 }
0x15b4   :  { %7123 = vmatprep.subr.bf16.mxu0 %v7122_v31 }
0x15b7   :  { %7125 = vmatpush3.bf16.msra.mxu0 %v7122_v31  ;;  %v5164_v31 = vld [vmem:[#allocation9 + $0x3c8] sm:$0xff] }
0x15b8   :  { %7127 = vmatprep.subr.bf16.mxu0 %v7126_v36  ;;  %v7166_v34 = vpack.c.bf16 %v5164_v31, %v5163_v27 }
0x15bb   :  { %7129 = vmatpush3.bf16.msra.mxu0 %v7126_v36  ;;  %v5166_v36 = vld [vmem:[#allocation9 + $0x3d8] sm:$0xff] }
0x15bc   :  { %7131 = vmatprep.subr.bf16.mxu0 %v7130_v63  ;;  %v7170_v7 = vpack.c.bf16 %v5166_v36, %v5165_v28 }
0x15bf   :  { %7133 = vmatpush3.bf16.msra.mxu0 %v7130_v63  ;;  %v5168_v63 = vld [vmem:[#allocation9 + $0x3e8] sm:$0xff] }
0x15c0   :  { %7135 = vmatprep.subr.bf16.mxu0 %v7134_v0  ;;  %v7174_v52 = vpack.c.bf16 %v5168_v63, %v5167_v8 }
0x15c3   :  { %7137 = vmatpush3.bf16.msra.mxu0 %v7134_v0 }
0x15c4   :  { %7139 = vmatprep.subr.bf16.mxu0 %v7138_v17 }
0x15c7   :  { %7141 = vmatpush3.bf16.msra.mxu0 %v7138_v17 }
0x15c8   :  { %7143 = vmatprep.subr.bf16.mxu0 %v7142_v1 }
0x15cb   :  { %7145 = vmatpush3.bf16.msra.mxu0 %v7142_v1  ;;  %v5170_v1 = vld [vmem:[#allocation9 + $0x3f8] sm:$0xff] }
0x1627   :  { %v4586_v23 = vpop.xlane.xlu0 %4585 }
0x1628   :  { %v4590_v13 = vsub.f32 %v4511_v61, %v4586_v23 }
0x162a   :  { %v4592_v59 = vmul.f32 1.442695, %v4590_v13 }
0x162b   :  { %v4589_v29 = vpop.xlane.xlu1 %4588 }
0x162c   :  { %7346 = vpow2.f32 %v4592_v59  ;;  %v4591_v38 = vsub.f32 %v4581_v41, %v4589_v29  ;;  %v5156_v29 = vld [vmem:[#allocation9 + $0x388] sm:$0xff] }
0x162e   :  { %v4594_v2 = vmul.f32 1.442695, %v4591_v38  ;;  %v5157_v38 = vld [vmem:[#allocation9 + $0x390] sm:$0xff] }
0x1630   :  { %7348 = vpow2.f32 %v4594_v2 }
0x1636   :  { %v7347_v14 = vpop.eup %7346 }
0x1637   :  { %v4596_v10 = vsel %vm1145_vm1, %v7347_v14, 0.0 }
0x1638   :  { %4597 = vadd.xlane.f32.xlu0 %v4596_v10 }
0x163a   :  { %v7349_v4 = vpop.eup %7348 }
0x163b   :  { %v4599_v19 = vsel %vm1145_vm1, %v7349_v4, 0.0 }
0x163c   :  { %4600 = vadd.xlane.f32.xlu1 %v4599_v19  ;;  %v5160_v19 = vld [vmem:[#allocation9 + $0x3a8] sm:$0xff] }
0x16c5   :  { %v4598_v22 = vpop.xlane.xlu0 %4597 }
0x16c6   :  { %7350 = vrcp.f32 %v4598_v22  ;;  %v7178_v22 = vpack.c.bf16 %v5170_v1, %v5169_v30  ;;  %v5613_v30 = vld [vmem:[#allocation13 + $0x1] ss:$0 sm:$0xff] }
0x16c9   :  { %v4601_v53 = vpop.xlane.xlu1 %4600 }
0x16ca   :  { %7352 = vrcp.f32 %v4601_v53 }
0x16d0   :  { %v7351_v61 = vpop.eup %7350 }
0x16d1   :  { %v4604_v56 = vmul.f32 %v7351_v61, %v7347_v14  ;;  %v5158_v14 = vld [vmem:[#allocation9 + $0x398] sm:$0xff] }
0x16d2   :  { %v7154_v10 = vpack.c.bf16 %v5158_v14, %v5157_v38  ;;  %v5426_v14 = vld [vmem:[#allocation18 + $0x88] sm:$0xff] }
0x16d3   :  { %6311 = vmatmul.mubr.msk.f32.vlgmr.msra.gmra.mrb[78].mxu1 %vm1145_vm1, %v4604_v56 }
0x16d4   :  { %v7353_v62 = vpop.eup %7352  ;;  %6314 = vmatpush3.msra.mxu1 %v8398_v12  ;;  %6315 = vmatprep.mubr.msk.f32.mxu1 %vm7723_vm0, %v7722_v44  ;;  %v4768_v12 = vld [vmem:[#allocation9 + $0x378] sm:$0xff] }
0x16d5   :  { %v4605_v24 = vmul.f32 %v7353_v62, %v7349_v4  ;;  %6353 = vmatprep.subr.mxu1 %v7722_v44  ;;  %v5159_v4 = vld [vmem:[#allocation9 + $0x3a0] sm:$0xff] }
0x16d6   :  { %v7158_v11 = vpack.c.bf16 %v5160_v19, %v5159_v4 }
0x16d7   :  { %6316 = vmatmul.mubr.msk.f32.vlgmr.msra.gmra.mrb[80].mxu1 %vm1145_vm1, %v4605_v24  ;;  %v5307_v24 = vld [vmem:[#allocation15 + $0x80] sm:$0xff] }
0x16d8   :  { %6355 = vmatprep.mubr.msk.f32.mxu1 %vm7723_vm0, %v7722_v44 }
0x16db   :  { %6354 = vmatpush3.xpose.msra.mxu1 %v8388_v51  ;;  %v4767_v51 = vld [vmem:[#allocation9 + $0x370] sm:$0xff] }
0x16dc   :  { %6358 = vmatprep.subr.mxu1 %v7722_v44  ;;  %v7146_v20 = vpack.c.bf16 %v4768_v12, %v4767_v51  ;;  %v5308_v51 = vld [vmem:[#allocation15 + $0x88] sm:$0xff] }
0x16de   :  { %6356 = vmatmul.mubr.f32.vlgmr.msra.gmra.mrb[82].mxu1 %v8390_v48  ;;  %7147 = vmatprep.subr.bf16.mxu0 %v7146_v20 }
0x16df   :  { %6359 = vmatpush3.xpose.msra.mxu1 %v8400_v55  ;;  %6360 = vmatprep.mubr.msk.f32.mxu1 %vm7723_vm0, %v7722_v44 }
0x16e0   :  { %6363 = vmatprep.subr.mxu1 %v7722_v44  ;;  %7149 = vmatpush3.bf16.msra.mxu0 %v7146_v20 }
0x16e2   :  { %6361 = vmatmul.mubr.f32.vlgmr.msra.gmra.mrb[84].mxu1 %v8402_v35 }
0x16e3   :  { %6364 = vmatpush3.msra.mxu1 %v8392_v50  ;;  %6365 = vmatprep.mubr.msk.f32.mxu1 %vm7723_vm0, %v7722_v44 }
0x16e4   :  { %6368 = vmatprep.subr.mxu1 %v7722_v44 }
0x17a6   :  { %v4675_v48 = vpop.f32.mrb[78].mxu1 }
0x17a7   :  { %v6312_v55 = vpop.f32.mrb[79].mxu1  ;;  %6350 = vmatprep.mubr.f32.mxu0 %v4675_v48 }
0x17aa   :  { %v4748_v37 = vpop.f32.mrb[80].mxu1 }
0x17ab   :  { %v6317_v18 = vpop.f32.mrb[81].mxu1  ;;  %6351 = vmatmul.mubr.f32.vlgmr.msra.gmra.mrb[28].mxu0 %v4748_v37 }
0x17b1   :  { %v4912_v41 = vpop.f32.mrb[82].mxu1 }
0x17b2   :  { %v4913_v35 = vadd.f32 %v8409_v6, %v4912_v41  ;;  %v6357_v50 = vpop.f32.mrb[83].mxu1 }
0x17b3   :  { %v5309_v50 = vld [vmem:[#allocation15 + $0x90] sm:$0xff] }
0x17b4   :  { %v4986_v15 = vsel %vm1145_vm1, %v4913_v35, -inf }
0x17b5   :  { %4987 = vmax.xlane.f32.xlu0 %v4986_v15  ;;  %v4982_v3 = vpop.f32.mrb[84].mxu1  ;;  %v5310_v15 = vld [vmem:[#allocation15 + $0x98] sm:$0xff] }
0x17b6   :  { %v4983_v33 = vadd.f32 %v8416_v32, %v4982_v3  ;;  %v6362_v9 = vpop.f32.mrb[85].mxu1  ;;  %v5155_v32 = vld [vmem:[#allocation9 + $0x380] sm:$0xff]  ;;  %v7186_v3 = vpack.c.bf16 %v5310_v15, %v5309_v50  ;;  %v5437_v15 = vld [vmem:[#allocation18 + $0xe0] sm:$0xff] }
0x17b7   :  { %v7150_v2 = vpack.c.bf16 %v5156_v29, %v5155_v32  ;;  %v5313_v9 = vld [vmem:[#allocation15 + $0xb0] sm:$0xff]  ;;  %v5322_v29 = vld [vmem:[#allocation15 + $0xf8] sm:$0xff] }
0x17b8   :  { %v4989_v58 = vsel %vm1145_vm1, %v4983_v33, -inf  ;;  %v5321_v32 = vld [vmem:[#allocation15 + $0xf0] sm:$0xff] }
0x17b9   :  { %4990 = vmax.xlane.f32.xlu1 %v4989_v58  ;;  %7151 = vmatprep.subr.bf16.mxu0 %v7150_v2  ;;  %v5314_v58 = vld [vmem:[#allocation15 + $0xb8] sm:$0xff]  ;;  %v7210_v38 = vpack.c.bf16 %v5322_v29, %v5321_v32 }
0x17ba   :  { %7153 = vmatpush3.bf16.msra.mxu0 %v7150_v2  ;;  %v5425_v2 = vld [vmem:[#allocation18 + $0x80] sm:$0xff] }
0x17bb   :  { %7155 = vmatprep.subr.bf16.mxu0 %v7154_v10 }
0x17be   :  { %7157 = vmatpush3.bf16.msra.mxu0 %v7154_v10  ;;  %v7214_v10 = vpack.c.bf16 %v5426_v14, %v5425_v2 }
0x17bf   :  { %7159 = vmatprep.subr.bf16.mxu0 %v7158_v11 }
0x17c2   :  { %7161 = vmatpush3.bf16.msra.mxu0 %v7158_v11 }
0x17c3   :  { %7163 = vmatprep.subr.bf16.mxu0 %v7162_v43 }
0x17c6   :  { %7165 = vmatpush3.bf16.msra.mxu0 %v7162_v43 }
0x17c7   :  { %7167 = vmatprep.subr.bf16.mxu0 %v7166_v34 }
0x17ca   :  { %7169 = vmatpush3.bf16.msra.mxu0 %v7166_v34 }
0x17cb   :  { %7171 = vmatprep.subr.bf16.mxu0 %v7170_v7 }
0x17ce   :  { %7173 = vmatpush3.bf16.msra.mxu0 %v7170_v7 }
0x17cf   :  { %7175 = vmatprep.subr.bf16.mxu0 %v7174_v52 }
0x17d2   :  { %7177 = vmatpush3.bf16.msra.mxu0 %v7174_v52 }
0x17d3   :  { %7179 = vmatprep.subr.bf16.mxu0 %v7178_v22 }
0x17d6   :  { %7181 = vmatpush3.bf16.msra.mxu0 %v7178_v22 }
0x1842   :  { %v4988_v42 = vpop.xlane.xlu0 %4987 }
0x1843   :  { %v4992_v46 = vsub.f32 %v4913_v35, %v4988_v42  ;;  %v7194_v42 = vpack.c.bf16 %v5314_v58, %v5313_v9  ;;  %v5614_v58 = vld [vmem:[#allocation16 + $0x1] ss:$0 sm:$0xff] }
0x1845   :  { %v4994_v47 = vmul.f32 1.442695, %v4992_v46  ;;  %v5315_v46 = vld [vmem:[#allocation15 + $0xc0] sm:$0xff] }
0x1846   :  { %v4991_v25 = vpop.xlane.xlu1 %4990 }
0x1847   :  { %7354 = vpow2.f32 %v4994_v47  ;;  %v4993_v54 = vsub.f32 %v4983_v33, %v4991_v25  ;;  %v5316_v47 = vld [vmem:[#allocation15 + $0xc8] sm:$0xff]  ;;  %v5317_v25 = vld [vmem:[#allocation15 + $0xd0] sm:$0xff] }
0x1849   :  { %v4996_v16 = vmul.f32 1.442695, %v4993_v54  ;;  %v7198_v54 = vpack.c.bf16 %v5316_v47, %v5315_v46 }
0x184b   :  { %7356 = vpow2.f32 %v4996_v16  ;;  %v5318_v16 = vld [vmem:[#allocation15 + $0xd8] sm:$0xff] }
0x1851   :  { %v7355_v6 = vpop.eup %7354 }
0x1852   :  { %v4998_v23 = vsel %vm1145_vm1, %v7355_v6, 0.0 }
0x1853   :  { %4999 = vadd.xlane.f32.xlu0 %v4998_v23  ;;  %v5319_v23 = vld [vmem:[#allocation15 + $0xe0] sm:$0xff] }
0x1855   :  { %v7357_v13 = vpop.eup %7356 }
0x1856   :  { %v5001_v59 = vsel %vm1145_vm1, %v7357_v13, 0.0 }
0x1857   :  { %5002 = vadd.xlane.f32.xlu1 %v5001_v59 }
0x18e0   :  { %v5000_v26 = vpop.xlane.xlu0 %4999 }
0x18e1   :  { %7358 = vrcp.f32 %v5000_v26 }
0x18e4   :  { %v5003_v0 = vpop.xlane.xlu1 %5002 }
0x18e5   :  { %7360 = vrcp.f32 %v5003_v0 }
0x18eb   :  { %v7359_v40 = vpop.eup %7358 }
0x18ec   :  { %v5006_v5 = vmul.f32 %v7359_v40, %v7355_v6  ;;  %v7202_v6 = vpack.c.bf16 %v5318_v16, %v5317_v25  ;;  %v5612_v40 = vld [vmem:[#allocation12 + $0x1] ss:$0 sm:$0xff] }
0x18ee   :  { %6366 = vmatmul.mubr.msk.f32.vlgmr.msra.gmra.mrb[86].mxu1 %vm1145_vm1, %v5006_v5 }
0x18ef   :  { %v7361_v17 = vpop.eup %7360  ;;  %6369 = vmatpush3.msra.mxu1 %v8404_v60  ;;  %6370 = vmatprep.mubr.msk.f32.mxu1 %vm7723_vm0, %v7722_v44  ;;  %v7182_v60 = vpack.c.bf16 %v5308_v51, %v5307_v24  ;;  %v5611_v44 = vld [vmem:[#allocation10 + $0x1] ss:$0 sm:$0xff]  ;;  %v5429_v51 = vld [vmem:[#allocation18 + $0xa0] sm:$0xff] }
0x18f0   :  { %v5007_v49 = vmul.f32 %v7361_v17, %v7357_v13  ;;  %v5320_v13 = vld [vmem:[#allocation15 + $0xe8] sm:$0xff] }
0x18f1   :  { %7183 = vmatprep.subr.bf16.mxu1 %v7182_v60  ;;  %v7206_v59 = vpack.c.bf16 %v5320_v13, %v5319_v23 }
0x18f2   :  { %6371 = vmatmul.mubr.msk.f32.vlgmr.msra.gmra.mrb[88].mxu1 %vm1145_vm1, %v5007_v49 }
0x18f3   :  { %7185 = vmatpush3.bf16.msra.mxu1 %v7182_v60  ;;  %v5430_v60 = vld [vmem:[#allocation18 + $0xa8] sm:$0xff] }
0x18f4   :  { %7187 = vmatprep.subr.bf16.mxu1 %v7186_v3 }
0x18f7   :  { %7189 = vmatpush3.bf16.msra.mxu1 %v7186_v3  ;;  %v5438_v3 = vld [vmem:[#allocation18 + $0xe8] sm:$0xff] }
0x19c1   :  { %v5077_v53 = vpop.f32.mrb[86].mxu1 }
0x19c2   :  { %v6367_v61 = vpop.f32.mrb[87].mxu1  ;;  %6405 = vmatprep.mubr.f32.mxu0 %v5077_v53 }
0x19c5   :  { %v5150_v56 = vpop.f32.mrb[88].mxu1 }
0x19c6   :  { %v6372_v62 = vpop.f32.mrb[89].mxu1  ;;  %6406 = vmatmul.mubr.f32.vlgmr.msra.gmra.mrb[28].mxu0 %v5150_v56  ;;  %v5427_v56 = vld [vmem:[#allocation18 + $0x90] sm:$0xff] }
0x19c7   :  { %v5428_v62 = vld [vmem:[#allocation18 + $0x98] sm:$0xff] }
0x19c8   :  { %v7218_v24 = vpack.c.bf16 %v5428_v62, %v5427_v56 }
0x1a99   :  { %v6407_v12 = vpop.f32.mrb[28].mxu0 }
0x1a9a   :  { %v5257_v20 = vadd.f32 %v6407_v12, %v5611_v44  ;;  %v5237_v48 = vpop.f32.mrb[29].mxu0  ;;  %v5431_v12 = vld [vmem:[#allocation18 + $0xb0] sm:$0xff] }
0x1a9b   :  { %v5256_v55 = vadd.f32 %v5611_v44, %v5237_v48  ;;  %v7222_v44 = vpack.c.bf16 %v5430_v60, %v5429_v51 }
0x1a9c   :  { %v8525_v37 = vadd.f32 %v5257_v20, %v8315_v57  ;;  %v5311_v57 = vld [vmem:[#allocation15 + $0xa0] sm:$0xff] }
0x1a9d   :  { %v8528_v18 = vadd.f32 %v5256_v55, %v8311_v39  ;;  %v5312_v39 = vld [vmem:[#allocation15 + $0xa8] sm:$0xff]  ;;  %v5432_v20 = vld [vmem:[#allocation18 + $0xb8] sm:$0xff] }
0x1a9e   :  { %5266 = vadd.xlane.f32.xlu1 %v8525_v37  ;;  %v5271_v41 = vmul.f32 %v8525_v37, %v8525_v37  ;;  %v7190_v33 = vpack.c.bf16 %v5312_v39, %v5311_v57  ;;  %v7226_v48 = vpack.c.bf16 %v5432_v20, %v5431_v12  ;;  %v5433_v55 = vld [vmem:[#allocation18 + $0xc0] sm:$0xff]  ;;  %v7238_v57 = vpack.c.bf16 %v5438_v3, %v5437_v15  ;;  %v5439_v39 = vld [vmem:[#allocation18 + $0xf0] sm:$0xff] }
0x1a9f   :  { %5264 = vadd.xlane.f32.xlu0 %v8528_v18  ;;  %v5270_v35 = vmul.f32 %v8528_v18, %v8528_v18  ;;  %v5616_v12 = vld [vmem:[#allocation21 + $0x1] ss:$0 sm:$0xff] }
0x1aa0   :  { %7191 = vmatprep.subr.bf16.mxu1 %v7190_v33 }
0x1aa1   :  { %7193 = vmatpush3.bf16.msra.mxu1 %v7190_v33  ;;  %v5440_v33 = vld [vmem:[#allocation18 + $0xf8] sm:$0xff] }
0x1aa2   :  { %5274 = vadd.xlane.f32.xlu1 %v5271_v41  ;;  %7195 = vmatprep.subr.bf16.mxu1 %v7194_v42  ;;  %v5435_v41 = vld [vmem:[#allocation18 + $0xd0] sm:$0xff]  ;;  %v7242_v9 = vpack.c.bf16 %v5440_v33, %v5439_v39 }
0x1aa3   :  { %5272 = vadd.xlane.f32.xlu0 %v5270_v35  ;;  %v5436_v35 = vld [vmem:[#allocation18 + $0xd8] sm:$0xff] }
0x1aa4   :  { %v7234_v50 = vpack.c.bf16 %v5436_v35, %v5435_v41 }
0x1aa5   :  { %7197 = vmatpush3.bf16.msra.mxu1 %v7194_v42 }
0x1aa6   :  { %7199 = vmatprep.subr.bf16.mxu1 %v7198_v54 }
0x1aa9   :  { %7201 = vmatpush3.bf16.msra.mxu1 %v7198_v54 }
0x1aaa   :  { %7203 = vmatprep.subr.bf16.mxu1 %v7202_v6 }
0x1aad   :  { %7205 = vmatpush3.bf16.msra.mxu1 %v7202_v6 }
0x1aae   :  { %7207 = vmatprep.subr.bf16.mxu1 %v7206_v59 }
0x1ab1   :  { %7209 = vmatpush3.bf16.msra.mxu1 %v7206_v59 }
0x1ab2   :  { %7211 = vmatprep.subr.bf16.mxu1 %v7210_v38 }
0x1ab5   :  { %7213 = vmatpush3.bf16.msra.mxu1 %v7210_v38 }
0x1ab6   :  { %7215 = vmatprep.subr.bf16.mxu1 %v7214_v10 }
0x1b2b   :  { %v5267_v4 = vpop.xlane.xlu1 %5266 }
0x1b2c   :  { %v5269_v19 = vmul.f32 0.03125, %v5267_v4  ;;  %v5265_v11 = vpop.xlane.xlu0 %5264 }
0x1b2d   :  { %v5268_v21 = vmul.f32 0.03125, %v5265_v11 }
0x1b2e   :  { %v5279_v43 = vmul.f32 %v5269_v19, %v5269_v19  ;;  %v5283_v52 = vsub.f32 %v8525_v37, %v5269_v19  ;;  %v5434_v37 = vld [vmem:[#allocation18 + $0xc8] sm:$0xff] }
0x1b2f   :  { %v5275_v45 = vpop.xlane.xlu1 %5274  ;;  %v5278_v34 = vmul.f32 %v5268_v21, %v5268_v21  ;;  %v5282_v0 = vsub.f32 %v8528_v18, %v5268_v21  ;;  %v7230_v18 = vpack.c.bf16 %v5434_v37, %v5433_v55  ;;  %v5617_v55 = vld [vmem:[#allocation22 + $0x1] ss:$0 sm:$0xff] }
0x1b30   :  { %v5277_v27 = vmul.f32 0.03125, %v5275_v45  ;;  %v5273_v31 = vpop.xlane.xlu0 %5272 }
0x1b31   :  { %v5276_v28 = vmul.f32 0.03125, %v5273_v31 }
0x1b32   :  { %v5281_v36 = vsub.f32 %v5277_v27, %v5279_v43  ;;  %v5615_v27 = vld [vmem:[#allocation19 + $0x1] ss:$0 sm:$0xff] }
0x1b33   :  { %v5280_v7 = vsub.f32 %v5276_v28, %v5278_v34 }
0x1b34   :  { %v5285_v8 = vadd.f32 1e-12, %v5281_v36 }
0x1b35   :  { %v5284_v63 = vadd.f32 1e-12, %v5280_v7 }
0x1b36   :  { %7362 = vrsqrt.f32 %v5285_v8 }
0x1b37   :  { %7364 = vrsqrt.f32 %v5284_v63 }
0x1b40   :  { %v7363_v26 = vpop.eup %7362 }
0x1b41   :  { %v7365_v5 = vpop.eup %7364  ;;  %v5289_v17 = vmul.f32 %v7363_v26, %v5283_v52 }
0x1b42   :  { %v5288_v49 = vmul.f32 %v7365_v5, %v5282_v0 }
0x1b43   :  { %v5297_v1 = vmul.f32 %v5612_v40, %v5289_v17 }
0x1b44   :  { %v5296_v22 = vmul.f32 %v5612_v40, %v5288_v49 }
0x1b45   :  { %v8540_v61 = vadd.f32 %v5613_v30, %v5297_v1 }
0x1b46   :  { %v8538_v53 = vadd.f32 %v5613_v30, %v5296_v22 }
0x1b48   :  { %6440 = vmatprep.mubr.f32.mxu1 %v8538_v53 }
0x1b49   :  { %6441 = vmatmul.mubr.f32.vlgmr.msra.gmra.mrb[90].mxu1 %v8540_v61 }
0x1b4a   :  { %7217 = vmatpush3.bf16.msra.mxu1 %v7214_v10 }
0x1b4b   :  { %7219 = vmatprep.subr.bf16.mxu1 %v7218_v24 }
0x1b4e   :  { %7221 = vmatpush3.bf16.msra.mxu1 %v7218_v24 }
0x1b4f   :  { %7223 = vmatprep.subr.bf16.mxu1 %v7222_v44 }
0x1b52   :  { %7225 = vmatpush3.bf16.msra.mxu1 %v7222_v44 }
0x1b53   :  { %7227 = vmatprep.subr.bf16.mxu1 %v7226_v48 }
0x1b56   :  { %7229 = vmatpush3.bf16.msra.mxu1 %v7226_v48 }
0x1b57   :  { %7231 = vmatprep.subr.bf16.mxu1 %v7230_v18 }
0x1b5a   :  { %7233 = vmatpush3.bf16.msra.mxu1 %v7230_v18 }
0x1b5b   :  { %7235 = vmatprep.subr.bf16.mxu1 %v7234_v50 }
0x1b5e   :  { %7237 = vmatpush3.bf16.msra.mxu1 %v7234_v50 }
0x1b5f   :  { %7239 = vmatprep.subr.bf16.mxu1 %v7238_v57 }
0x1b62   :  { %7241 = vmatpush3.bf16.msra.mxu1 %v7238_v57 }
0x1b63   :  { %7243 = vmatprep.subr.bf16.mxu1 %v7242_v9 }
0x1b66   :  { %7245 = vmatpush3.bf16.msra.mxu1 %v7242_v9 }
0x1c1c   :  { %v6442_v42 = vpop.f32.mrb[90].mxu1 }
0x1c1d   :  { %v5403_v46 = vadd.f32 %v6442_v42, %v5614_v58  ;;  %v5397_v47 = vpop.f32.mrb[91].mxu1 }
0x1c1e   :  { %v5398_v25 = vadd.f32 %v5614_v58, %v5397_v47 }
0x1c1f   :  { %v5409_v54 = vmul.f32 0.044715, %v5403_v46  ;;  %v5407_v21 = vmul.f32 0.5, %v5403_v46 }
0x1c20   :  { %v5408_v16 = vmul.f32 0.044715, %v5398_v25  ;;  %v5406_v19 = vmul.f32 0.5, %v5398_v25 }
0x1c21   :  { %v5411_v6 = vmul.f32 %v5409_v54, %v5403_v46 }
0x1c22   :  { %v5410_v23 = vmul.f32 %v5408_v16, %v5398_v25 }
0x1c23   :  { %v5413_v13 = vmul.f32 %v5411_v6, %v5403_v46 }
0x1c24   :  { %v5412_v59 = vmul.f32 %v5410_v23, %v5398_v25 }
0x1c25   :  { %v5415_v32 = vadd.f32 %v5413_v13, %v5403_v46 }
0x1c26   :  { %v5414_v29 = vadd.f32 %v5412_v59, %v5398_v25 }
0x1c27   :  { %v5417_v38 = vmul.f32 0.7978846, %v5415_v32 }
0x1c28   :  { %v5416_v2 = vmul.f32 0.7978846, %v5414_v29 }
0x1c29   :  { %7366 = vtanh.f32 %v5417_v38 }
0x1c2a   :  { %7368 = vtanh.f32 %v5416_v2 }
0x1c33   :  { %v7367_v14 = vpop.eup %7366 }
0x1c34   :  { %v7369_v10 = vpop.eup %7368  ;;  %v5421_v4 = vadd.f32 1.0, %v7367_v14 }
0x1c35   :  { %v5420_v11 = vadd.f32 1.0, %v7369_v10 }
0x1c36   :  { %v5423_v43 = vmul.f32 %v5421_v4, %v5407_v21 }
0x1c37   :  { %v5422_v45 = vmul.f32 %v5420_v11, %v5406_v19 }
0x1c39   :  { %6475 = vmatprep.mubr.f32.mxu1 %v5422_v45 }
0x1c3a   :  { %6476 = vmatmul.mubr.f32.vlgmr.msra.gmra.mrb[92].mxu1 %v5423_v43 }
0x1d0d   :  { %v6477_v31 = vpop.f32.mrb[92].mxu1 }
0x1d0e   :  { %v5521_v34 = vadd.f32 %v6477_v31, %v5615_v27  ;;  %v5515_v28 = vpop.f32.mrb[93].mxu1 }
0x1d0f   :  { %v5516_v36 = vadd.f32 %v5615_v27, %v5515_v28 }
0x1d10   :  { %v5525_v7 = vadd.f32 %v5521_v34, %v8540_v61 }
0x1d11   :  { %v5524_v8 = vadd.f32 %v5516_v36, %v8538_v53 }
0x1d12   :  { %5532 = vadd.xlane.f32.xlu1 %v5525_v7  ;;  %v5537_v63 = vmul.f32 %v5525_v7, %v5525_v7 }
0x1d13   :  { %5530 = vadd.xlane.f32.xlu0 %v5524_v8  ;;  %v5536_v52 = vmul.f32 %v5524_v8, %v5524_v8 }
0x1d16   :  { %5540 = vadd.xlane.f32.xlu1 %v5537_v63 }
0x1d17   :  { %5538 = vadd.xlane.f32.xlu0 %v5536_v52 }
0x1d9f   :  { %v5533_v26 = vpop.xlane.xlu1 %5532 }
0x1da0   :  { %v5535_v0 = vmul.f32 0.03125, %v5533_v26  ;;  %v5531_v40 = vpop.xlane.xlu0 %5530 }
0x1da1   :  { %v5534_v5 = vmul.f32 0.03125, %v5531_v40 }
0x1da2   :  { %v5545_v49 = vmul.f32 %v5535_v0, %v5535_v0  ;;  %v5549_v51 = vsub.f32 %v5525_v7, %v5535_v0 }
0x1da3   :  { %v5541_v17 = vpop.xlane.xlu1 %5540  ;;  %v5544_v22 = vmul.f32 %v5534_v5, %v5534_v5  ;;  %v5548_v44 = vsub.f32 %v5524_v8, %v5534_v5 }
0x1da4   :  { %v5543_v30 = vmul.f32 0.03125, %v5541_v17  ;;  %v5539_v1 = vpop.xlane.xlu0 %5538 }
0x1da5   :  { %v5542_v56 = vmul.f32 0.03125, %v5539_v1 }
0x1da6   :  { %v5547_v62 = vsub.f32 %v5543_v30, %v5545_v49 }
0x1da7   :  { %v5546_v61 = vsub.f32 %v5542_v56, %v5544_v22 }
0x1da8   :  { %v5551_v24 = vadd.f32 1e-12, %v5547_v62 }
0x1da9   :  { %v5550_v53 = vadd.f32 1e-12, %v5546_v61 }
0x1daa   :  { %7370 = vrsqrt.f32 %v5551_v24 }
0x1dab   :  { %7372 = vrsqrt.f32 %v5550_v53 }
0x1db4   :  { %v7371_v60 = vpop.eup %7370 }
0x1db5   :  { %v7373_v20 = vpop.eup %7372  ;;  %v5555_v48 = vmul.f32 %v7371_v60, %v5549_v51 }
0x1db6   :  { %v5554_v37 = vmul.f32 %v7373_v20, %v5548_v44 }
0x1db7   :  { %v5563_v18 = vmul.f32 %v5616_v12, %v5555_v48 }
0x1db8   :  { %v5562_v41 = vmul.f32 %v5616_v12, %v5554_v37 }
0x1db9   :  { %v5571_v35 = vadd.f32 %v5617_v55, %v5563_v18 }
0x1dba   :  { %v5570_v50 = vadd.f32 %v5617_v55, %v5562_v41 }
0x1dbb   :  { %5573 = vst [vmem:[%s8568_s16 + $0x8] sm:$0xff] %v5571_v35 }
0x1dbc   :  { %5572 = vst [vmem:[%s8568_s16] sm:$0xff] %v5570_v50 }
0x1dbd   :  { %5578 = vsyncpa [#allocation3], 1 }
0x1dbe   :  { %5579 = vsyncpa [#allocation5], 1 }
0x1dbf   :  { %5580 = vsyncpa [#allocation8], 1 }
0x1dc0   :  { %5581 = vsyncpa [#allocation11], 1 }
0x1dc1   :  { %5582 = vsyncpa [#allocation14], 1 }
0x1dc2   :  { %5583 = vsyncpa [#allocation17], 1 }
0x1dc3   :  { %5584 = vsyncpa [#allocation20], 1 }
0x1dc4   :  { %5585 = vsyncpa [#allocation23], 1 }

</bundles_post_ra>
